<compile_context>
chip_gen: v7x
topology: tpu7x:2x2x1
jax: 0.10.0
libtpu: 0.0.40
codegen_flags: <defaults>
</compile_context>

<pallas_src>
import functools

import jax
import jax.numpy as jnp
import numpy as np
from jax import lax
from jax.experimental import pallas as pl
from jax.experimental.pallas import tpu as pltpu

# ---- model hyper-parameters (from the PyTorch module) ----
BLOCK_SIZE = 8            # block_size  (T)
EMB = 64                  # embedding_count
HEADS = 4                 # head_count
HEAD_DIM = EMB // HEADS   # head_size = 16
LAYERS = 4                # layer_count
VOCAB = 65                # vocab_size (synthetic token set)
VOCAB_PAD = 128           # lane-dense padded vocab for the logits store
FF = 4 * EMB              # feed-forward hidden size
EPS = 1e-5                # nn.LayerNorm default eps
ATT_SCALE = HEADS ** -0.5 # NOTE: reference scales by head_count**-0.5 (intentional)
NEG_BIAS = -1e30          # additive causal-mask bias


def _layer_norm(x, g, b):
    mu = jnp.mean(x, axis=-1, keepdims=True)
    var = jnp.mean((x - mu) ** 2, axis=-1, keepdims=True)
    return (x - mu) * lax.rsqrt(var + EPS) * g + b


def transformer_kernel(x_ref, ln1g_ref, ln1b_ref, wq_ref, wk_ref, wv_ref,
                       wp_ref, bp_ref, ln2g_ref, ln2b_ref,
                       w1_ref, b1_ref, w2_ref, b2_ref,
                       lnfg_ref, lnfb_ref, wlm_ref, blm_ref,
                       out_ref, *, batch, seqlen):
    B, T = batch, seqlen
    x = x_ref[...]                                    # (B*T, C) float32 residual

    # additive causal bias, built once (replaces per-head jnp.where selects)
    row = lax.broadcasted_iota(jnp.int32, (T, T), 0)
    col = lax.broadcasted_iota(jnp.int32, (T, T), 1)
    causal_bias = jnp.where(col <= row, 0.0, NEG_BIAS).astype(jnp.float32)

    for l in range(LAYERS):                           # layers unrolled in-kernel
        # ---------- multi-head causal self-attention (pre-LN) ----------
        h = _layer_norm(x, ln1g_ref[l], ln1b_ref[l])
        hb = h.astype(jnp.bfloat16)
        q = jnp.dot(hb, wq_ref[l], preferred_element_type=jnp.float32)
        k = jnp.dot(hb, wk_ref[l], preferred_element_type=jnp.float32)
        v = jnp.dot(hb, wv_ref[l], preferred_element_type=jnp.float32)
        q3 = q.reshape(B, T, EMB)
        k3 = k.reshape(B, T, EMB)
        v3 = v.reshape(B, T, EMB)

        head_outs = []
        for hi in range(HEADS):
            lo = hi * HEAD_DIM
            qh = q3[:, :, lo:lo + HEAD_DIM].astype(jnp.bfloat16)
            kh = k3[:, :, lo:lo + HEAD_DIM].astype(jnp.bfloat16)
            vh = v3[:, :, lo:lo + HEAD_DIM].astype(jnp.bfloat16)
            s = jnp.einsum('btd,bsd->bts', qh, kh,
                           preferred_element_type=jnp.float32)
            s = s * ATT_SCALE + causal_bias
            s = s - jnp.max(s, axis=-1, keepdims=True)
            e = jnp.exp(s)
            p = e * pl.reciprocal(jnp.sum(e, axis=-1, keepdims=True), approx=True)
            head_outs.append(jnp.einsum('bts,bsd->btd', p.astype(jnp.bfloat16), vh,
                                        preferred_element_type=jnp.float32))
        att = jnp.concatenate(head_outs, axis=-1).reshape(B * T, EMB)
        att = jnp.dot(att.astype(jnp.bfloat16), wp_ref[l],
                      preferred_element_type=jnp.float32) + bp_ref[l]
        x = x + att                                   # dropout: identity (eval)

        # ---------- feed-forward (pre-LN) ----------
        h2 = _layer_norm(x, ln2g_ref[l], ln2b_ref[l])
        f = jnp.dot(h2.astype(jnp.bfloat16), w1_ref[l],
                    preferred_element_type=jnp.float32) + b1_ref[l]
        f = jnp.maximum(f, 0.0)
        f = jnp.dot(f.astype(jnp.bfloat16), w2_ref[l],
                    preferred_element_type=jnp.float32) + b2_ref[l]
        x = x + f                                     # dropout: identity (eval)

    # ---------- final LayerNorm + lm_head (lane-padded to 128) ----------
    hf = _layer_norm(x, lnfg_ref[0], lnfb_ref[0])
    out_ref[...] = jnp.dot(hf.astype(jnp.bfloat16), wlm_ref[...],
                           preferred_element_type=jnp.float32) + blm_ref[0]


def init_params(key):
    std = 0.02
    ks = jax.random.split(key, 10)
    p = {}
    p['tok_emb'] = std * jax.random.normal(ks[0], (VOCAB, EMB), jnp.float32)
    p['pos_emb'] = std * jax.random.normal(ks[1], (BLOCK_SIZE, EMB), jnp.float32)
    p['wq'] = std * jax.random.normal(ks[2], (LAYERS, EMB, EMB), jnp.float32)
    p['wk'] = std * jax.random.normal(ks[3], (LAYERS, EMB, EMB), jnp.float32)
    p['wv'] = std * jax.random.normal(ks[4], (LAYERS, EMB, EMB), jnp.float32)
    p['wp'] = std * jax.random.normal(ks[5], (LAYERS, EMB, EMB), jnp.float32)
    p['bp'] = jnp.zeros((LAYERS, EMB), jnp.float32)
    p['ln1_g'] = jnp.ones((LAYERS, EMB), jnp.float32)
    p['ln1_b'] = jnp.zeros((LAYERS, EMB), jnp.float32)
    p['ln2_g'] = jnp.ones((LAYERS, EMB), jnp.float32)
    p['ln2_b'] = jnp.zeros((LAYERS, EMB), jnp.float32)
    p['w1'] = std * jax.random.normal(ks[6], (LAYERS, EMB, FF), jnp.float32)
    p['b1'] = jnp.zeros((LAYERS, FF), jnp.float32)
    p['w2'] = std * jax.random.normal(ks[7], (LAYERS, FF, EMB), jnp.float32)
    p['b2'] = jnp.zeros((LAYERS, EMB), jnp.float32)
    p['lnf_g'] = jnp.ones((EMB,), jnp.float32)
    p['lnf_b'] = jnp.zeros((EMB,), jnp.float32)
    p['w_lm'] = std * jax.random.normal(ks[8], (EMB, VOCAB), jnp.float32)
    p['b_lm'] = jnp.zeros((VOCAB,), jnp.float32)
    return p


def transformer_forward(idx, p):
    """Forward pass: idx (B, T) int32 -> logits (B, T, VOCAB) f32 (targets=None)."""
    B, T = idx.shape
    # token/position embedding gather is glue: plain JAX, result fed to the kernel
    tok = jnp.take(p['tok_emb'], idx, axis=0)                 # (B, T, C)
    pos = p['pos_emb'][:T]                                    # (T, C)
    x2d = (tok + pos[None]).astype(jnp.float32).reshape(B * T, EMB)

    # bf16 copies of the matmul weights (f32 accumulation in-kernel); pad the
    # lm_head lane dim 65 -> 128 for a lane-dense logits store.
    bf = jnp.bfloat16
    wq = p['wq'].astype(bf)
    wk = p['wk'].astype(bf)
    wv = p['wv'].astype(bf)
    wp = p['wp'].astype(bf)
    w1 = p['w1'].astype(bf)
    w2 = p['w2'].astype(bf)
    w_lm = jnp.pad(p['w_lm'], ((0, 0), (0, VOCAB_PAD - VOCAB))).astype(bf)
    b_lm = jnp.pad(p['b_lm'], (0, VOCAB_PAD - VOCAB)).reshape(1, VOCAB_PAD)

    def full(shape):
        zeros = (0,) * len(shape)
        return pl.BlockSpec(shape, lambda i: zeros)

    in_specs = [
        full((B * T, EMB)),                                    # x (embeddings)
        full((LAYERS, EMB)), full((LAYERS, EMB)),              # ln1 gamma / beta
        full((LAYERS, EMB, EMB)), full((LAYERS, EMB, EMB)),    # wq, wk
        full((LAYERS, EMB, EMB)), full((LAYERS, EMB, EMB)),    # wv, wp
        full((LAYERS, EMB)),                                   # proj bias
        full((LAYERS, EMB)), full((LAYERS, EMB)),              # ln2 gamma / beta
        full((LAYERS, EMB, FF)), full((LAYERS, FF)),           # ff W1 / b1
        full((LAYERS, FF, EMB)), full((LAYERS, EMB)),          # ff W2 / b2
        full((1, EMB)), full((1, EMB)),                        # ln_f gamma / beta
        full((EMB, VOCAB_PAD)), full((1, VOCAB_PAD)),          # lm_head W / b
    ]
    out_spec = full((B * T, VOCAB_PAD))

    kernel = functools.partial(transformer_kernel, batch=B, seqlen=T)
    logits = pl.pallas_call(
        kernel,
        out_shape=jax.ShapeDtypeStruct((B * T, VOCAB_PAD), jnp.float32),
        grid_spec=pltpu.PrefetchScalarGridSpec(
            num_scalar_prefetch=0,
            grid=(1,),
            in_specs=in_specs,
            out_specs=out_spec,
        ),
        compiler_params=pltpu.CompilerParams(
            dimension_semantics=("arbitrary",)),
    )(x2d, p['ln1_g'], p['ln1_b'], wq, wk, wv, wp, p['bp'],
      p['ln2_g'], p['ln2_b'], w1, p['b1'], w2, p['b2'],
      p['lnf_g'].reshape(1, EMB), p['lnf_b'].reshape(1, EMB),
      w_lm, b_lm)

    return logits.reshape(B, T, VOCAB_PAD)[:, :, :VOCAB]


def _mm(a, w):
    """bf16-operand / f32-accumulate matmul, matching the kernel's MXU policy."""
    return jnp.dot(a.astype(jnp.bfloat16), w.astype(jnp.bfloat16),
                   preferred_element_type=jnp.float32)


def reference_forward(idx, p):
    """Pure-JAX reference mirroring the PyTorch forward (targets=None, eval).

    Matmul operands are cast to bf16 with f32 accumulation -- the same precision
    policy the Pallas kernel uses -- so the comparison isolates kernel correctness
    rather than the (intentional) bf16 MXU precision choice."""
    B, T = idx.shape
    x = jnp.take(p['tok_emb'], idx, axis=0) + p['pos_emb'][:T][None]
    mask = jnp.tril(jnp.ones((T, T), bool))[None]
    for l in range(LAYERS):
        h = _layer_norm(x, p['ln1_g'][l], p['ln1_b'][l])
        q = _mm(h, p['wq'][l])
        k = _mm(h, p['wk'][l])
        v = _mm(h, p['wv'][l])
        outs = []
        for hi in range(HEADS):
            sl = slice(hi * HEAD_DIM, (hi + 1) * HEAD_DIM)
            s = jnp.einsum('btd,bsd->bts',
                           q[..., sl].astype(jnp.bfloat16),
                           k[..., sl].astype(jnp.bfloat16),
                           preferred_element_type=jnp.float32) * ATT_SCALE
            s = jnp.where(mask, s, -jnp.inf)
            w = jax.nn.softmax(s, axis=-1)
            outs.append(jnp.einsum('bts,bsd->btd',
                                   w.astype(jnp.bfloat16),
                                   v[..., sl].astype(jnp.bfloat16),
                                   preferred_element_type=jnp.float32))
        att = jnp.concatenate(outs, -1)
        x = x + _mm(att, p['wp'][l]) + p['bp'][l]
        h2 = _layer_norm(x, p['ln2_g'][l], p['ln2_b'][l])
        f = jnp.maximum(_mm(h2, p['w1'][l]) + p['b1'][l], 0.0)
        x = x + _mm(f, p['w2'][l]) + p['b2'][l]
    hf = _layer_norm(x, p['lnf_g'], p['lnf_b'])
    return _mm(hf, p['w_lm']) + p['b_lm']


if __name__ == "__main__":
    key = jax.random.PRNGKey(0)
    pkey, ikey = jax.random.split(key)
    params = init_params(pkey)

    B, T = 2, BLOCK_SIZE
    idx = jax.random.randint(ikey, (B, T), 0, VOCAB, dtype=jnp.int32)

    logits = jax.block_until_ready(transformer_forward(idx, params))
    ref = jax.block_until_ready(reference_forward(idx, params))

    np.testing.assert_allclose(np.asarray(logits), np.asarray(ref),
                               rtol=5e-3, atol=5e-3)
    print("KERNEL_OK")
</pallas_src>

<mosaic_0001>
module attributes {stable_mosaic.version = 11 : i64} {
  func.func @transformer_kernel(%arg0: i32, %arg1: memref<16x64xf32, #tpu.memory_space<vmem>>, %arg2: memref<4x64xf32, #tpu.memory_space<vmem>>, %arg3: memref<4x64xf32, #tpu.memory_space<vmem>>, %arg4: memref<4x64x64xbf16, #tpu.memory_space<vmem>>, %arg5: memref<4x64x64xbf16, #tpu.memory_space<vmem>>, %arg6: memref<4x64x64xbf16, #tpu.memory_space<vmem>>, %arg7: memref<4x64x64xbf16, #tpu.memory_space<vmem>>, %arg8: memref<4x64xf32, #tpu.memory_space<vmem>>, %arg9: memref<4x64xf32, #tpu.memory_space<vmem>>, %arg10: memref<4x64xf32, #tpu.memory_space<vmem>>, %arg11: memref<4x64x256xbf16, #tpu.memory_space<vmem>>, %arg12: memref<4x256xf32, #tpu.memory_space<vmem>>, %arg13: memref<4x256x64xbf16, #tpu.memory_space<vmem>>, %arg14: memref<4x64xf32, #tpu.memory_space<vmem>>, %arg15: memref<1x64xf32, #tpu.memory_space<vmem>>, %arg16: memref<1x64xf32, #tpu.memory_space<vmem>>, %arg17: memref<64x128xbf16, #tpu.memory_space<vmem>>, %arg18: memref<1x128xf32, #tpu.memory_space<vmem>>, %arg19: memref<16x128xf32, #tpu.memory_space<vmem>>) attributes {dimension_semantics = [#tpu.dimension_semantics<arbitrary>], iteration_bounds = array<i64: 1>, scalar_prefetch = 0 : i64, scratch_operands = 0 : i64, tpu.core_type = #tpu.core_type<tc>, window_params = [{pipeline_mode = #tpu.pipeline_mode<synchronous>, transform_indices = @transform_0, window_bounds = array<i64: 16, 64>}, {pipeline_mode = #tpu.pipeline_mode<synchronous>, transform_indices = @transform_1, window_bounds = array<i64: 4, 64>}, {pipeline_mode = #tpu.pipeline_mode<synchronous>, transform_indices = @transform_2, window_bounds = array<i64: 4, 64>}, {pipeline_mode = #tpu.pipeline_mode<synchronous>, transform_indices = @transform_3, window_bounds = array<i64: 4, 64, 64>}, {pipeline_mode = #tpu.pipeline_mode<synchronous>, transform_indices = @transform_4, window_bounds = array<i64: 4, 64, 64>}, {pipeline_mode = #tpu.pipeline_mode<synchronous>, transform_indices = @transform_5, window_bounds = array<i64: 4, 64, 64>}, {pipeline_mode = #tpu.pipeline_mode<synchronous>, transform_indices = @transform_6, window_bounds = array<i64: 4, 64, 64>}, {pipeline_mode = #tpu.pipeline_mode<synchronous>, transform_indices = @transform_7, window_bounds = array<i64: 4, 64>}, {pipeline_mode = #tpu.pipeline_mode<synchronous>, transform_indices = @transform_8, window_bounds = array<i64: 4, 64>}, {pipeline_mode = #tpu.pipeline_mode<synchronous>, transform_indices = @transform_9, window_bounds = array<i64: 4, 64>}, {pipeline_mode = #tpu.pipeline_mode<synchronous>, transform_indices = @transform_10, window_bounds = array<i64: 4, 64, 256>}, {pipeline_mode = #tpu.pipeline_mode<synchronous>, transform_indices = @transform_11, window_bounds = array<i64: 4, 256>}, {pipeline_mode = #tpu.pipeline_mode<synchronous>, transform_indices = @transform_12, window_bounds = array<i64: 4, 256, 64>}, {pipeline_mode = #tpu.pipeline_mode<synchronous>, transform_indices = @transform_13, window_bounds = array<i64: 4, 64>}, {pipeline_mode = #tpu.pipeline_mode<synchronous>, transform_indices = @transform_14, window_bounds = array<i64: 1, 64>}, {pipeline_mode = #tpu.pipeline_mode<synchronous>, transform_indices = @transform_15, window_bounds = array<i64: 1, 64>}, {pipeline_mode = #tpu.pipeline_mode<synchronous>, transform_indices = @transform_16, window_bounds = array<i64: 64, 128>}, {pipeline_mode = #tpu.pipeline_mode<synchronous>, transform_indices = @transform_17, window_bounds = array<i64: 1, 128>}, {pipeline_mode = #tpu.pipeline_mode<synchronous>, transform_indices = @transform_18, window_bounds = array<i64: 16, 128>}]} {
    %c0 = arith.constant 0 : index
    %c0_0 = arith.constant 0 : index
    %0 = vector.load %arg1[%c0, %c0_0] : memref<16x64xf32, #tpu.memory_space<vmem>>, vector<16x64xf32>
    %1 = tpu.iota {dimensions = array<i32: 0>} : vector<8x8xi32>
    %2 = tpu.iota {dimensions = array<i32: 1>} : vector<8x8xi32>
    %3 = arith.cmpi sle, %2, %1 : vector<8x8xi32>
    %cst = arith.constant 0.000000e+00 : f32
    %cst_1 = arith.constant -1.000000e+30 : f32
    %4 = vector.broadcast %cst : f32 to vector<8x8xf32>
    %5 = vector.broadcast %cst_1 : f32 to vector<8x8xf32>
    %6 = arith.select %3, %4, %5 : vector<8x8xi1>, vector<8x8xf32>
    %c0_2 = arith.constant 0 : index
    %c0_3 = arith.constant 0 : index
    %7 = vector.load %arg2[%c0_2, %c0_3] : memref<4x64xf32, #tpu.memory_space<vmem>>, vector<1x64xf32>
    %8 = vector.shape_cast %7 : vector<1x64xf32> to vector<64xf32>
    %c0_4 = arith.constant 0 : index
    %c0_5 = arith.constant 0 : index
    %9 = vector.load %arg3[%c0_4, %c0_5] : memref<4x64xf32, #tpu.memory_space<vmem>>, vector<1x64xf32>
    %10 = vector.shape_cast %9 : vector<1x64xf32> to vector<64xf32>
    %cst_6 = arith.constant dense<0.000000e+00> : vector<16xf32>
    %11 = vector.multi_reduction <add>, %0, %cst_6 [1] : vector<16x64xf32> to vector<16xf32>
    %12 = vector.shape_cast %11 : vector<16xf32> to vector<16x1xf32>
    %cst_7 = arith.constant 6.400000e+01 : f32
    %13 = vector.broadcast %cst_7 : f32 to vector<16x1xf32>
    %14 = arith.divf %12, %13 : vector<16x1xf32>
    %15 = vector.broadcast %14 : vector<16x1xf32> to vector<16x64xf32>
    %16 = arith.subf %0, %15 : vector<16x64xf32>
    %17 = arith.mulf %16, %16 : vector<16x64xf32>
    %cst_8 = arith.constant dense<0.000000e+00> : vector<16xf32>
    %18 = vector.multi_reduction <add>, %17, %cst_8 [1] : vector<16x64xf32> to vector<16xf32>
    %19 = vector.shape_cast %18 : vector<16xf32> to vector<16x1xf32>
    %cst_9 = arith.constant 6.400000e+01 : f32
    %20 = vector.broadcast %cst_9 : f32 to vector<16x1xf32>
    %21 = arith.divf %19, %20 : vector<16x1xf32>
    %22 = vector.broadcast %14 : vector<16x1xf32> to vector<16x64xf32>
    %23 = arith.subf %0, %22 : vector<16x64xf32>
    %cst_10 = arith.constant 9.99999974E-6 : f32
    %24 = vector.broadcast %cst_10 : f32 to vector<16x1xf32>
    %25 = arith.addf %21, %24 : vector<16x1xf32>
    %26 = math.rsqrt %25 : vector<16x1xf32>
    %27 = vector.broadcast %26 : vector<16x1xf32> to vector<16x64xf32>
    %28 = arith.mulf %23, %27 : vector<16x64xf32>
    %29 = vector.shape_cast %8 : vector<64xf32> to vector<1x64xf32>
    %30 = vector.broadcast %29 : vector<1x64xf32> to vector<16x64xf32>
    %31 = arith.mulf %28, %30 : vector<16x64xf32>
    %32 = vector.shape_cast %10 : vector<64xf32> to vector<1x64xf32>
    %33 = vector.broadcast %32 : vector<1x64xf32> to vector<16x64xf32>
    %34 = arith.addf %31, %33 : vector<16x64xf32>
    %35 = arith.truncf %34 : vector<16x64xf32> to vector<16x64xbf16>
    %c0_11 = arith.constant 0 : index
    %c0_12 = arith.constant 0 : index
    %c0_13 = arith.constant 0 : index
    %36 = vector.load %arg4[%c0_11, %c0_12, %c0_13] : memref<4x64x64xbf16, #tpu.memory_space<vmem>>, vector<1x64x64xbf16>
    %37 = vector.shape_cast %36 : vector<1x64x64xbf16> to vector<64x64xbf16>
    %cst_14 = arith.constant dense<0.000000e+00> : vector<16x64xf32>
    %38 = tpu.matmul %35, %37, %cst_14 {dimension_numbers = #tpu.dot_dimension_numbers<[1], [0], [0], [1], [0, 0, 1, 1], [], []>} : vector<16x64xbf16>, vector<64x64xbf16>, vector<16x64xf32> -> vector<16x64xf32>
    %c0_15 = arith.constant 0 : index
    %c0_16 = arith.constant 0 : index
    %c0_17 = arith.constant 0 : index
    %39 = vector.load %arg5[%c0_15, %c0_16, %c0_17] : memref<4x64x64xbf16, #tpu.memory_space<vmem>>, vector<1x64x64xbf16>
    %40 = vector.shape_cast %39 : vector<1x64x64xbf16> to vector<64x64xbf16>
    %cst_18 = arith.constant dense<0.000000e+00> : vector<16x64xf32>
    %41 = tpu.matmul %35, %40, %cst_18 {dimension_numbers = #tpu.dot_dimension_numbers<[1], [0], [0], [1], [0, 0, 1, 1], [], []>} : vector<16x64xbf16>, vector<64x64xbf16>, vector<16x64xf32> -> vector<16x64xf32>
    %c0_19 = arith.constant 0 : index
    %c0_20 = arith.constant 0 : index
    %c0_21 = arith.constant 0 : index
    %42 = vector.load %arg6[%c0_19, %c0_20, %c0_21] : memref<4x64x64xbf16, #tpu.memory_space<vmem>>, vector<1x64x64xbf16>
    %43 = vector.shape_cast %42 : vector<1x64x64xbf16> to vector<64x64xbf16>
    %cst_22 = arith.constant dense<0.000000e+00> : vector<16x64xf32>
    %44 = tpu.matmul %35, %43, %cst_22 {dimension_numbers = #tpu.dot_dimension_numbers<[1], [0], [0], [1], [0, 0, 1, 1], [], []>} : vector<16x64xbf16>, vector<64x64xbf16>, vector<16x64xf32> -> vector<16x64xf32>
    %45 = vector.shape_cast %38 : vector<16x64xf32> to vector<2x8x64xf32>
    %46 = vector.shape_cast %41 : vector<16x64xf32> to vector<2x8x64xf32>
    %47 = vector.shape_cast %44 : vector<16x64xf32> to vector<2x8x64xf32>
    %48 = vector.extract_strided_slice %45 {offsets = [0, 0, 0], sizes = [2, 8, 16], strides = [1, 1, 1]} : vector<2x8x64xf32> to vector<2x8x16xf32>
    %49 = arith.truncf %48 : vector<2x8x16xf32> to vector<2x8x16xbf16>
    %50 = vector.extract_strided_slice %46 {offsets = [0, 0, 0], sizes = [2, 8, 16], strides = [1, 1, 1]} : vector<2x8x64xf32> to vector<2x8x16xf32>
    %51 = arith.truncf %50 : vector<2x8x16xf32> to vector<2x8x16xbf16>
    %52 = vector.extract_strided_slice %47 {offsets = [0, 0, 0], sizes = [2, 8, 16], strides = [1, 1, 1]} : vector<2x8x64xf32> to vector<2x8x16xf32>
    %53 = arith.truncf %52 : vector<2x8x16xf32> to vector<2x8x16xbf16>
    "tpu.trace_start"() <{level = 10 : i32, message = "btd,bsd->bts"}> : () -> ()
    %cst_23 = arith.constant dense<0.000000e+00> : vector<2x8x8xf32>
    %54 = tpu.matmul %49, %51, %cst_23 {dimension_numbers = #tpu.dot_dimension_numbers<[2], [2], [1], [1], [0, 0, 0, 1, 1, 1], [0], [0]>} : vector<2x8x16xbf16>, vector<2x8x16xbf16>, vector<2x8x8xf32> -> vector<2x8x8xf32>
    "tpu.trace_stop"() : () -> ()
    %cst_24 = arith.constant 5.000000e-01 : f32
    %55 = vector.broadcast %cst_24 : f32 to vector<2x8x8xf32>
    %56 = arith.mulf %54, %55 : vector<2x8x8xf32>
    %57 = vector.shape_cast %6 : vector<8x8xf32> to vector<1x8x8xf32>
    %58 = vector.broadcast %57 : vector<1x8x8xf32> to vector<2x8x8xf32>
    %59 = arith.addf %56, %58 : vector<2x8x8xf32>
    %cst_25 = arith.constant dense<0xFF800000> : vector<2x8xf32>
    %60 = vector.multi_reduction <maximumf>, %59, %cst_25 [2] : vector<2x8x8xf32> to vector<2x8xf32>
    %61 = vector.shape_cast %60 : vector<2x8xf32> to vector<2x8x1xf32>
    %62 = vector.broadcast %61 : vector<2x8x1xf32> to vector<2x8x8xf32>
    %63 = arith.subf %59, %62 : vector<2x8x8xf32>
    %64 = math.exp %63 : vector<2x8x8xf32>
    %cst_26 = arith.constant dense<0.000000e+00> : vector<2x8xf32>
    %65 = vector.multi_reduction <add>, %64, %cst_26 [2] : vector<2x8x8xf32> to vector<2x8xf32>
    %66 = vector.shape_cast %65 : vector<2x8xf32> to vector<2x8x1xf32>
    %67 = tpu.reciprocal %66 {approx = true} : vector<2x8x1xf32> -> vector<2x8x1xf32>
    %68 = vector.broadcast %67 : vector<2x8x1xf32> to vector<2x8x8xf32>
    %69 = arith.mulf %64, %68 : vector<2x8x8xf32>
    %70 = arith.truncf %69 : vector<2x8x8xf32> to vector<2x8x8xbf16>
    "tpu.trace_start"() <{level = 10 : i32, message = "bts,bsd->btd"}> : () -> ()
    %cst_27 = arith.constant dense<0.000000e+00> : vector<2x8x16xf32>
    %71 = tpu.matmul %70, %53, %cst_27 {dimension_numbers = #tpu.dot_dimension_numbers<[2], [1], [1], [2], [0, 0, 0, 1, 1, 2], [0], [0]>} : vector<2x8x8xbf16>, vector<2x8x16xbf16>, vector<2x8x16xf32> -> vector<2x8x16xf32>
    "tpu.trace_stop"() : () -> ()
    %72 = vector.extract_strided_slice %45 {offsets = [0, 0, 16], sizes = [2, 8, 16], strides = [1, 1, 1]} : vector<2x8x64xf32> to vector<2x8x16xf32>
    %73 = arith.truncf %72 : vector<2x8x16xf32> to vector<2x8x16xbf16>
    %74 = vector.extract_strided_slice %46 {offsets = [0, 0, 16], sizes = [2, 8, 16], strides = [1, 1, 1]} : vector<2x8x64xf32> to vector<2x8x16xf32>
    %75 = arith.truncf %74 : vector<2x8x16xf32> to vector<2x8x16xbf16>
    %76 = vector.extract_strided_slice %47 {offsets = [0, 0, 16], sizes = [2, 8, 16], strides = [1, 1, 1]} : vector<2x8x64xf32> to vector<2x8x16xf32>
    %77 = arith.truncf %76 : vector<2x8x16xf32> to vector<2x8x16xbf16>
    "tpu.trace_start"() <{level = 10 : i32, message = "btd,bsd->bts"}> : () -> ()
    %cst_28 = arith.constant dense<0.000000e+00> : vector<2x8x8xf32>
    %78 = tpu.matmul %73, %75, %cst_28 {dimension_numbers = #tpu.dot_dimension_numbers<[2], [2], [1], [1], [0, 0, 0, 1, 1, 1], [0], [0]>} : vector<2x8x16xbf16>, vector<2x8x16xbf16>, vector<2x8x8xf32> -> vector<2x8x8xf32>
    "tpu.trace_stop"() : () -> ()
    %cst_29 = arith.constant 5.000000e-01 : f32
    %79 = vector.broadcast %cst_29 : f32 to vector<2x8x8xf32>
    %80 = arith.mulf %78, %79 : vector<2x8x8xf32>
    %81 = vector.shape_cast %6 : vector<8x8xf32> to vector<1x8x8xf32>
    %82 = vector.broadcast %81 : vector<1x8x8xf32> to vector<2x8x8xf32>
    %83 = arith.addf %80, %82 : vector<2x8x8xf32>
    %cst_30 = arith.constant dense<0xFF800000> : vector<2x8xf32>
    %84 = vector.multi_reduction <maximumf>, %83, %cst_30 [2] : vector<2x8x8xf32> to vector<2x8xf32>
    %85 = vector.shape_cast %84 : vector<2x8xf32> to vector<2x8x1xf32>
    %86 = vector.broadcast %85 : vector<2x8x1xf32> to vector<2x8x8xf32>
    %87 = arith.subf %83, %86 : vector<2x8x8xf32>
    %88 = math.exp %87 : vector<2x8x8xf32>
    %cst_31 = arith.constant dense<0.000000e+00> : vector<2x8xf32>
    %89 = vector.multi_reduction <add>, %88, %cst_31 [2] : vector<2x8x8xf32> to vector<2x8xf32>
    %90 = vector.shape_cast %89 : vector<2x8xf32> to vector<2x8x1xf32>
    %91 = tpu.reciprocal %90 {approx = true} : vector<2x8x1xf32> -> vector<2x8x1xf32>
    %92 = vector.broadcast %91 : vector<2x8x1xf32> to vector<2x8x8xf32>
    %93 = arith.mulf %88, %92 : vector<2x8x8xf32>
    %94 = arith.truncf %93 : vector<2x8x8xf32> to vector<2x8x8xbf16>
    "tpu.trace_start"() <{level = 10 : i32, message = "bts,bsd->btd"}> : () -> ()
    %cst_32 = arith.constant dense<0.000000e+00> : vector<2x8x16xf32>
    %95 = tpu.matmul %94, %77, %cst_32 {dimension_numbers = #tpu.dot_dimension_numbers<[2], [1], [1], [2], [0, 0, 0, 1, 1, 2], [0], [0]>} : vector<2x8x8xbf16>, vector<2x8x16xbf16>, vector<2x8x16xf32> -> vector<2x8x16xf32>
    "tpu.trace_stop"() : () -> ()
    %96 = vector.extract_strided_slice %45 {offsets = [0, 0, 32], sizes = [2, 8, 16], strides = [1, 1, 1]} : vector<2x8x64xf32> to vector<2x8x16xf32>
    %97 = arith.truncf %96 : vector<2x8x16xf32> to vector<2x8x16xbf16>
    %98 = vector.extract_strided_slice %46 {offsets = [0, 0, 32], sizes = [2, 8, 16], strides = [1, 1, 1]} : vector<2x8x64xf32> to vector<2x8x16xf32>
    %99 = arith.truncf %98 : vector<2x8x16xf32> to vector<2x8x16xbf16>
    %100 = vector.extract_strided_slice %47 {offsets = [0, 0, 32], sizes = [2, 8, 16], strides = [1, 1, 1]} : vector<2x8x64xf32> to vector<2x8x16xf32>
    %101 = arith.truncf %100 : vector<2x8x16xf32> to vector<2x8x16xbf16>
    "tpu.trace_start"() <{level = 10 : i32, message = "btd,bsd->bts"}> : () -> ()
    %cst_33 = arith.constant dense<0.000000e+00> : vector<2x8x8xf32>
    %102 = tpu.matmul %97, %99, %cst_33 {dimension_numbers = #tpu.dot_dimension_numbers<[2], [2], [1], [1], [0, 0, 0, 1, 1, 1], [0], [0]>} : vector<2x8x16xbf16>, vector<2x8x16xbf16>, vector<2x8x8xf32> -> vector<2x8x8xf32>
    "tpu.trace_stop"() : () -> ()
    %cst_34 = arith.constant 5.000000e-01 : f32
    %103 = vector.broadcast %cst_34 : f32 to vector<2x8x8xf32>
    %104 = arith.mulf %102, %103 : vector<2x8x8xf32>
    %105 = vector.shape_cast %6 : vector<8x8xf32> to vector<1x8x8xf32>
    %106 = vector.broadcast %105 : vector<1x8x8xf32> to vector<2x8x8xf32>
    %107 = arith.addf %104, %106 : vector<2x8x8xf32>
    %cst_35 = arith.constant dense<0xFF800000> : vector<2x8xf32>
    %108 = vector.multi_reduction <maximumf>, %107, %cst_35 [2] : vector<2x8x8xf32> to vector<2x8xf32>
    %109 = vector.shape_cast %108 : vector<2x8xf32> to vector<2x8x1xf32>
    %110 = vector.broadcast %109 : vector<2x8x1xf32> to vector<2x8x8xf32>
    %111 = arith.subf %107, %110 : vector<2x8x8xf32>
    %112 = math.exp %111 : vector<2x8x8xf32>
    %cst_36 = arith.constant dense<0.000000e+00> : vector<2x8xf32>
    %113 = vector.multi_reduction <add>, %112, %cst_36 [2] : vector<2x8x8xf32> to vector<2x8xf32>
    %114 = vector.shape_cast %113 : vector<2x8xf32> to vector<2x8x1xf32>
    %115 = tpu.reciprocal %114 {approx = true} : vector<2x8x1xf32> -> vector<2x8x1xf32>
    %116 = vector.broadcast %115 : vector<2x8x1xf32> to vector<2x8x8xf32>
    %117 = arith.mulf %112, %116 : vector<2x8x8xf32>
    %118 = arith.truncf %117 : vector<2x8x8xf32> to vector<2x8x8xbf16>
    "tpu.trace_start"() <{level = 10 : i32, message = "bts,bsd->btd"}> : () -> ()
    %cst_37 = arith.constant dense<0.000000e+00> : vector<2x8x16xf32>
    %119 = tpu.matmul %118, %101, %cst_37 {dimension_numbers = #tpu.dot_dimension_numbers<[2], [1], [1], [2], [0, 0, 0, 1, 1, 2], [0], [0]>} : vector<2x8x8xbf16>, vector<2x8x16xbf16>, vector<2x8x16xf32> -> vector<2x8x16xf32>
    "tpu.trace_stop"() : () -> ()
    %120 = vector.extract_strided_slice %45 {offsets = [0, 0, 48], sizes = [2, 8, 16], strides = [1, 1, 1]} : vector<2x8x64xf32> to vector<2x8x16xf32>
    %121 = arith.truncf %120 : vector<2x8x16xf32> to vector<2x8x16xbf16>
    %122 = vector.extract_strided_slice %46 {offsets = [0, 0, 48], sizes = [2, 8, 16], strides = [1, 1, 1]} : vector<2x8x64xf32> to vector<2x8x16xf32>
    %123 = arith.truncf %122 : vector<2x8x16xf32> to vector<2x8x16xbf16>
    %124 = vector.extract_strided_slice %47 {offsets = [0, 0, 48], sizes = [2, 8, 16], strides = [1, 1, 1]} : vector<2x8x64xf32> to vector<2x8x16xf32>
    %125 = arith.truncf %124 : vector<2x8x16xf32> to vector<2x8x16xbf16>
    "tpu.trace_start"() <{level = 10 : i32, message = "btd,bsd->bts"}> : () -> ()
    %cst_38 = arith.constant dense<0.000000e+00> : vector<2x8x8xf32>
    %126 = tpu.matmul %121, %123, %cst_38 {dimension_numbers = #tpu.dot_dimension_numbers<[2], [2], [1], [1], [0, 0, 0, 1, 1, 1], [0], [0]>} : vector<2x8x16xbf16>, vector<2x8x16xbf16>, vector<2x8x8xf32> -> vector<2x8x8xf32>
    "tpu.trace_stop"() : () -> ()
    %cst_39 = arith.constant 5.000000e-01 : f32
    %127 = vector.broadcast %cst_39 : f32 to vector<2x8x8xf32>
    %128 = arith.mulf %126, %127 : vector<2x8x8xf32>
    %129 = vector.shape_cast %6 : vector<8x8xf32> to vector<1x8x8xf32>
    %130 = vector.broadcast %129 : vector<1x8x8xf32> to vector<2x8x8xf32>
    %131 = arith.addf %128, %130 : vector<2x8x8xf32>
    %cst_40 = arith.constant dense<0xFF800000> : vector<2x8xf32>
    %132 = vector.multi_reduction <maximumf>, %131, %cst_40 [2] : vector<2x8x8xf32> to vector<2x8xf32>
    %133 = vector.shape_cast %132 : vector<2x8xf32> to vector<2x8x1xf32>
    %134 = vector.broadcast %133 : vector<2x8x1xf32> to vector<2x8x8xf32>
    %135 = arith.subf %131, %134 : vector<2x8x8xf32>
    %136 = math.exp %135 : vector<2x8x8xf32>
    %cst_41 = arith.constant dense<0.000000e+00> : vector<2x8xf32>
    %137 = vector.multi_reduction <add>, %136, %cst_41 [2] : vector<2x8x8xf32> to vector<2x8xf32>
    %138 = vector.shape_cast %137 : vector<2x8xf32> to vector<2x8x1xf32>
    %139 = tpu.reciprocal %138 {approx = true} : vector<2x8x1xf32> -> vector<2x8x1xf32>
    %140 = vector.broadcast %139 : vector<2x8x1xf32> to vector<2x8x8xf32>
    %141 = arith.mulf %136, %140 : vector<2x8x8xf32>
    %142 = arith.truncf %141 : vector<2x8x8xf32> to vector<2x8x8xbf16>
    "tpu.trace_start"() <{level = 10 : i32, message = "bts,bsd->btd"}> : () -> ()
    %cst_42 = arith.constant dense<0.000000e+00> : vector<2x8x16xf32>
    %143 = tpu.matmul %142, %125, %cst_42 {dimension_numbers = #tpu.dot_dimension_numbers<[2], [1], [1], [2], [0, 0, 0, 1, 1, 2], [0], [0]>} : vector<2x8x8xbf16>, vector<2x8x16xbf16>, vector<2x8x16xf32> -> vector<2x8x16xf32>
    "tpu.trace_stop"() : () -> ()
    %144 = tpu.concatenate %71, %95, %119, %143 in 2 : vector<2x8x16xf32>, vector<2x8x16xf32>, vector<2x8x16xf32>, vector<2x8x16xf32> -> vector<2x8x64xf32>
    %145 = vector.shape_cast %144 : vector<2x8x64xf32> to vector<16x64xf32>
    %146 = arith.truncf %145 : vector<16x64xf32> to vector<16x64xbf16>
    %c0_43 = arith.constant 0 : index
    %c0_44 = arith.constant 0 : index
    %c0_45 = arith.constant 0 : index
    %147 = vector.load %arg7[%c0_43, %c0_44, %c0_45] : memref<4x64x64xbf16, #tpu.memory_space<vmem>>, vector<1x64x64xbf16>
    %148 = vector.shape_cast %147 : vector<1x64x64xbf16> to vector<64x64xbf16>
    %cst_46 = arith.constant dense<0.000000e+00> : vector<16x64xf32>
    %149 = tpu.matmul %146, %148, %cst_46 {dimension_numbers = #tpu.dot_dimension_numbers<[1], [0], [0], [1], [0, 0, 1, 1], [], []>} : vector<16x64xbf16>, vector<64x64xbf16>, vector<16x64xf32> -> vector<16x64xf32>
    %c0_47 = arith.constant 0 : index
    %c0_48 = arith.constant 0 : index
    %150 = vector.load %arg8[%c0_47, %c0_48] : memref<4x64xf32, #tpu.memory_space<vmem>>, vector<1x64xf32>
    %151 = vector.shape_cast %150 : vector<1x64xf32> to vector<64xf32>
    %152 = vector.shape_cast %151 : vector<64xf32> to vector<1x64xf32>
    %153 = vector.broadcast %152 : vector<1x64xf32> to vector<16x64xf32>
    %154 = arith.addf %149, %153 : vector<16x64xf32>
    %155 = arith.addf %0, %154 : vector<16x64xf32>
    %c0_49 = arith.constant 0 : index
    %c0_50 = arith.constant 0 : index
    %156 = vector.load %arg9[%c0_49, %c0_50] : memref<4x64xf32, #tpu.memory_space<vmem>>, vector<1x64xf32>
    %157 = vector.shape_cast %156 : vector<1x64xf32> to vector<64xf32>
    %c0_51 = arith.constant 0 : index
    %c0_52 = arith.constant 0 : index
    %158 = vector.load %arg10[%c0_51, %c0_52] : memref<4x64xf32, #tpu.memory_space<vmem>>, vector<1x64xf32>
    %159 = vector.shape_cast %158 : vector<1x64xf32> to vector<64xf32>
    %cst_53 = arith.constant dense<0.000000e+00> : vector<16xf32>
    %160 = vector.multi_reduction <add>, %155, %cst_53 [1] : vector<16x64xf32> to vector<16xf32>
    %161 = vector.shape_cast %160 : vector<16xf32> to vector<16x1xf32>
    %cst_54 = arith.constant 6.400000e+01 : f32
    %162 = vector.broadcast %cst_54 : f32 to vector<16x1xf32>
    %163 = arith.divf %161, %162 : vector<16x1xf32>
    %164 = vector.broadcast %163 : vector<16x1xf32> to vector<16x64xf32>
    %165 = arith.subf %155, %164 : vector<16x64xf32>
    %166 = arith.mulf %165, %165 : vector<16x64xf32>
    %cst_55 = arith.constant dense<0.000000e+00> : vector<16xf32>
    %167 = vector.multi_reduction <add>, %166, %cst_55 [1] : vector<16x64xf32> to vector<16xf32>
    %168 = vector.shape_cast %167 : vector<16xf32> to vector<16x1xf32>
    %cst_56 = arith.constant 6.400000e+01 : f32
    %169 = vector.broadcast %cst_56 : f32 to vector<16x1xf32>
    %170 = arith.divf %168, %169 : vector<16x1xf32>
    %171 = vector.broadcast %163 : vector<16x1xf32> to vector<16x64xf32>
    %172 = arith.subf %155, %171 : vector<16x64xf32>
    %cst_57 = arith.constant 9.99999974E-6 : f32
    %173 = vector.broadcast %cst_57 : f32 to vector<16x1xf32>
    %174 = arith.addf %170, %173 : vector<16x1xf32>
    %175 = math.rsqrt %174 : vector<16x1xf32>
    %176 = vector.broadcast %175 : vector<16x1xf32> to vector<16x64xf32>
    %177 = arith.mulf %172, %176 : vector<16x64xf32>
    %178 = vector.shape_cast %157 : vector<64xf32> to vector<1x64xf32>
    %179 = vector.broadcast %178 : vector<1x64xf32> to vector<16x64xf32>
    %180 = arith.mulf %177, %179 : vector<16x64xf32>
    %181 = vector.shape_cast %159 : vector<64xf32> to vector<1x64xf32>
    %182 = vector.broadcast %181 : vector<1x64xf32> to vector<16x64xf32>
    %183 = arith.addf %180, %182 : vector<16x64xf32>
    %184 = arith.truncf %183 : vector<16x64xf32> to vector<16x64xbf16>
    %c0_58 = arith.constant 0 : index
    %c0_59 = arith.constant 0 : index
    %c0_60 = arith.constant 0 : index
    %185 = vector.load %arg11[%c0_58, %c0_59, %c0_60] : memref<4x64x256xbf16, #tpu.memory_space<vmem>>, vector<1x64x256xbf16>
    %186 = vector.shape_cast %185 : vector<1x64x256xbf16> to vector<64x256xbf16>
    %cst_61 = arith.constant dense<0.000000e+00> : vector<16x256xf32>
    %187 = tpu.matmul %184, %186, %cst_61 {dimension_numbers = #tpu.dot_dimension_numbers<[1], [0], [0], [1], [0, 0, 1, 1], [], []>} : vector<16x64xbf16>, vector<64x256xbf16>, vector<16x256xf32> -> vector<16x256xf32>
    %c0_62 = arith.constant 0 : index
    %c0_63 = arith.constant 0 : index
    %188 = vector.load %arg12[%c0_62, %c0_63] : memref<4x256xf32, #tpu.memory_space<vmem>>, vector<1x256xf32>
    %189 = vector.shape_cast %188 : vector<1x256xf32> to vector<256xf32>
    %190 = vector.shape_cast %189 : vector<256xf32> to vector<1x256xf32>
    %191 = vector.broadcast %190 : vector<1x256xf32> to vector<16x256xf32>
    %192 = arith.addf %187, %191 : vector<16x256xf32>
    %cst_64 = arith.constant 0.000000e+00 : f32
    %193 = vector.broadcast %cst_64 : f32 to vector<16x256xf32>
    %194 = arith.maximumf %192, %193 : vector<16x256xf32>
    %195 = arith.truncf %194 : vector<16x256xf32> to vector<16x256xbf16>
    %c0_65 = arith.constant 0 : index
    %c0_66 = arith.constant 0 : index
    %c0_67 = arith.constant 0 : index
    %196 = vector.load %arg13[%c0_65, %c0_66, %c0_67] : memref<4x256x64xbf16, #tpu.memory_space<vmem>>, vector<1x256x64xbf16>
    %197 = vector.shape_cast %196 : vector<1x256x64xbf16> to vector<256x64xbf16>
    %cst_68 = arith.constant dense<0.000000e+00> : vector<16x64xf32>
    %198 = tpu.matmul %195, %197, %cst_68 {dimension_numbers = #tpu.dot_dimension_numbers<[1], [0], [0], [1], [0, 0, 1, 1], [], []>} : vector<16x256xbf16>, vector<256x64xbf16>, vector<16x64xf32> -> vector<16x64xf32>
    %c0_69 = arith.constant 0 : index
    %c0_70 = arith.constant 0 : index
    %199 = vector.load %arg14[%c0_69, %c0_70] : memref<4x64xf32, #tpu.memory_space<vmem>>, vector<1x64xf32>
    %200 = vector.shape_cast %199 : vector<1x64xf32> to vector<64xf32>
    %201 = vector.shape_cast %200 : vector<64xf32> to vector<1x64xf32>
    %202 = vector.broadcast %201 : vector<1x64xf32> to vector<16x64xf32>
    %203 = arith.addf %198, %202 : vector<16x64xf32>
    %204 = arith.addf %155, %203 : vector<16x64xf32>
    %c1 = arith.constant 1 : index
    %c0_71 = arith.constant 0 : index
    %205 = vector.load %arg2[%c1, %c0_71] : memref<4x64xf32, #tpu.memory_space<vmem>>, vector<1x64xf32>
    %206 = vector.shape_cast %205 : vector<1x64xf32> to vector<64xf32>
    %c1_72 = arith.constant 1 : index
    %c0_73 = arith.constant 0 : index
    %207 = vector.load %arg3[%c1_72, %c0_73] : memref<4x64xf32, #tpu.memory_space<vmem>>, vector<1x64xf32>
    %208 = vector.shape_cast %207 : vector<1x64xf32> to vector<64xf32>
    %cst_74 = arith.constant dense<0.000000e+00> : vector<16xf32>
    %209 = vector.multi_reduction <add>, %204, %cst_74 [1] : vector<16x64xf32> to vector<16xf32>
    %210 = vector.shape_cast %209 : vector<16xf32> to vector<16x1xf32>
    %cst_75 = arith.constant 6.400000e+01 : f32
    %211 = vector.broadcast %cst_75 : f32 to vector<16x1xf32>
    %212 = arith.divf %210, %211 : vector<16x1xf32>
    %213 = vector.broadcast %212 : vector<16x1xf32> to vector<16x64xf32>
    %214 = arith.subf %204, %213 : vector<16x64xf32>
    %215 = arith.mulf %214, %214 : vector<16x64xf32>
    %cst_76 = arith.constant dense<0.000000e+00> : vector<16xf32>
    %216 = vector.multi_reduction <add>, %215, %cst_76 [1] : vector<16x64xf32> to vector<16xf32>
    %217 = vector.shape_cast %216 : vector<16xf32> to vector<16x1xf32>
    %cst_77 = arith.constant 6.400000e+01 : f32
    %218 = vector.broadcast %cst_77 : f32 to vector<16x1xf32>
    %219 = arith.divf %217, %218 : vector<16x1xf32>
    %220 = vector.broadcast %212 : vector<16x1xf32> to vector<16x64xf32>
    %221 = arith.subf %204, %220 : vector<16x64xf32>
    %cst_78 = arith.constant 9.99999974E-6 : f32
    %222 = vector.broadcast %cst_78 : f32 to vector<16x1xf32>
    %223 = arith.addf %219, %222 : vector<16x1xf32>
    %224 = math.rsqrt %223 : vector<16x1xf32>
    %225 = vector.broadcast %224 : vector<16x1xf32> to vector<16x64xf32>
    %226 = arith.mulf %221, %225 : vector<16x64xf32>
    %227 = vector.shape_cast %206 : vector<64xf32> to vector<1x64xf32>
    %228 = vector.broadcast %227 : vector<1x64xf32> to vector<16x64xf32>
    %229 = arith.mulf %226, %228 : vector<16x64xf32>
    %230 = vector.shape_cast %208 : vector<64xf32> to vector<1x64xf32>
    %231 = vector.broadcast %230 : vector<1x64xf32> to vector<16x64xf32>
    %232 = arith.addf %229, %231 : vector<16x64xf32>
    %233 = arith.truncf %232 : vector<16x64xf32> to vector<16x64xbf16>
    %c1_79 = arith.constant 1 : index
    %c0_80 = arith.constant 0 : index
    %c0_81 = arith.constant 0 : index
    %234 = vector.load %arg4[%c1_79, %c0_80, %c0_81] : memref<4x64x64xbf16, #tpu.memory_space<vmem>>, vector<1x64x64xbf16>
    %235 = vector.shape_cast %234 : vector<1x64x64xbf16> to vector<64x64xbf16>
    %cst_82 = arith.constant dense<0.000000e+00> : vector<16x64xf32>
    %236 = tpu.matmul %233, %235, %cst_82 {dimension_numbers = #tpu.dot_dimension_numbers<[1], [0], [0], [1], [0, 0, 1, 1], [], []>} : vector<16x64xbf16>, vector<64x64xbf16>, vector<16x64xf32> -> vector<16x64xf32>
    %c1_83 = arith.constant 1 : index
    %c0_84 = arith.constant 0 : index
    %c0_85 = arith.constant 0 : index
    %237 = vector.load %arg5[%c1_83, %c0_84, %c0_85] : memref<4x64x64xbf16, #tpu.memory_space<vmem>>, vector<1x64x64xbf16>
    %238 = vector.shape_cast %237 : vector<1x64x64xbf16> to vector<64x64xbf16>
    %cst_86 = arith.constant dense<0.000000e+00> : vector<16x64xf32>
    %239 = tpu.matmul %233, %238, %cst_86 {dimension_numbers = #tpu.dot_dimension_numbers<[1], [0], [0], [1], [0, 0, 1, 1], [], []>} : vector<16x64xbf16>, vector<64x64xbf16>, vector<16x64xf32> -> vector<16x64xf32>
    %c1_87 = arith.constant 1 : index
    %c0_88 = arith.constant 0 : index
    %c0_89 = arith.constant 0 : index
    %240 = vector.load %arg6[%c1_87, %c0_88, %c0_89] : memref<4x64x64xbf16, #tpu.memory_space<vmem>>, vector<1x64x64xbf16>
    %241 = vector.shape_cast %240 : vector<1x64x64xbf16> to vector<64x64xbf16>
    %cst_90 = arith.constant dense<0.000000e+00> : vector<16x64xf32>
    %242 = tpu.matmul %233, %241, %cst_90 {dimension_numbers = #tpu.dot_dimension_numbers<[1], [0], [0], [1], [0, 0, 1, 1], [], []>} : vector<16x64xbf16>, vector<64x64xbf16>, vector<16x64xf32> -> vector<16x64xf32>
    %243 = vector.shape_cast %236 : vector<16x64xf32> to vector<2x8x64xf32>
    %244 = vector.shape_cast %239 : vector<16x64xf32> to vector<2x8x64xf32>
    %245 = vector.shape_cast %242 : vector<16x64xf32> to vector<2x8x64xf32>
    %246 = vector.extract_strided_slice %243 {offsets = [0, 0, 0], sizes = [2, 8, 16], strides = [1, 1, 1]} : vector<2x8x64xf32> to vector<2x8x16xf32>
    %247 = arith.truncf %246 : vector<2x8x16xf32> to vector<2x8x16xbf16>
    %248 = vector.extract_strided_slice %244 {offsets = [0, 0, 0], sizes = [2, 8, 16], strides = [1, 1, 1]} : vector<2x8x64xf32> to vector<2x8x16xf32>
    %249 = arith.truncf %248 : vector<2x8x16xf32> to vector<2x8x16xbf16>
    %250 = vector.extract_strided_slice %245 {offsets = [0, 0, 0], sizes = [2, 8, 16], strides = [1, 1, 1]} : vector<2x8x64xf32> to vector<2x8x16xf32>
    %251 = arith.truncf %250 : vector<2x8x16xf32> to vector<2x8x16xbf16>
    "tpu.trace_start"() <{level = 10 : i32, message = "btd,bsd->bts"}> : () -> ()
    %cst_91 = arith.constant dense<0.000000e+00> : vector<2x8x8xf32>
    %252 = tpu.matmul %247, %249, %cst_91 {dimension_numbers = #tpu.dot_dimension_numbers<[2], [2], [1], [1], [0, 0, 0, 1, 1, 1], [0], [0]>} : vector<2x8x16xbf16>, vector<2x8x16xbf16>, vector<2x8x8xf32> -> vector<2x8x8xf32>
    "tpu.trace_stop"() : () -> ()
    %cst_92 = arith.constant 5.000000e-01 : f32
    %253 = vector.broadcast %cst_92 : f32 to vector<2x8x8xf32>
    %254 = arith.mulf %252, %253 : vector<2x8x8xf32>
    %255 = vector.shape_cast %6 : vector<8x8xf32> to vector<1x8x8xf32>
    %256 = vector.broadcast %255 : vector<1x8x8xf32> to vector<2x8x8xf32>
    %257 = arith.addf %254, %256 : vector<2x8x8xf32>
    %cst_93 = arith.constant dense<0xFF800000> : vector<2x8xf32>
    %258 = vector.multi_reduction <maximumf>, %257, %cst_93 [2] : vector<2x8x8xf32> to vector<2x8xf32>
    %259 = vector.shape_cast %258 : vector<2x8xf32> to vector<2x8x1xf32>
    %260 = vector.broadcast %259 : vector<2x8x1xf32> to vector<2x8x8xf32>
    %261 = arith.subf %257, %260 : vector<2x8x8xf32>
    %262 = math.exp %261 : vector<2x8x8xf32>
    %cst_94 = arith.constant dense<0.000000e+00> : vector<2x8xf32>
    %263 = vector.multi_reduction <add>, %262, %cst_94 [2] : vector<2x8x8xf32> to vector<2x8xf32>
    %264 = vector.shape_cast %263 : vector<2x8xf32> to vector<2x8x1xf32>
    %265 = tpu.reciprocal %264 {approx = true} : vector<2x8x1xf32> -> vector<2x8x1xf32>
    %266 = vector.broadcast %265 : vector<2x8x1xf32> to vector<2x8x8xf32>
    %267 = arith.mulf %262, %266 : vector<2x8x8xf32>
    %268 = arith.truncf %267 : vector<2x8x8xf32> to vector<2x8x8xbf16>
    "tpu.trace_start"() <{level = 10 : i32, message = "bts,bsd->btd"}> : () -> ()
    %cst_95 = arith.constant dense<0.000000e+00> : vector<2x8x16xf32>
    %269 = tpu.matmul %268, %251, %cst_95 {dimension_numbers = #tpu.dot_dimension_numbers<[2], [1], [1], [2], [0, 0, 0, 1, 1, 2], [0], [0]>} : vector<2x8x8xbf16>, vector<2x8x16xbf16>, vector<2x8x16xf32> -> vector<2x8x16xf32>
    "tpu.trace_stop"() : () -> ()
    %270 = vector.extract_strided_slice %243 {offsets = [0, 0, 16], sizes = [2, 8, 16], strides = [1, 1, 1]} : vector<2x8x64xf32> to vector<2x8x16xf32>
    %271 = arith.truncf %270 : vector<2x8x16xf32> to vector<2x8x16xbf16>
    %272 = vector.extract_strided_slice %244 {offsets = [0, 0, 16], sizes = [2, 8, 16], strides = [1, 1, 1]} : vector<2x8x64xf32> to vector<2x8x16xf32>
    %273 = arith.truncf %272 : vector<2x8x16xf32> to vector<2x8x16xbf16>
    %274 = vector.extract_strided_slice %245 {offsets = [0, 0, 16], sizes = [2, 8, 16], strides = [1, 1, 1]} : vector<2x8x64xf32> to vector<2x8x16xf32>
    %275 = arith.truncf %274 : vector<2x8x16xf32> to vector<2x8x16xbf16>
    "tpu.trace_start"() <{level = 10 : i32, message = "btd,bsd->bts"}> : () -> ()
    %cst_96 = arith.constant dense<0.000000e+00> : vector<2x8x8xf32>
    %276 = tpu.matmul %271, %273, %cst_96 {dimension_numbers = #tpu.dot_dimension_numbers<[2], [2], [1], [1], [0, 0, 0, 1, 1, 1], [0], [0]>} : vector<2x8x16xbf16>, vector<2x8x16xbf16>, vector<2x8x8xf32> -> vector<2x8x8xf32>
    "tpu.trace_stop"() : () -> ()
    %cst_97 = arith.constant 5.000000e-01 : f32
    %277 = vector.broadcast %cst_97 : f32 to vector<2x8x8xf32>
    %278 = arith.mulf %276, %277 : vector<2x8x8xf32>
    %279 = vector.shape_cast %6 : vector<8x8xf32> to vector<1x8x8xf32>
    %280 = vector.broadcast %279 : vector<1x8x8xf32> to vector<2x8x8xf32>
    %281 = arith.addf %278, %280 : vector<2x8x8xf32>
    %cst_98 = arith.constant dense<0xFF800000> : vector<2x8xf32>
    %282 = vector.multi_reduction <maximumf>, %281, %cst_98 [2] : vector<2x8x8xf32> to vector<2x8xf32>
    %283 = vector.shape_cast %282 : vector<2x8xf32> to vector<2x8x1xf32>
    %284 = vector.broadcast %283 : vector<2x8x1xf32> to vector<2x8x8xf32>
    %285 = arith.subf %281, %284 : vector<2x8x8xf32>
    %286 = math.exp %285 : vector<2x8x8xf32>
    %cst_99 = arith.constant dense<0.000000e+00> : vector<2x8xf32>
    %287 = vector.multi_reduction <add>, %286, %cst_99 [2] : vector<2x8x8xf32> to vector<2x8xf32>
    %288 = vector.shape_cast %287 : vector<2x8xf32> to vector<2x8x1xf32>
    %289 = tpu.reciprocal %288 {approx = true} : vector<2x8x1xf32> -> vector<2x8x1xf32>
    %290 = vector.broadcast %289 : vector<2x8x1xf32> to vector<2x8x8xf32>
    %291 = arith.mulf %286, %290 : vector<2x8x8xf32>
    %292 = arith.truncf %291 : vector<2x8x8xf32> to vector<2x8x8xbf16>
    "tpu.trace_start"() <{level = 10 : i32, message = "bts,bsd->btd"}> : () -> ()
    %cst_100 = arith.constant dense<0.000000e+00> : vector<2x8x16xf32>
    %293 = tpu.matmul %292, %275, %cst_100 {dimension_numbers = #tpu.dot_dimension_numbers<[2], [1], [1], [2], [0, 0, 0, 1, 1, 2], [0], [0]>} : vector<2x8x8xbf16>, vector<2x8x16xbf16>, vector<2x8x16xf32> -> vector<2x8x16xf32>
    "tpu.trace_stop"() : () -> ()
    %294 = vector.extract_strided_slice %243 {offsets = [0, 0, 32], sizes = [2, 8, 16], strides = [1, 1, 1]} : vector<2x8x64xf32> to vector<2x8x16xf32>
    %295 = arith.truncf %294 : vector<2x8x16xf32> to vector<2x8x16xbf16>
    %296 = vector.extract_strided_slice %244 {offsets = [0, 0, 32], sizes = [2, 8, 16], strides = [1, 1, 1]} : vector<2x8x64xf32> to vector<2x8x16xf32>
    %297 = arith.truncf %296 : vector<2x8x16xf32> to vector<2x8x16xbf16>
    %298 = vector.extract_strided_slice %245 {offsets = [0, 0, 32], sizes = [2, 8, 16], strides = [1, 1, 1]} : vector<2x8x64xf32> to vector<2x8x16xf32>
    %299 = arith.truncf %298 : vector<2x8x16xf32> to vector<2x8x16xbf16>
    "tpu.trace_start"() <{level = 10 : i32, message = "btd,bsd->bts"}> : () -> ()
    %cst_101 = arith.constant dense<0.000000e+00> : vector<2x8x8xf32>
    %300 = tpu.matmul %295, %297, %cst_101 {dimension_numbers = #tpu.dot_dimension_numbers<[2], [2], [1], [1], [0, 0, 0, 1, 1, 1], [0], [0]>} : vector<2x8x16xbf16>, vector<2x8x16xbf16>, vector<2x8x8xf32> -> vector<2x8x8xf32>
    "tpu.trace_stop"() : () -> ()
    %cst_102 = arith.constant 5.000000e-01 : f32
    %301 = vector.broadcast %cst_102 : f32 to vector<2x8x8xf32>
    %302 = arith.mulf %300, %301 : vector<2x8x8xf32>
    %303 = vector.shape_cast %6 : vector<8x8xf32> to vector<1x8x8xf32>
    %304 = vector.broadcast %303 : vector<1x8x8xf32> to vector<2x8x8xf32>
    %305 = arith.addf %302, %304 : vector<2x8x8xf32>
    %cst_103 = arith.constant dense<0xFF800000> : vector<2x8xf32>
    %306 = vector.multi_reduction <maximumf>, %305, %cst_103 [2] : vector<2x8x8xf32> to vector<2x8xf32>
    %307 = vector.shape_cast %306 : vector<2x8xf32> to vector<2x8x1xf32>
    %308 = vector.broadcast %307 : vector<2x8x1xf32> to vector<2x8x8xf32>
    %309 = arith.subf %305, %308 : vector<2x8x8xf32>
    %310 = math.exp %309 : vector<2x8x8xf32>
    %cst_104 = arith.constant dense<0.000000e+00> : vector<2x8xf32>
    %311 = vector.multi_reduction <add>, %310, %cst_104 [2] : vector<2x8x8xf32> to vector<2x8xf32>
    %312 = vector.shape_cast %311 : vector<2x8xf32> to vector<2x8x1xf32>
    %313 = tpu.reciprocal %312 {approx = true} : vector<2x8x1xf32> -> vector<2x8x1xf32>
    %314 = vector.broadcast %313 : vector<2x8x1xf32> to vector<2x8x8xf32>
    %315 = arith.mulf %310, %314 : vector<2x8x8xf32>
    %316 = arith.truncf %315 : vector<2x8x8xf32> to vector<2x8x8xbf16>
    "tpu.trace_start"() <{level = 10 : i32, message = "bts,bsd->btd"}> : () -> ()
    %cst_105 = arith.constant dense<0.000000e+00> : vector<2x8x16xf32>
    %317 = tpu.matmul %316, %299, %cst_105 {dimension_numbers = #tpu.dot_dimension_numbers<[2], [1], [1], [2], [0, 0, 0, 1, 1, 2], [0], [0]>} : vector<2x8x8xbf16>, vector<2x8x16xbf16>, vector<2x8x16xf32> -> vector<2x8x16xf32>
    "tpu.trace_stop"() : () -> ()
    %318 = vector.extract_strided_slice %243 {offsets = [0, 0, 48], sizes = [2, 8, 16], strides = [1, 1, 1]} : vector<2x8x64xf32> to vector<2x8x16xf32>
    %319 = arith.truncf %318 : vector<2x8x16xf32> to vector<2x8x16xbf16>
    %320 = vector.extract_strided_slice %244 {offsets = [0, 0, 48], sizes = [2, 8, 16], strides = [1, 1, 1]} : vector<2x8x64xf32> to vector<2x8x16xf32>
    %321 = arith.truncf %320 : vector<2x8x16xf32> to vector<2x8x16xbf16>
    %322 = vector.extract_strided_slice %245 {offsets = [0, 0, 48], sizes = [2, 8, 16], strides = [1, 1, 1]} : vector<2x8x64xf32> to vector<2x8x16xf32>
    %323 = arith.truncf %322 : vector<2x8x16xf32> to vector<2x8x16xbf16>
    "tpu.trace_start"() <{level = 10 : i32, message = "btd,bsd->bts"}> : () -> ()
    %cst_106 = arith.constant dense<0.000000e+00> : vector<2x8x8xf32>
    %324 = tpu.matmul %319, %321, %cst_106 {dimension_numbers = #tpu.dot_dimension_numbers<[2], [2], [1], [1], [0, 0, 0, 1, 1, 1], [0], [0]>} : vector<2x8x16xbf16>, vector<2x8x16xbf16>, vector<2x8x8xf32> -> vector<2x8x8xf32>
    "tpu.trace_stop"() : () -> ()
    %cst_107 = arith.constant 5.000000e-01 : f32
    %325 = vector.broadcast %cst_107 : f32 to vector<2x8x8xf32>
    %326 = arith.mulf %324, %325 : vector<2x8x8xf32>
    %327 = vector.shape_cast %6 : vector<8x8xf32> to vector<1x8x8xf32>
    %328 = vector.broadcast %327 : vector<1x8x8xf32> to vector<2x8x8xf32>
    %329 = arith.addf %326, %328 : vector<2x8x8xf32>
    %cst_108 = arith.constant dense<0xFF800000> : vector<2x8xf32>
    %330 = vector.multi_reduction <maximumf>, %329, %cst_108 [2] : vector<2x8x8xf32> to vector<2x8xf32>
    %331 = vector.shape_cast %330 : vector<2x8xf32> to vector<2x8x1xf32>
    %332 = vector.broadcast %331 : vector<2x8x1xf32> to vector<2x8x8xf32>
    %333 = arith.subf %329, %332 : vector<2x8x8xf32>
    %334 = math.exp %333 : vector<2x8x8xf32>
    %cst_109 = arith.constant dense<0.000000e+00> : vector<2x8xf32>
    %335 = vector.multi_reduction <add>, %334, %cst_109 [2] : vector<2x8x8xf32> to vector<2x8xf32>
    %336 = vector.shape_cast %335 : vector<2x8xf32> to vector<2x8x1xf32>
    %337 = tpu.reciprocal %336 {approx = true} : vector<2x8x1xf32> -> vector<2x8x1xf32>
    %338 = vector.broadcast %337 : vector<2x8x1xf32> to vector<2x8x8xf32>
    %339 = arith.mulf %334, %338 : vector<2x8x8xf32>
    %340 = arith.truncf %339 : vector<2x8x8xf32> to vector<2x8x8xbf16>
    "tpu.trace_start"() <{level = 10 : i32, message = "bts,bsd->btd"}> : () -> ()
    %cst_110 = arith.constant dense<0.000000e+00> : vector<2x8x16xf32>
    %341 = tpu.matmul %340, %323, %cst_110 {dimension_numbers = #tpu.dot_dimension_numbers<[2], [1], [1], [2], [0, 0, 0, 1, 1, 2], [0], [0]>} : vector<2x8x8xbf16>, vector<2x8x16xbf16>, vector<2x8x16xf32> -> vector<2x8x16xf32>
    "tpu.trace_stop"() : () -> ()
    %342 = tpu.concatenate %269, %293, %317, %341 in 2 : vector<2x8x16xf32>, vector<2x8x16xf32>, vector<2x8x16xf32>, vector<2x8x16xf32> -> vector<2x8x64xf32>
    %343 = vector.shape_cast %342 : vector<2x8x64xf32> to vector<16x64xf32>
    %344 = arith.truncf %343 : vector<16x64xf32> to vector<16x64xbf16>
    %c1_111 = arith.constant 1 : index
    %c0_112 = arith.constant 0 : index
    %c0_113 = arith.constant 0 : index
    %345 = vector.load %arg7[%c1_111, %c0_112, %c0_113] : memref<4x64x64xbf16, #tpu.memory_space<vmem>>, vector<1x64x64xbf16>
    %346 = vector.shape_cast %345 : vector<1x64x64xbf16> to vector<64x64xbf16>
    %cst_114 = arith.constant dense<0.000000e+00> : vector<16x64xf32>
    %347 = tpu.matmul %344, %346, %cst_114 {dimension_numbers = #tpu.dot_dimension_numbers<[1], [0], [0], [1], [0, 0, 1, 1], [], []>} : vector<16x64xbf16>, vector<64x64xbf16>, vector<16x64xf32> -> vector<16x64xf32>
    %c1_115 = arith.constant 1 : index
    %c0_116 = arith.constant 0 : index
    %348 = vector.load %arg8[%c1_115, %c0_116] : memref<4x64xf32, #tpu.memory_space<vmem>>, vector<1x64xf32>
    %349 = vector.shape_cast %348 : vector<1x64xf32> to vector<64xf32>
    %350 = vector.shape_cast %349 : vector<64xf32> to vector<1x64xf32>
    %351 = vector.broadcast %350 : vector<1x64xf32> to vector<16x64xf32>
    %352 = arith.addf %347, %351 : vector<16x64xf32>
    %353 = arith.addf %204, %352 : vector<16x64xf32>
    %c1_117 = arith.constant 1 : index
    %c0_118 = arith.constant 0 : index
    %354 = vector.load %arg9[%c1_117, %c0_118] : memref<4x64xf32, #tpu.memory_space<vmem>>, vector<1x64xf32>
    %355 = vector.shape_cast %354 : vector<1x64xf32> to vector<64xf32>
    %c1_119 = arith.constant 1 : index
    %c0_120 = arith.constant 0 : index
    %356 = vector.load %arg10[%c1_119, %c0_120] : memref<4x64xf32, #tpu.memory_space<vmem>>, vector<1x64xf32>
    %357 = vector.shape_cast %356 : vector<1x64xf32> to vector<64xf32>
    %cst_121 = arith.constant dense<0.000000e+00> : vector<16xf32>
    %358 = vector.multi_reduction <add>, %353, %cst_121 [1] : vector<16x64xf32> to vector<16xf32>
    %359 = vector.shape_cast %358 : vector<16xf32> to vector<16x1xf32>
    %cst_122 = arith.constant 6.400000e+01 : f32
    %360 = vector.broadcast %cst_122 : f32 to vector<16x1xf32>
    %361 = arith.divf %359, %360 : vector<16x1xf32>
    %362 = vector.broadcast %361 : vector<16x1xf32> to vector<16x64xf32>
    %363 = arith.subf %353, %362 : vector<16x64xf32>
    %364 = arith.mulf %363, %363 : vector<16x64xf32>
    %cst_123 = arith.constant dense<0.000000e+00> : vector<16xf32>
    %365 = vector.multi_reduction <add>, %364, %cst_123 [1] : vector<16x64xf32> to vector<16xf32>
    %366 = vector.shape_cast %365 : vector<16xf32> to vector<16x1xf32>
    %cst_124 = arith.constant 6.400000e+01 : f32
    %367 = vector.broadcast %cst_124 : f32 to vector<16x1xf32>
    %368 = arith.divf %366, %367 : vector<16x1xf32>
    %369 = vector.broadcast %361 : vector<16x1xf32> to vector<16x64xf32>
    %370 = arith.subf %353, %369 : vector<16x64xf32>
    %cst_125 = arith.constant 9.99999974E-6 : f32
    %371 = vector.broadcast %cst_125 : f32 to vector<16x1xf32>
    %372 = arith.addf %368, %371 : vector<16x1xf32>
    %373 = math.rsqrt %372 : vector<16x1xf32>
    %374 = vector.broadcast %373 : vector<16x1xf32> to vector<16x64xf32>
    %375 = arith.mulf %370, %374 : vector<16x64xf32>
    %376 = vector.shape_cast %355 : vector<64xf32> to vector<1x64xf32>
    %377 = vector.broadcast %376 : vector<1x64xf32> to vector<16x64xf32>
    %378 = arith.mulf %375, %377 : vector<16x64xf32>
    %379 = vector.shape_cast %357 : vector<64xf32> to vector<1x64xf32>
    %380 = vector.broadcast %379 : vector<1x64xf32> to vector<16x64xf32>
    %381 = arith.addf %378, %380 : vector<16x64xf32>
    %382 = arith.truncf %381 : vector<16x64xf32> to vector<16x64xbf16>
    %c1_126 = arith.constant 1 : index
    %c0_127 = arith.constant 0 : index
    %c0_128 = arith.constant 0 : index
    %383 = vector.load %arg11[%c1_126, %c0_127, %c0_128] : memref<4x64x256xbf16, #tpu.memory_space<vmem>>, vector<1x64x256xbf16>
    %384 = vector.shape_cast %383 : vector<1x64x256xbf16> to vector<64x256xbf16>
    %cst_129 = arith.constant dense<0.000000e+00> : vector<16x256xf32>
    %385 = tpu.matmul %382, %384, %cst_129 {dimension_numbers = #tpu.dot_dimension_numbers<[1], [0], [0], [1], [0, 0, 1, 1], [], []>} : vector<16x64xbf16>, vector<64x256xbf16>, vector<16x256xf32> -> vector<16x256xf32>
    %c1_130 = arith.constant 1 : index
    %c0_131 = arith.constant 0 : index
    %386 = vector.load %arg12[%c1_130, %c0_131] : memref<4x256xf32, #tpu.memory_space<vmem>>, vector<1x256xf32>
    %387 = vector.shape_cast %386 : vector<1x256xf32> to vector<256xf32>
    %388 = vector.shape_cast %387 : vector<256xf32> to vector<1x256xf32>
    %389 = vector.broadcast %388 : vector<1x256xf32> to vector<16x256xf32>
    %390 = arith.addf %385, %389 : vector<16x256xf32>
    %cst_132 = arith.constant 0.000000e+00 : f32
    %391 = vector.broadcast %cst_132 : f32 to vector<16x256xf32>
    %392 = arith.maximumf %390, %391 : vector<16x256xf32>
    %393 = arith.truncf %392 : vector<16x256xf32> to vector<16x256xbf16>
    %c1_133 = arith.constant 1 : index
    %c0_134 = arith.constant 0 : index
    %c0_135 = arith.constant 0 : index
    %394 = vector.load %arg13[%c1_133, %c0_134, %c0_135] : memref<4x256x64xbf16, #tpu.memory_space<vmem>>, vector<1x256x64xbf16>
    %395 = vector.shape_cast %394 : vector<1x256x64xbf16> to vector<256x64xbf16>
    %cst_136 = arith.constant dense<0.000000e+00> : vector<16x64xf32>
    %396 = tpu.matmul %393, %395, %cst_136 {dimension_numbers = #tpu.dot_dimension_numbers<[1], [0], [0], [1], [0, 0, 1, 1], [], []>} : vector<16x256xbf16>, vector<256x64xbf16>, vector<16x64xf32> -> vector<16x64xf32>
    %c1_137 = arith.constant 1 : index
    %c0_138 = arith.constant 0 : index
    %397 = vector.load %arg14[%c1_137, %c0_138] : memref<4x64xf32, #tpu.memory_space<vmem>>, vector<1x64xf32>
    %398 = vector.shape_cast %397 : vector<1x64xf32> to vector<64xf32>
    %399 = vector.shape_cast %398 : vector<64xf32> to vector<1x64xf32>
    %400 = vector.broadcast %399 : vector<1x64xf32> to vector<16x64xf32>
    %401 = arith.addf %396, %400 : vector<16x64xf32>
    %402 = arith.addf %353, %401 : vector<16x64xf32>
    %c2 = arith.constant 2 : index
    %c0_139 = arith.constant 0 : index
    %403 = vector.load %arg2[%c2, %c0_139] : memref<4x64xf32, #tpu.memory_space<vmem>>, vector<1x64xf32>
    %404 = vector.shape_cast %403 : vector<1x64xf32> to vector<64xf32>
    %c2_140 = arith.constant 2 : index
    %c0_141 = arith.constant 0 : index
    %405 = vector.load %arg3[%c2_140, %c0_141] : memref<4x64xf32, #tpu.memory_space<vmem>>, vector<1x64xf32>
    %406 = vector.shape_cast %405 : vector<1x64xf32> to vector<64xf32>
    %cst_142 = arith.constant dense<0.000000e+00> : vector<16xf32>
    %407 = vector.multi_reduction <add>, %402, %cst_142 [1] : vector<16x64xf32> to vector<16xf32>
    %408 = vector.shape_cast %407 : vector<16xf32> to vector<16x1xf32>
    %cst_143 = arith.constant 6.400000e+01 : f32
    %409 = vector.broadcast %cst_143 : f32 to vector<16x1xf32>
    %410 = arith.divf %408, %409 : vector<16x1xf32>
    %411 = vector.broadcast %410 : vector<16x1xf32> to vector<16x64xf32>
    %412 = arith.subf %402, %411 : vector<16x64xf32>
    %413 = arith.mulf %412, %412 : vector<16x64xf32>
    %cst_144 = arith.constant dense<0.000000e+00> : vector<16xf32>
    %414 = vector.multi_reduction <add>, %413, %cst_144 [1] : vector<16x64xf32> to vector<16xf32>
    %415 = vector.shape_cast %414 : vector<16xf32> to vector<16x1xf32>
    %cst_145 = arith.constant 6.400000e+01 : f32
    %416 = vector.broadcast %cst_145 : f32 to vector<16x1xf32>
    %417 = arith.divf %415, %416 : vector<16x1xf32>
    %418 = vector.broadcast %410 : vector<16x1xf32> to vector<16x64xf32>
    %419 = arith.subf %402, %418 : vector<16x64xf32>
    %cst_146 = arith.constant 9.99999974E-6 : f32
    %420 = vector.broadcast %cst_146 : f32 to vector<16x1xf32>
    %421 = arith.addf %417, %420 : vector<16x1xf32>
    %422 = math.rsqrt %421 : vector<16x1xf32>
    %423 = vector.broadcast %422 : vector<16x1xf32> to vector<16x64xf32>
    %424 = arith.mulf %419, %423 : vector<16x64xf32>
    %425 = vector.shape_cast %404 : vector<64xf32> to vector<1x64xf32>
    %426 = vector.broadcast %425 : vector<1x64xf32> to vector<16x64xf32>
    %427 = arith.mulf %424, %426 : vector<16x64xf32>
    %428 = vector.shape_cast %406 : vector<64xf32> to vector<1x64xf32>
    %429 = vector.broadcast %428 : vector<1x64xf32> to vector<16x64xf32>
    %430 = arith.addf %427, %429 : vector<16x64xf32>
    %431 = arith.truncf %430 : vector<16x64xf32> to vector<16x64xbf16>
    %c2_147 = arith.constant 2 : index
    %c0_148 = arith.constant 0 : index
    %c0_149 = arith.constant 0 : index
    %432 = vector.load %arg4[%c2_147, %c0_148, %c0_149] : memref<4x64x64xbf16, #tpu.memory_space<vmem>>, vector<1x64x64xbf16>
    %433 = vector.shape_cast %432 : vector<1x64x64xbf16> to vector<64x64xbf16>
    %cst_150 = arith.constant dense<0.000000e+00> : vector<16x64xf32>
    %434 = tpu.matmul %431, %433, %cst_150 {dimension_numbers = #tpu.dot_dimension_numbers<[1], [0], [0], [1], [0, 0, 1, 1], [], []>} : vector<16x64xbf16>, vector<64x64xbf16>, vector<16x64xf32> -> vector<16x64xf32>
    %c2_151 = arith.constant 2 : index
    %c0_152 = arith.constant 0 : index
    %c0_153 = arith.constant 0 : index
    %435 = vector.load %arg5[%c2_151, %c0_152, %c0_153] : memref<4x64x64xbf16, #tpu.memory_space<vmem>>, vector<1x64x64xbf16>
    %436 = vector.shape_cast %435 : vector<1x64x64xbf16> to vector<64x64xbf16>
    %cst_154 = arith.constant dense<0.000000e+00> : vector<16x64xf32>
    %437 = tpu.matmul %431, %436, %cst_154 {dimension_numbers = #tpu.dot_dimension_numbers<[1], [0], [0], [1], [0, 0, 1, 1], [], []>} : vector<16x64xbf16>, vector<64x64xbf16>, vector<16x64xf32> -> vector<16x64xf32>
    %c2_155 = arith.constant 2 : index
    %c0_156 = arith.constant 0 : index
    %c0_157 = arith.constant 0 : index
    %438 = vector.load %arg6[%c2_155, %c0_156, %c0_157] : memref<4x64x64xbf16, #tpu.memory_space<vmem>>, vector<1x64x64xbf16>
    %439 = vector.shape_cast %438 : vector<1x64x64xbf16> to vector<64x64xbf16>
    %cst_158 = arith.constant dense<0.000000e+00> : vector<16x64xf32>
    %440 = tpu.matmul %431, %439, %cst_158 {dimension_numbers = #tpu.dot_dimension_numbers<[1], [0], [0], [1], [0, 0, 1, 1], [], []>} : vector<16x64xbf16>, vector<64x64xbf16>, vector<16x64xf32> -> vector<16x64xf32>
    %441 = vector.shape_cast %434 : vector<16x64xf32> to vector<2x8x64xf32>
    %442 = vector.shape_cast %437 : vector<16x64xf32> to vector<2x8x64xf32>
    %443 = vector.shape_cast %440 : vector<16x64xf32> to vector<2x8x64xf32>
    %444 = vector.extract_strided_slice %441 {offsets = [0, 0, 0], sizes = [2, 8, 16], strides = [1, 1, 1]} : vector<2x8x64xf32> to vector<2x8x16xf32>
    %445 = arith.truncf %444 : vector<2x8x16xf32> to vector<2x8x16xbf16>
    %446 = vector.extract_strided_slice %442 {offsets = [0, 0, 0], sizes = [2, 8, 16], strides = [1, 1, 1]} : vector<2x8x64xf32> to vector<2x8x16xf32>
    %447 = arith.truncf %446 : vector<2x8x16xf32> to vector<2x8x16xbf16>
    %448 = vector.extract_strided_slice %443 {offsets = [0, 0, 0], sizes = [2, 8, 16], strides = [1, 1, 1]} : vector<2x8x64xf32> to vector<2x8x16xf32>
    %449 = arith.truncf %448 : vector<2x8x16xf32> to vector<2x8x16xbf16>
    "tpu.trace_start"() <{level = 10 : i32, message = "btd,bsd->bts"}> : () -> ()
    %cst_159 = arith.constant dense<0.000000e+00> : vector<2x8x8xf32>
    %450 = tpu.matmul %445, %447, %cst_159 {dimension_numbers = #tpu.dot_dimension_numbers<[2], [2], [1], [1], [0, 0, 0, 1, 1, 1], [0], [0]>} : vector<2x8x16xbf16>, vector<2x8x16xbf16>, vector<2x8x8xf32> -> vector<2x8x8xf32>
    "tpu.trace_stop"() : () -> ()
    %cst_160 = arith.constant 5.000000e-01 : f32
    %451 = vector.broadcast %cst_160 : f32 to vector<2x8x8xf32>
    %452 = arith.mulf %450, %451 : vector<2x8x8xf32>
    %453 = vector.shape_cast %6 : vector<8x8xf32> to vector<1x8x8xf32>
    %454 = vector.broadcast %453 : vector<1x8x8xf32> to vector<2x8x8xf32>
    %455 = arith.addf %452, %454 : vector<2x8x8xf32>
    %cst_161 = arith.constant dense<0xFF800000> : vector<2x8xf32>
    %456 = vector.multi_reduction <maximumf>, %455, %cst_161 [2] : vector<2x8x8xf32> to vector<2x8xf32>
    %457 = vector.shape_cast %456 : vector<2x8xf32> to vector<2x8x1xf32>
    %458 = vector.broadcast %457 : vector<2x8x1xf32> to vector<2x8x8xf32>
    %459 = arith.subf %455, %458 : vector<2x8x8xf32>
    %460 = math.exp %459 : vector<2x8x8xf32>
    %cst_162 = arith.constant dense<0.000000e+00> : vector<2x8xf32>
    %461 = vector.multi_reduction <add>, %460, %cst_162 [2] : vector<2x8x8xf32> to vector<2x8xf32>
    %462 = vector.shape_cast %461 : vector<2x8xf32> to vector<2x8x1xf32>
    %463 = tpu.reciprocal %462 {approx = true} : vector<2x8x1xf32> -> vector<2x8x1xf32>
    %464 = vector.broadcast %463 : vector<2x8x1xf32> to vector<2x8x8xf32>
    %465 = arith.mulf %460, %464 : vector<2x8x8xf32>
    %466 = arith.truncf %465 : vector<2x8x8xf32> to vector<2x8x8xbf16>
    "tpu.trace_start"() <{level = 10 : i32, message = "bts,bsd->btd"}> : () -> ()
    %cst_163 = arith.constant dense<0.000000e+00> : vector<2x8x16xf32>
    %467 = tpu.matmul %466, %449, %cst_163 {dimension_numbers = #tpu.dot_dimension_numbers<[2], [1], [1], [2], [0, 0, 0, 1, 1, 2], [0], [0]>} : vector<2x8x8xbf16>, vector<2x8x16xbf16>, vector<2x8x16xf32> -> vector<2x8x16xf32>
    "tpu.trace_stop"() : () -> ()
    %468 = vector.extract_strided_slice %441 {offsets = [0, 0, 16], sizes = [2, 8, 16], strides = [1, 1, 1]} : vector<2x8x64xf32> to vector<2x8x16xf32>
    %469 = arith.truncf %468 : vector<2x8x16xf32> to vector<2x8x16xbf16>
    %470 = vector.extract_strided_slice %442 {offsets = [0, 0, 16], sizes = [2, 8, 16], strides = [1, 1, 1]} : vector<2x8x64xf32> to vector<2x8x16xf32>
    %471 = arith.truncf %470 : vector<2x8x16xf32> to vector<2x8x16xbf16>
    %472 = vector.extract_strided_slice %443 {offsets = [0, 0, 16], sizes = [2, 8, 16], strides = [1, 1, 1]} : vector<2x8x64xf32> to vector<2x8x16xf32>
    %473 = arith.truncf %472 : vector<2x8x16xf32> to vector<2x8x16xbf16>
    "tpu.trace_start"() <{level = 10 : i32, message = "btd,bsd->bts"}> : () -> ()
    %cst_164 = arith.constant dense<0.000000e+00> : vector<2x8x8xf32>
    %474 = tpu.matmul %469, %471, %cst_164 {dimension_numbers = #tpu.dot_dimension_numbers<[2], [2], [1], [1], [0, 0, 0, 1, 1, 1], [0], [0]>} : vector<2x8x16xbf16>, vector<2x8x16xbf16>, vector<2x8x8xf32> -> vector<2x8x8xf32>
    "tpu.trace_stop"() : () -> ()
    %cst_165 = arith.constant 5.000000e-01 : f32
    %475 = vector.broadcast %cst_165 : f32 to vector<2x8x8xf32>
    %476 = arith.mulf %474, %475 : vector<2x8x8xf32>
    %477 = vector.shape_cast %6 : vector<8x8xf32> to vector<1x8x8xf32>
    %478 = vector.broadcast %477 : vector<1x8x8xf32> to vector<2x8x8xf32>
    %479 = arith.addf %476, %478 : vector<2x8x8xf32>
    %cst_166 = arith.constant dense<0xFF800000> : vector<2x8xf32>
    %480 = vector.multi_reduction <maximumf>, %479, %cst_166 [2] : vector<2x8x8xf32> to vector<2x8xf32>
    %481 = vector.shape_cast %480 : vector<2x8xf32> to vector<2x8x1xf32>
    %482 = vector.broadcast %481 : vector<2x8x1xf32> to vector<2x8x8xf32>
    %483 = arith.subf %479, %482 : vector<2x8x8xf32>
    %484 = math.exp %483 : vector<2x8x8xf32>
    %cst_167 = arith.constant dense<0.000000e+00> : vector<2x8xf32>
    %485 = vector.multi_reduction <add>, %484, %cst_167 [2] : vector<2x8x8xf32> to vector<2x8xf32>
    %486 = vector.shape_cast %485 : vector<2x8xf32> to vector<2x8x1xf32>
    %487 = tpu.reciprocal %486 {approx = true} : vector<2x8x1xf32> -> vector<2x8x1xf32>
    %488 = vector.broadcast %487 : vector<2x8x1xf32> to vector<2x8x8xf32>
    %489 = arith.mulf %484, %488 : vector<2x8x8xf32>
    %490 = arith.truncf %489 : vector<2x8x8xf32> to vector<2x8x8xbf16>
    "tpu.trace_start"() <{level = 10 : i32, message = "bts,bsd->btd"}> : () -> ()
    %cst_168 = arith.constant dense<0.000000e+00> : vector<2x8x16xf32>
    %491 = tpu.matmul %490, %473, %cst_168 {dimension_numbers = #tpu.dot_dimension_numbers<[2], [1], [1], [2], [0, 0, 0, 1, 1, 2], [0], [0]>} : vector<2x8x8xbf16>, vector<2x8x16xbf16>, vector<2x8x16xf32> -> vector<2x8x16xf32>
    "tpu.trace_stop"() : () -> ()
    %492 = vector.extract_strided_slice %441 {offsets = [0, 0, 32], sizes = [2, 8, 16], strides = [1, 1, 1]} : vector<2x8x64xf32> to vector<2x8x16xf32>
    %493 = arith.truncf %492 : vector<2x8x16xf32> to vector<2x8x16xbf16>
    %494 = vector.extract_strided_slice %442 {offsets = [0, 0, 32], sizes = [2, 8, 16], strides = [1, 1, 1]} : vector<2x8x64xf32> to vector<2x8x16xf32>
    %495 = arith.truncf %494 : vector<2x8x16xf32> to vector<2x8x16xbf16>
    %496 = vector.extract_strided_slice %443 {offsets = [0, 0, 32], sizes = [2, 8, 16], strides = [1, 1, 1]} : vector<2x8x64xf32> to vector<2x8x16xf32>
    %497 = arith.truncf %496 : vector<2x8x16xf32> to vector<2x8x16xbf16>
    "tpu.trace_start"() <{level = 10 : i32, message = "btd,bsd->bts"}> : () -> ()
    %cst_169 = arith.constant dense<0.000000e+00> : vector<2x8x8xf32>
    %498 = tpu.matmul %493, %495, %cst_169 {dimension_numbers = #tpu.dot_dimension_numbers<[2], [2], [1], [1], [0, 0, 0, 1, 1, 1], [0], [0]>} : vector<2x8x16xbf16>, vector<2x8x16xbf16>, vector<2x8x8xf32> -> vector<2x8x8xf32>
    "tpu.trace_stop"() : () -> ()
    %cst_170 = arith.constant 5.000000e-01 : f32
    %499 = vector.broadcast %cst_170 : f32 to vector<2x8x8xf32>
    %500 = arith.mulf %498, %499 : vector<2x8x8xf32>
    %501 = vector.shape_cast %6 : vector<8x8xf32> to vector<1x8x8xf32>
    %502 = vector.broadcast %501 : vector<1x8x8xf32> to vector<2x8x8xf32>
    %503 = arith.addf %500, %502 : vector<2x8x8xf32>
    %cst_171 = arith.constant dense<0xFF800000> : vector<2x8xf32>
    %504 = vector.multi_reduction <maximumf>, %503, %cst_171 [2] : vector<2x8x8xf32> to vector<2x8xf32>
    %505 = vector.shape_cast %504 : vector<2x8xf32> to vector<2x8x1xf32>
    %506 = vector.broadcast %505 : vector<2x8x1xf32> to vector<2x8x8xf32>
    %507 = arith.subf %503, %506 : vector<2x8x8xf32>
    %508 = math.exp %507 : vector<2x8x8xf32>
    %cst_172 = arith.constant dense<0.000000e+00> : vector<2x8xf32>
    %509 = vector.multi_reduction <add>, %508, %cst_172 [2] : vector<2x8x8xf32> to vector<2x8xf32>
    %510 = vector.shape_cast %509 : vector<2x8xf32> to vector<2x8x1xf32>
    %511 = tpu.reciprocal %510 {approx = true} : vector<2x8x1xf32> -> vector<2x8x1xf32>
    %512 = vector.broadcast %511 : vector<2x8x1xf32> to vector<2x8x8xf32>
    %513 = arith.mulf %508, %512 : vector<2x8x8xf32>
    %514 = arith.truncf %513 : vector<2x8x8xf32> to vector<2x8x8xbf16>
    "tpu.trace_start"() <{level = 10 : i32, message = "bts,bsd->btd"}> : () -> ()
    %cst_173 = arith.constant dense<0.000000e+00> : vector<2x8x16xf32>
    %515 = tpu.matmul %514, %497, %cst_173 {dimension_numbers = #tpu.dot_dimension_numbers<[2], [1], [1], [2], [0, 0, 0, 1, 1, 2], [0], [0]>} : vector<2x8x8xbf16>, vector<2x8x16xbf16>, vector<2x8x16xf32> -> vector<2x8x16xf32>
    "tpu.trace_stop"() : () -> ()
    %516 = vector.extract_strided_slice %441 {offsets = [0, 0, 48], sizes = [2, 8, 16], strides = [1, 1, 1]} : vector<2x8x64xf32> to vector<2x8x16xf32>
    %517 = arith.truncf %516 : vector<2x8x16xf32> to vector<2x8x16xbf16>
    %518 = vector.extract_strided_slice %442 {offsets = [0, 0, 48], sizes = [2, 8, 16], strides = [1, 1, 1]} : vector<2x8x64xf32> to vector<2x8x16xf32>
    %519 = arith.truncf %518 : vector<2x8x16xf32> to vector<2x8x16xbf16>
    %520 = vector.extract_strided_slice %443 {offsets = [0, 0, 48], sizes = [2, 8, 16], strides = [1, 1, 1]} : vector<2x8x64xf32> to vector<2x8x16xf32>
    %521 = arith.truncf %520 : vector<2x8x16xf32> to vector<2x8x16xbf16>
    "tpu.trace_start"() <{level = 10 : i32, message = "btd,bsd->bts"}> : () -> ()
    %cst_174 = arith.constant dense<0.000000e+00> : vector<2x8x8xf32>
    %522 = tpu.matmul %517, %519, %cst_174 {dimension_numbers = #tpu.dot_dimension_numbers<[2], [2], [1], [1], [0, 0, 0, 1, 1, 1], [0], [0]>} : vector<2x8x16xbf16>, vector<2x8x16xbf16>, vector<2x8x8xf32> -> vector<2x8x8xf32>
    "tpu.trace_stop"() : () -> ()
    %cst_175 = arith.constant 5.000000e-01 : f32
    %523 = vector.broadcast %cst_175 : f32 to vector<2x8x8xf32>
    %524 = arith.mulf %522, %523 : vector<2x8x8xf32>
    %525 = vector.shape_cast %6 : vector<8x8xf32> to vector<1x8x8xf32>
    %526 = vector.broadcast %525 : vector<1x8x8xf32> to vector<2x8x8xf32>
    %527 = arith.addf %524, %526 : vector<2x8x8xf32>
    %cst_176 = arith.constant dense<0xFF800000> : vector<2x8xf32>
    %528 = vector.multi_reduction <maximumf>, %527, %cst_176 [2] : vector<2x8x8xf32> to vector<2x8xf32>
    %529 = vector.shape_cast %528 : vector<2x8xf32> to vector<2x8x1xf32>
    %530 = vector.broadcast %529 : vector<2x8x1xf32> to vector<2x8x8xf32>
    %531 = arith.subf %527, %530 : vector<2x8x8xf32>
    %532 = math.exp %531 : vector<2x8x8xf32>
    %cst_177 = arith.constant dense<0.000000e+00> : vector<2x8xf32>
    %533 = vector.multi_reduction <add>, %532, %cst_177 [2] : vector<2x8x8xf32> to vector<2x8xf32>
    %534 = vector.shape_cast %533 : vector<2x8xf32> to vector<2x8x1xf32>
    %535 = tpu.reciprocal %534 {approx = true} : vector<2x8x1xf32> -> vector<2x8x1xf32>
    %536 = vector.broadcast %535 : vector<2x8x1xf32> to vector<2x8x8xf32>
    %537 = arith.mulf %532, %536 : vector<2x8x8xf32>
    %538 = arith.truncf %537 : vector<2x8x8xf32> to vector<2x8x8xbf16>
    "tpu.trace_start"() <{level = 10 : i32, message = "bts,bsd->btd"}> : () -> ()
    %cst_178 = arith.constant dense<0.000000e+00> : vector<2x8x16xf32>
    %539 = tpu.matmul %538, %521, %cst_178 {dimension_numbers = #tpu.dot_dimension_numbers<[2], [1], [1], [2], [0, 0, 0, 1, 1, 2], [0], [0]>} : vector<2x8x8xbf16>, vector<2x8x16xbf16>, vector<2x8x16xf32> -> vector<2x8x16xf32>
    "tpu.trace_stop"() : () -> ()
    %540 = tpu.concatenate %467, %491, %515, %539 in 2 : vector<2x8x16xf32>, vector<2x8x16xf32>, vector<2x8x16xf32>, vector<2x8x16xf32> -> vector<2x8x64xf32>
    %541 = vector.shape_cast %540 : vector<2x8x64xf32> to vector<16x64xf32>
    %542 = arith.truncf %541 : vector<16x64xf32> to vector<16x64xbf16>
    %c2_179 = arith.constant 2 : index
    %c0_180 = arith.constant 0 : index
    %c0_181 = arith.constant 0 : index
    %543 = vector.load %arg7[%c2_179, %c0_180, %c0_181] : memref<4x64x64xbf16, #tpu.memory_space<vmem>>, vector<1x64x64xbf16>
    %544 = vector.shape_cast %543 : vector<1x64x64xbf16> to vector<64x64xbf16>
    %cst_182 = arith.constant dense<0.000000e+00> : vector<16x64xf32>
    %545 = tpu.matmul %542, %544, %cst_182 {dimension_numbers = #tpu.dot_dimension_numbers<[1], [0], [0], [1], [0, 0, 1, 1], [], []>} : vector<16x64xbf16>, vector<64x64xbf16>, vector<16x64xf32> -> vector<16x64xf32>
    %c2_183 = arith.constant 2 : index
    %c0_184 = arith.constant 0 : index
    %546 = vector.load %arg8[%c2_183, %c0_184] : memref<4x64xf32, #tpu.memory_space<vmem>>, vector<1x64xf32>
    %547 = vector.shape_cast %546 : vector<1x64xf32> to vector<64xf32>
    %548 = vector.shape_cast %547 : vector<64xf32> to vector<1x64xf32>
    %549 = vector.broadcast %548 : vector<1x64xf32> to vector<16x64xf32>
    %550 = arith.addf %545, %549 : vector<16x64xf32>
    %551 = arith.addf %402, %550 : vector<16x64xf32>
    %c2_185 = arith.constant 2 : index
    %c0_186 = arith.constant 0 : index
    %552 = vector.load %arg9[%c2_185, %c0_186] : memref<4x64xf32, #tpu.memory_space<vmem>>, vector<1x64xf32>
    %553 = vector.shape_cast %552 : vector<1x64xf32> to vector<64xf32>
    %c2_187 = arith.constant 2 : index
    %c0_188 = arith.constant 0 : index
    %554 = vector.load %arg10[%c2_187, %c0_188] : memref<4x64xf32, #tpu.memory_space<vmem>>, vector<1x64xf32>
    %555 = vector.shape_cast %554 : vector<1x64xf32> to vector<64xf32>
    %cst_189 = arith.constant dense<0.000000e+00> : vector<16xf32>
    %556 = vector.multi_reduction <add>, %551, %cst_189 [1] : vector<16x64xf32> to vector<16xf32>
    %557 = vector.shape_cast %556 : vector<16xf32> to vector<16x1xf32>
    %cst_190 = arith.constant 6.400000e+01 : f32
    %558 = vector.broadcast %cst_190 : f32 to vector<16x1xf32>
    %559 = arith.divf %557, %558 : vector<16x1xf32>
    %560 = vector.broadcast %559 : vector<16x1xf32> to vector<16x64xf32>
    %561 = arith.subf %551, %560 : vector<16x64xf32>
    %562 = arith.mulf %561, %561 : vector<16x64xf32>
    %cst_191 = arith.constant dense<0.000000e+00> : vector<16xf32>
    %563 = vector.multi_reduction <add>, %562, %cst_191 [1] : vector<16x64xf32> to vector<16xf32>
    %564 = vector.shape_cast %563 : vector<16xf32> to vector<16x1xf32>
    %cst_192 = arith.constant 6.400000e+01 : f32
    %565 = vector.broadcast %cst_192 : f32 to vector<16x1xf32>
    %566 = arith.divf %564, %565 : vector<16x1xf32>
    %567 = vector.broadcast %559 : vector<16x1xf32> to vector<16x64xf32>
    %568 = arith.subf %551, %567 : vector<16x64xf32>
    %cst_193 = arith.constant 9.99999974E-6 : f32
    %569 = vector.broadcast %cst_193 : f32 to vector<16x1xf32>
    %570 = arith.addf %566, %569 : vector<16x1xf32>
    %571 = math.rsqrt %570 : vector<16x1xf32>
    %572 = vector.broadcast %571 : vector<16x1xf32> to vector<16x64xf32>
    %573 = arith.mulf %568, %572 : vector<16x64xf32>
    %574 = vector.shape_cast %553 : vector<64xf32> to vector<1x64xf32>
    %575 = vector.broadcast %574 : vector<1x64xf32> to vector<16x64xf32>
    %576 = arith.mulf %573, %575 : vector<16x64xf32>
    %577 = vector.shape_cast %555 : vector<64xf32> to vector<1x64xf32>
    %578 = vector.broadcast %577 : vector<1x64xf32> to vector<16x64xf32>
    %579 = arith.addf %576, %578 : vector<16x64xf32>
    %580 = arith.truncf %579 : vector<16x64xf32> to vector<16x64xbf16>
    %c2_194 = arith.constant 2 : index
    %c0_195 = arith.constant 0 : index
    %c0_196 = arith.constant 0 : index
    %581 = vector.load %arg11[%c2_194, %c0_195, %c0_196] : memref<4x64x256xbf16, #tpu.memory_space<vmem>>, vector<1x64x256xbf16>
    %582 = vector.shape_cast %581 : vector<1x64x256xbf16> to vector<64x256xbf16>
    %cst_197 = arith.constant dense<0.000000e+00> : vector<16x256xf32>
    %583 = tpu.matmul %580, %582, %cst_197 {dimension_numbers = #tpu.dot_dimension_numbers<[1], [0], [0], [1], [0, 0, 1, 1], [], []>} : vector<16x64xbf16>, vector<64x256xbf16>, vector<16x256xf32> -> vector<16x256xf32>
    %c2_198 = arith.constant 2 : index
    %c0_199 = arith.constant 0 : index
    %584 = vector.load %arg12[%c2_198, %c0_199] : memref<4x256xf32, #tpu.memory_space<vmem>>, vector<1x256xf32>
    %585 = vector.shape_cast %584 : vector<1x256xf32> to vector<256xf32>
    %586 = vector.shape_cast %585 : vector<256xf32> to vector<1x256xf32>
    %587 = vector.broadcast %586 : vector<1x256xf32> to vector<16x256xf32>
    %588 = arith.addf %583, %587 : vector<16x256xf32>
    %cst_200 = arith.constant 0.000000e+00 : f32
    %589 = vector.broadcast %cst_200 : f32 to vector<16x256xf32>
    %590 = arith.maximumf %588, %589 : vector<16x256xf32>
    %591 = arith.truncf %590 : vector<16x256xf32> to vector<16x256xbf16>
    %c2_201 = arith.constant 2 : index
    %c0_202 = arith.constant 0 : index
    %c0_203 = arith.constant 0 : index
    %592 = vector.load %arg13[%c2_201, %c0_202, %c0_203] : memref<4x256x64xbf16, #tpu.memory_space<vmem>>, vector<1x256x64xbf16>
    %593 = vector.shape_cast %592 : vector<1x256x64xbf16> to vector<256x64xbf16>
    %cst_204 = arith.constant dense<0.000000e+00> : vector<16x64xf32>
    %594 = tpu.matmul %591, %593, %cst_204 {dimension_numbers = #tpu.dot_dimension_numbers<[1], [0], [0], [1], [0, 0, 1, 1], [], []>} : vector<16x256xbf16>, vector<256x64xbf16>, vector<16x64xf32> -> vector<16x64xf32>
    %c2_205 = arith.constant 2 : index
    %c0_206 = arith.constant 0 : index
    %595 = vector.load %arg14[%c2_205, %c0_206] : memref<4x64xf32, #tpu.memory_space<vmem>>, vector<1x64xf32>
    %596 = vector.shape_cast %595 : vector<1x64xf32> to vector<64xf32>
    %597 = vector.shape_cast %596 : vector<64xf32> to vector<1x64xf32>
    %598 = vector.broadcast %597 : vector<1x64xf32> to vector<16x64xf32>
    %599 = arith.addf %594, %598 : vector<16x64xf32>
    %600 = arith.addf %551, %599 : vector<16x64xf32>
    %c3 = arith.constant 3 : index
    %c0_207 = arith.constant 0 : index
    %601 = vector.load %arg2[%c3, %c0_207] : memref<4x64xf32, #tpu.memory_space<vmem>>, vector<1x64xf32>
    %602 = vector.shape_cast %601 : vector<1x64xf32> to vector<64xf32>
    %c3_208 = arith.constant 3 : index
    %c0_209 = arith.constant 0 : index
    %603 = vector.load %arg3[%c3_208, %c0_209] : memref<4x64xf32, #tpu.memory_space<vmem>>, vector<1x64xf32>
    %604 = vector.shape_cast %603 : vector<1x64xf32> to vector<64xf32>
    %cst_210 = arith.constant dense<0.000000e+00> : vector<16xf32>
    %605 = vector.multi_reduction <add>, %600, %cst_210 [1] : vector<16x64xf32> to vector<16xf32>
    %606 = vector.shape_cast %605 : vector<16xf32> to vector<16x1xf32>
    %cst_211 = arith.constant 6.400000e+01 : f32
    %607 = vector.broadcast %cst_211 : f32 to vector<16x1xf32>
    %608 = arith.divf %606, %607 : vector<16x1xf32>
    %609 = vector.broadcast %608 : vector<16x1xf32> to vector<16x64xf32>
    %610 = arith.subf %600, %609 : vector<16x64xf32>
    %611 = arith.mulf %610, %610 : vector<16x64xf32>
    %cst_212 = arith.constant dense<0.000000e+00> : vector<16xf32>
    %612 = vector.multi_reduction <add>, %611, %cst_212 [1] : vector<16x64xf32> to vector<16xf32>
    %613 = vector.shape_cast %612 : vector<16xf32> to vector<16x1xf32>
    %cst_213 = arith.constant 6.400000e+01 : f32
    %614 = vector.broadcast %cst_213 : f32 to vector<16x1xf32>
    %615 = arith.divf %613, %614 : vector<16x1xf32>
    %616 = vector.broadcast %608 : vector<16x1xf32> to vector<16x64xf32>
    %617 = arith.subf %600, %616 : vector<16x64xf32>
    %cst_214 = arith.constant 9.99999974E-6 : f32
    %618 = vector.broadcast %cst_214 : f32 to vector<16x1xf32>
    %619 = arith.addf %615, %618 : vector<16x1xf32>
    %620 = math.rsqrt %619 : vector<16x1xf32>
    %621 = vector.broadcast %620 : vector<16x1xf32> to vector<16x64xf32>
    %622 = arith.mulf %617, %621 : vector<16x64xf32>
    %623 = vector.shape_cast %602 : vector<64xf32> to vector<1x64xf32>
    %624 = vector.broadcast %623 : vector<1x64xf32> to vector<16x64xf32>
    %625 = arith.mulf %622, %624 : vector<16x64xf32>
    %626 = vector.shape_cast %604 : vector<64xf32> to vector<1x64xf32>
    %627 = vector.broadcast %626 : vector<1x64xf32> to vector<16x64xf32>
    %628 = arith.addf %625, %627 : vector<16x64xf32>
    %629 = arith.truncf %628 : vector<16x64xf32> to vector<16x64xbf16>
    %c3_215 = arith.constant 3 : index
    %c0_216 = arith.constant 0 : index
    %c0_217 = arith.constant 0 : index
    %630 = vector.load %arg4[%c3_215, %c0_216, %c0_217] : memref<4x64x64xbf16, #tpu.memory_space<vmem>>, vector<1x64x64xbf16>
    %631 = vector.shape_cast %630 : vector<1x64x64xbf16> to vector<64x64xbf16>
    %cst_218 = arith.constant dense<0.000000e+00> : vector<16x64xf32>
    %632 = tpu.matmul %629, %631, %cst_218 {dimension_numbers = #tpu.dot_dimension_numbers<[1], [0], [0], [1], [0, 0, 1, 1], [], []>} : vector<16x64xbf16>, vector<64x64xbf16>, vector<16x64xf32> -> vector<16x64xf32>
    %c3_219 = arith.constant 3 : index
    %c0_220 = arith.constant 0 : index
    %c0_221 = arith.constant 0 : index
    %633 = vector.load %arg5[%c3_219, %c0_220, %c0_221] : memref<4x64x64xbf16, #tpu.memory_space<vmem>>, vector<1x64x64xbf16>
    %634 = vector.shape_cast %633 : vector<1x64x64xbf16> to vector<64x64xbf16>
    %cst_222 = arith.constant dense<0.000000e+00> : vector<16x64xf32>
    %635 = tpu.matmul %629, %634, %cst_222 {dimension_numbers = #tpu.dot_dimension_numbers<[1], [0], [0], [1], [0, 0, 1, 1], [], []>} : vector<16x64xbf16>, vector<64x64xbf16>, vector<16x64xf32> -> vector<16x64xf32>
    %c3_223 = arith.constant 3 : index
    %c0_224 = arith.constant 0 : index
    %c0_225 = arith.constant 0 : index
    %636 = vector.load %arg6[%c3_223, %c0_224, %c0_225] : memref<4x64x64xbf16, #tpu.memory_space<vmem>>, vector<1x64x64xbf16>
    %637 = vector.shape_cast %636 : vector<1x64x64xbf16> to vector<64x64xbf16>
    %cst_226 = arith.constant dense<0.000000e+00> : vector<16x64xf32>
    %638 = tpu.matmul %629, %637, %cst_226 {dimension_numbers = #tpu.dot_dimension_numbers<[1], [0], [0], [1], [0, 0, 1, 1], [], []>} : vector<16x64xbf16>, vector<64x64xbf16>, vector<16x64xf32> -> vector<16x64xf32>
    %639 = vector.shape_cast %632 : vector<16x64xf32> to vector<2x8x64xf32>
    %640 = vector.shape_cast %635 : vector<16x64xf32> to vector<2x8x64xf32>
    %641 = vector.shape_cast %638 : vector<16x64xf32> to vector<2x8x64xf32>
    %642 = vector.extract_strided_slice %639 {offsets = [0, 0, 0], sizes = [2, 8, 16], strides = [1, 1, 1]} : vector<2x8x64xf32> to vector<2x8x16xf32>
    %643 = arith.truncf %642 : vector<2x8x16xf32> to vector<2x8x16xbf16>
    %644 = vector.extract_strided_slice %640 {offsets = [0, 0, 0], sizes = [2, 8, 16], strides = [1, 1, 1]} : vector<2x8x64xf32> to vector<2x8x16xf32>
    %645 = arith.truncf %644 : vector<2x8x16xf32> to vector<2x8x16xbf16>
    %646 = vector.extract_strided_slice %641 {offsets = [0, 0, 0], sizes = [2, 8, 16], strides = [1, 1, 1]} : vector<2x8x64xf32> to vector<2x8x16xf32>
    %647 = arith.truncf %646 : vector<2x8x16xf32> to vector<2x8x16xbf16>
    "tpu.trace_start"() <{level = 10 : i32, message = "btd,bsd->bts"}> : () -> ()
    %cst_227 = arith.constant dense<0.000000e+00> : vector<2x8x8xf32>
    %648 = tpu.matmul %643, %645, %cst_227 {dimension_numbers = #tpu.dot_dimension_numbers<[2], [2], [1], [1], [0, 0, 0, 1, 1, 1], [0], [0]>} : vector<2x8x16xbf16>, vector<2x8x16xbf16>, vector<2x8x8xf32> -> vector<2x8x8xf32>
    "tpu.trace_stop"() : () -> ()
    %cst_228 = arith.constant 5.000000e-01 : f32
    %649 = vector.broadcast %cst_228 : f32 to vector<2x8x8xf32>
    %650 = arith.mulf %648, %649 : vector<2x8x8xf32>
    %651 = vector.shape_cast %6 : vector<8x8xf32> to vector<1x8x8xf32>
    %652 = vector.broadcast %651 : vector<1x8x8xf32> to vector<2x8x8xf32>
    %653 = arith.addf %650, %652 : vector<2x8x8xf32>
    %cst_229 = arith.constant dense<0xFF800000> : vector<2x8xf32>
    %654 = vector.multi_reduction <maximumf>, %653, %cst_229 [2] : vector<2x8x8xf32> to vector<2x8xf32>
    %655 = vector.shape_cast %654 : vector<2x8xf32> to vector<2x8x1xf32>
    %656 = vector.broadcast %655 : vector<2x8x1xf32> to vector<2x8x8xf32>
    %657 = arith.subf %653, %656 : vector<2x8x8xf32>
    %658 = math.exp %657 : vector<2x8x8xf32>
    %cst_230 = arith.constant dense<0.000000e+00> : vector<2x8xf32>
    %659 = vector.multi_reduction <add>, %658, %cst_230 [2] : vector<2x8x8xf32> to vector<2x8xf32>
    %660 = vector.shape_cast %659 : vector<2x8xf32> to vector<2x8x1xf32>
    %661 = tpu.reciprocal %660 {approx = true} : vector<2x8x1xf32> -> vector<2x8x1xf32>
    %662 = vector.broadcast %661 : vector<2x8x1xf32> to vector<2x8x8xf32>
    %663 = arith.mulf %658, %662 : vector<2x8x8xf32>
    %664 = arith.truncf %663 : vector<2x8x8xf32> to vector<2x8x8xbf16>
    "tpu.trace_start"() <{level = 10 : i32, message = "bts,bsd->btd"}> : () -> ()
    %cst_231 = arith.constant dense<0.000000e+00> : vector<2x8x16xf32>
    %665 = tpu.matmul %664, %647, %cst_231 {dimension_numbers = #tpu.dot_dimension_numbers<[2], [1], [1], [2], [0, 0, 0, 1, 1, 2], [0], [0]>} : vector<2x8x8xbf16>, vector<2x8x16xbf16>, vector<2x8x16xf32> -> vector<2x8x16xf32>
    "tpu.trace_stop"() : () -> ()
    %666 = vector.extract_strided_slice %639 {offsets = [0, 0, 16], sizes = [2, 8, 16], strides = [1, 1, 1]} : vector<2x8x64xf32> to vector<2x8x16xf32>
    %667 = arith.truncf %666 : vector<2x8x16xf32> to vector<2x8x16xbf16>
    %668 = vector.extract_strided_slice %640 {offsets = [0, 0, 16], sizes = [2, 8, 16], strides = [1, 1, 1]} : vector<2x8x64xf32> to vector<2x8x16xf32>
    %669 = arith.truncf %668 : vector<2x8x16xf32> to vector<2x8x16xbf16>
    %670 = vector.extract_strided_slice %641 {offsets = [0, 0, 16], sizes = [2, 8, 16], strides = [1, 1, 1]} : vector<2x8x64xf32> to vector<2x8x16xf32>
    %671 = arith.truncf %670 : vector<2x8x16xf32> to vector<2x8x16xbf16>
    "tpu.trace_start"() <{level = 10 : i32, message = "btd,bsd->bts"}> : () -> ()
    %cst_232 = arith.constant dense<0.000000e+00> : vector<2x8x8xf32>
    %672 = tpu.matmul %667, %669, %cst_232 {dimension_numbers = #tpu.dot_dimension_numbers<[2], [2], [1], [1], [0, 0, 0, 1, 1, 1], [0], [0]>} : vector<2x8x16xbf16>, vector<2x8x16xbf16>, vector<2x8x8xf32> -> vector<2x8x8xf32>
    "tpu.trace_stop"() : () -> ()
    %cst_233 = arith.constant 5.000000e-01 : f32
    %673 = vector.broadcast %cst_233 : f32 to vector<2x8x8xf32>
    %674 = arith.mulf %672, %673 : vector<2x8x8xf32>
    %675 = vector.shape_cast %6 : vector<8x8xf32> to vector<1x8x8xf32>
    %676 = vector.broadcast %675 : vector<1x8x8xf32> to vector<2x8x8xf32>
    %677 = arith.addf %674, %676 : vector<2x8x8xf32>
    %cst_234 = arith.constant dense<0xFF800000> : vector<2x8xf32>
    %678 = vector.multi_reduction <maximumf>, %677, %cst_234 [2] : vector<2x8x8xf32> to vector<2x8xf32>
    %679 = vector.shape_cast %678 : vector<2x8xf32> to vector<2x8x1xf32>
    %680 = vector.broadcast %679 : vector<2x8x1xf32> to vector<2x8x8xf32>
    %681 = arith.subf %677, %680 : vector<2x8x8xf32>
    %682 = math.exp %681 : vector<2x8x8xf32>
    %cst_235 = arith.constant dense<0.000000e+00> : vector<2x8xf32>
    %683 = vector.multi_reduction <add>, %682, %cst_235 [2] : vector<2x8x8xf32> to vector<2x8xf32>
    %684 = vector.shape_cast %683 : vector<2x8xf32> to vector<2x8x1xf32>
    %685 = tpu.reciprocal %684 {approx = true} : vector<2x8x1xf32> -> vector<2x8x1xf32>
    %686 = vector.broadcast %685 : vector<2x8x1xf32> to vector<2x8x8xf32>
    %687 = arith.mulf %682, %686 : vector<2x8x8xf32>
    %688 = arith.truncf %687 : vector<2x8x8xf32> to vector<2x8x8xbf16>
    "tpu.trace_start"() <{level = 10 : i32, message = "bts,bsd->btd"}> : () -> ()
    %cst_236 = arith.constant dense<0.000000e+00> : vector<2x8x16xf32>
    %689 = tpu.matmul %688, %671, %cst_236 {dimension_numbers = #tpu.dot_dimension_numbers<[2], [1], [1], [2], [0, 0, 0, 1, 1, 2], [0], [0]>} : vector<2x8x8xbf16>, vector<2x8x16xbf16>, vector<2x8x16xf32> -> vector<2x8x16xf32>
    "tpu.trace_stop"() : () -> ()
    %690 = vector.extract_strided_slice %639 {offsets = [0, 0, 32], sizes = [2, 8, 16], strides = [1, 1, 1]} : vector<2x8x64xf32> to vector<2x8x16xf32>
    %691 = arith.truncf %690 : vector<2x8x16xf32> to vector<2x8x16xbf16>
    %692 = vector.extract_strided_slice %640 {offsets = [0, 0, 32], sizes = [2, 8, 16], strides = [1, 1, 1]} : vector<2x8x64xf32> to vector<2x8x16xf32>
    %693 = arith.truncf %692 : vector<2x8x16xf32> to vector<2x8x16xbf16>
    %694 = vector.extract_strided_slice %641 {offsets = [0, 0, 32], sizes = [2, 8, 16], strides = [1, 1, 1]} : vector<2x8x64xf32> to vector<2x8x16xf32>
    %695 = arith.truncf %694 : vector<2x8x16xf32> to vector<2x8x16xbf16>
    "tpu.trace_start"() <{level = 10 : i32, message = "btd,bsd->bts"}> : () -> ()
    %cst_237 = arith.constant dense<0.000000e+00> : vector<2x8x8xf32>
    %696 = tpu.matmul %691, %693, %cst_237 {dimension_numbers = #tpu.dot_dimension_numbers<[2], [2], [1], [1], [0, 0, 0, 1, 1, 1], [0], [0]>} : vector<2x8x16xbf16>, vector<2x8x16xbf16>, vector<2x8x8xf32> -> vector<2x8x8xf32>
    "tpu.trace_stop"() : () -> ()
    %cst_238 = arith.constant 5.000000e-01 : f32
    %697 = vector.broadcast %cst_238 : f32 to vector<2x8x8xf32>
    %698 = arith.mulf %696, %697 : vector<2x8x8xf32>
    %699 = vector.shape_cast %6 : vector<8x8xf32> to vector<1x8x8xf32>
    %700 = vector.broadcast %699 : vector<1x8x8xf32> to vector<2x8x8xf32>
    %701 = arith.addf %698, %700 : vector<2x8x8xf32>
    %cst_239 = arith.constant dense<0xFF800000> : vector<2x8xf32>
    %702 = vector.multi_reduction <maximumf>, %701, %cst_239 [2] : vector<2x8x8xf32> to vector<2x8xf32>
    %703 = vector.shape_cast %702 : vector<2x8xf32> to vector<2x8x1xf32>
    %704 = vector.broadcast %703 : vector<2x8x1xf32> to vector<2x8x8xf32>
    %705 = arith.subf %701, %704 : vector<2x8x8xf32>
    %706 = math.exp %705 : vector<2x8x8xf32>
    %cst_240 = arith.constant dense<0.000000e+00> : vector<2x8xf32>
    %707 = vector.multi_reduction <add>, %706, %cst_240 [2] : vector<2x8x8xf32> to vector<2x8xf32>
    %708 = vector.shape_cast %707 : vector<2x8xf32> to vector<2x8x1xf32>
    %709 = tpu.reciprocal %708 {approx = true} : vector<2x8x1xf32> -> vector<2x8x1xf32>
    %710 = vector.broadcast %709 : vector<2x8x1xf32> to vector<2x8x8xf32>
    %711 = arith.mulf %706, %710 : vector<2x8x8xf32>
    %712 = arith.truncf %711 : vector<2x8x8xf32> to vector<2x8x8xbf16>
    "tpu.trace_start"() <{level = 10 : i32, message = "bts,bsd->btd"}> : () -> ()
    %cst_241 = arith.constant dense<0.000000e+00> : vector<2x8x16xf32>
    %713 = tpu.matmul %712, %695, %cst_241 {dimension_numbers = #tpu.dot_dimension_numbers<[2], [1], [1], [2], [0, 0, 0, 1, 1, 2], [0], [0]>} : vector<2x8x8xbf16>, vector<2x8x16xbf16>, vector<2x8x16xf32> -> vector<2x8x16xf32>
    "tpu.trace_stop"() : () -> ()
    %714 = vector.extract_strided_slice %639 {offsets = [0, 0, 48], sizes = [2, 8, 16], strides = [1, 1, 1]} : vector<2x8x64xf32> to vector<2x8x16xf32>
    %715 = arith.truncf %714 : vector<2x8x16xf32> to vector<2x8x16xbf16>
    %716 = vector.extract_strided_slice %640 {offsets = [0, 0, 48], sizes = [2, 8, 16], strides = [1, 1, 1]} : vector<2x8x64xf32> to vector<2x8x16xf32>
    %717 = arith.truncf %716 : vector<2x8x16xf32> to vector<2x8x16xbf16>
    %718 = vector.extract_strided_slice %641 {offsets = [0, 0, 48], sizes = [2, 8, 16], strides = [1, 1, 1]} : vector<2x8x64xf32> to vector<2x8x16xf32>
    %719 = arith.truncf %718 : vector<2x8x16xf32> to vector<2x8x16xbf16>
    "tpu.trace_start"() <{level = 10 : i32, message = "btd,bsd->bts"}> : () -> ()
    %cst_242 = arith.constant dense<0.000000e+00> : vector<2x8x8xf32>
    %720 = tpu.matmul %715, %717, %cst_242 {dimension_numbers = #tpu.dot_dimension_numbers<[2], [2], [1], [1], [0, 0, 0, 1, 1, 1], [0], [0]>} : vector<2x8x16xbf16>, vector<2x8x16xbf16>, vector<2x8x8xf32> -> vector<2x8x8xf32>
    "tpu.trace_stop"() : () -> ()
    %cst_243 = arith.constant 5.000000e-01 : f32
    %721 = vector.broadcast %cst_243 : f32 to vector<2x8x8xf32>
    %722 = arith.mulf %720, %721 : vector<2x8x8xf32>
    %723 = vector.shape_cast %6 : vector<8x8xf32> to vector<1x8x8xf32>
    %724 = vector.broadcast %723 : vector<1x8x8xf32> to vector<2x8x8xf32>
    %725 = arith.addf %722, %724 : vector<2x8x8xf32>
    %cst_244 = arith.constant dense<0xFF800000> : vector<2x8xf32>
    %726 = vector.multi_reduction <maximumf>, %725, %cst_244 [2] : vector<2x8x8xf32> to vector<2x8xf32>
    %727 = vector.shape_cast %726 : vector<2x8xf32> to vector<2x8x1xf32>
    %728 = vector.broadcast %727 : vector<2x8x1xf32> to vector<2x8x8xf32>
    %729 = arith.subf %725, %728 : vector<2x8x8xf32>
    %730 = math.exp %729 : vector<2x8x8xf32>
    %cst_245 = arith.constant dense<0.000000e+00> : vector<2x8xf32>
    %731 = vector.multi_reduction <add>, %730, %cst_245 [2] : vector<2x8x8xf32> to vector<2x8xf32>
    %732 = vector.shape_cast %731 : vector<2x8xf32> to vector<2x8x1xf32>
    %733 = tpu.reciprocal %732 {approx = true} : vector<2x8x1xf32> -> vector<2x8x1xf32>
    %734 = vector.broadcast %733 : vector<2x8x1xf32> to vector<2x8x8xf32>
    %735 = arith.mulf %730, %734 : vector<2x8x8xf32>
    %736 = arith.truncf %735 : vector<2x8x8xf32> to vector<2x8x8xbf16>
    "tpu.trace_start"() <{level = 10 : i32, message = "bts,bsd->btd"}> : () -> ()
    %cst_246 = arith.constant dense<0.000000e+00> : vector<2x8x16xf32>
    %737 = tpu.matmul %736, %719, %cst_246 {dimension_numbers = #tpu.dot_dimension_numbers<[2], [1], [1], [2], [0, 0, 0, 1, 1, 2], [0], [0]>} : vector<2x8x8xbf16>, vector<2x8x16xbf16>, vector<2x8x16xf32> -> vector<2x8x16xf32>
    "tpu.trace_stop"() : () -> ()
    %738 = tpu.concatenate %665, %689, %713, %737 in 2 : vector<2x8x16xf32>, vector<2x8x16xf32>, vector<2x8x16xf32>, vector<2x8x16xf32> -> vector<2x8x64xf32>
    %739 = vector.shape_cast %738 : vector<2x8x64xf32> to vector<16x64xf32>
    %740 = arith.truncf %739 : vector<16x64xf32> to vector<16x64xbf16>
    %c3_247 = arith.constant 3 : index
    %c0_248 = arith.constant 0 : index
    %c0_249 = arith.constant 0 : index
    %741 = vector.load %arg7[%c3_247, %c0_248, %c0_249] : memref<4x64x64xbf16, #tpu.memory_space<vmem>>, vector<1x64x64xbf16>
    %742 = vector.shape_cast %741 : vector<1x64x64xbf16> to vector<64x64xbf16>
    %cst_250 = arith.constant dense<0.000000e+00> : vector<16x64xf32>
    %743 = tpu.matmul %740, %742, %cst_250 {dimension_numbers = #tpu.dot_dimension_numbers<[1], [0], [0], [1], [0, 0, 1, 1], [], []>} : vector<16x64xbf16>, vector<64x64xbf16>, vector<16x64xf32> -> vector<16x64xf32>
    %c3_251 = arith.constant 3 : index
    %c0_252 = arith.constant 0 : index
    %744 = vector.load %arg8[%c3_251, %c0_252] : memref<4x64xf32, #tpu.memory_space<vmem>>, vector<1x64xf32>
    %745 = vector.shape_cast %744 : vector<1x64xf32> to vector<64xf32>
    %746 = vector.shape_cast %745 : vector<64xf32> to vector<1x64xf32>
    %747 = vector.broadcast %746 : vector<1x64xf32> to vector<16x64xf32>
    %748 = arith.addf %743, %747 : vector<16x64xf32>
    %749 = arith.addf %600, %748 : vector<16x64xf32>
    %c3_253 = arith.constant 3 : index
    %c0_254 = arith.constant 0 : index
    %750 = vector.load %arg9[%c3_253, %c0_254] : memref<4x64xf32, #tpu.memory_space<vmem>>, vector<1x64xf32>
    %751 = vector.shape_cast %750 : vector<1x64xf32> to vector<64xf32>
    %c3_255 = arith.constant 3 : index
    %c0_256 = arith.constant 0 : index
    %752 = vector.load %arg10[%c3_255, %c0_256] : memref<4x64xf32, #tpu.memory_space<vmem>>, vector<1x64xf32>
    %753 = vector.shape_cast %752 : vector<1x64xf32> to vector<64xf32>
    %cst_257 = arith.constant dense<0.000000e+00> : vector<16xf32>
    %754 = vector.multi_reduction <add>, %749, %cst_257 [1] : vector<16x64xf32> to vector<16xf32>
    %755 = vector.shape_cast %754 : vector<16xf32> to vector<16x1xf32>
    %cst_258 = arith.constant 6.400000e+01 : f32
    %756 = vector.broadcast %cst_258 : f32 to vector<16x1xf32>
    %757 = arith.divf %755, %756 : vector<16x1xf32>
    %758 = vector.broadcast %757 : vector<16x1xf32> to vector<16x64xf32>
    %759 = arith.subf %749, %758 : vector<16x64xf32>
    %760 = arith.mulf %759, %759 : vector<16x64xf32>
    %cst_259 = arith.constant dense<0.000000e+00> : vector<16xf32>
    %761 = vector.multi_reduction <add>, %760, %cst_259 [1] : vector<16x64xf32> to vector<16xf32>
    %762 = vector.shape_cast %761 : vector<16xf32> to vector<16x1xf32>
    %cst_260 = arith.constant 6.400000e+01 : f32
    %763 = vector.broadcast %cst_260 : f32 to vector<16x1xf32>
    %764 = arith.divf %762, %763 : vector<16x1xf32>
    %765 = vector.broadcast %757 : vector<16x1xf32> to vector<16x64xf32>
    %766 = arith.subf %749, %765 : vector<16x64xf32>
    %cst_261 = arith.constant 9.99999974E-6 : f32
    %767 = vector.broadcast %cst_261 : f32 to vector<16x1xf32>
    %768 = arith.addf %764, %767 : vector<16x1xf32>
    %769 = math.rsqrt %768 : vector<16x1xf32>
    %770 = vector.broadcast %769 : vector<16x1xf32> to vector<16x64xf32>
    %771 = arith.mulf %766, %770 : vector<16x64xf32>
    %772 = vector.shape_cast %751 : vector<64xf32> to vector<1x64xf32>
    %773 = vector.broadcast %772 : vector<1x64xf32> to vector<16x64xf32>
    %774 = arith.mulf %771, %773 : vector<16x64xf32>
    %775 = vector.shape_cast %753 : vector<64xf32> to vector<1x64xf32>
    %776 = vector.broadcast %775 : vector<1x64xf32> to vector<16x64xf32>
    %777 = arith.addf %774, %776 : vector<16x64xf32>
    %778 = arith.truncf %777 : vector<16x64xf32> to vector<16x64xbf16>
    %c3_262 = arith.constant 3 : index
    %c0_263 = arith.constant 0 : index
    %c0_264 = arith.constant 0 : index
    %779 = vector.load %arg11[%c3_262, %c0_263, %c0_264] : memref<4x64x256xbf16, #tpu.memory_space<vmem>>, vector<1x64x256xbf16>
    %780 = vector.shape_cast %779 : vector<1x64x256xbf16> to vector<64x256xbf16>
    %cst_265 = arith.constant dense<0.000000e+00> : vector<16x256xf32>
    %781 = tpu.matmul %778, %780, %cst_265 {dimension_numbers = #tpu.dot_dimension_numbers<[1], [0], [0], [1], [0, 0, 1, 1], [], []>} : vector<16x64xbf16>, vector<64x256xbf16>, vector<16x256xf32> -> vector<16x256xf32>
    %c3_266 = arith.constant 3 : index
    %c0_267 = arith.constant 0 : index
    %782 = vector.load %arg12[%c3_266, %c0_267] : memref<4x256xf32, #tpu.memory_space<vmem>>, vector<1x256xf32>
    %783 = vector.shape_cast %782 : vector<1x256xf32> to vector<256xf32>
    %784 = vector.shape_cast %783 : vector<256xf32> to vector<1x256xf32>
    %785 = vector.broadcast %784 : vector<1x256xf32> to vector<16x256xf32>
    %786 = arith.addf %781, %785 : vector<16x256xf32>
    %cst_268 = arith.constant 0.000000e+00 : f32
    %787 = vector.broadcast %cst_268 : f32 to vector<16x256xf32>
    %788 = arith.maximumf %786, %787 : vector<16x256xf32>
    %789 = arith.truncf %788 : vector<16x256xf32> to vector<16x256xbf16>
    %c3_269 = arith.constant 3 : index
    %c0_270 = arith.constant 0 : index
    %c0_271 = arith.constant 0 : index
    %790 = vector.load %arg13[%c3_269, %c0_270, %c0_271] : memref<4x256x64xbf16, #tpu.memory_space<vmem>>, vector<1x256x64xbf16>
    %791 = vector.shape_cast %790 : vector<1x256x64xbf16> to vector<256x64xbf16>
    %cst_272 = arith.constant dense<0.000000e+00> : vector<16x64xf32>
    %792 = tpu.matmul %789, %791, %cst_272 {dimension_numbers = #tpu.dot_dimension_numbers<[1], [0], [0], [1], [0, 0, 1, 1], [], []>} : vector<16x256xbf16>, vector<256x64xbf16>, vector<16x64xf32> -> vector<16x64xf32>
    %c3_273 = arith.constant 3 : index
    %c0_274 = arith.constant 0 : index
    %793 = vector.load %arg14[%c3_273, %c0_274] : memref<4x64xf32, #tpu.memory_space<vmem>>, vector<1x64xf32>
    %794 = vector.shape_cast %793 : vector<1x64xf32> to vector<64xf32>
    %795 = vector.shape_cast %794 : vector<64xf32> to vector<1x64xf32>
    %796 = vector.broadcast %795 : vector<1x64xf32> to vector<16x64xf32>
    %797 = arith.addf %792, %796 : vector<16x64xf32>
    %798 = arith.addf %749, %797 : vector<16x64xf32>
    %c0_275 = arith.constant 0 : index
    %c0_276 = arith.constant 0 : index
    %799 = vector.load %arg15[%c0_275, %c0_276] : memref<1x64xf32, #tpu.memory_space<vmem>>, vector<1x64xf32>
    %800 = vector.shape_cast %799 : vector<1x64xf32> to vector<64xf32>
    %c0_277 = arith.constant 0 : index
    %c0_278 = arith.constant 0 : index
    %801 = vector.load %arg16[%c0_277, %c0_278] : memref<1x64xf32, #tpu.memory_space<vmem>>, vector<1x64xf32>
    %802 = vector.shape_cast %801 : vector<1x64xf32> to vector<64xf32>
    %cst_279 = arith.constant dense<0.000000e+00> : vector<16xf32>
    %803 = vector.multi_reduction <add>, %798, %cst_279 [1] : vector<16x64xf32> to vector<16xf32>
    %804 = vector.shape_cast %803 : vector<16xf32> to vector<16x1xf32>
    %cst_280 = arith.constant 6.400000e+01 : f32
    %805 = vector.broadcast %cst_280 : f32 to vector<16x1xf32>
    %806 = arith.divf %804, %805 : vector<16x1xf32>
    %807 = vector.broadcast %806 : vector<16x1xf32> to vector<16x64xf32>
    %808 = arith.subf %798, %807 : vector<16x64xf32>
    %809 = arith.mulf %808, %808 : vector<16x64xf32>
    %cst_281 = arith.constant dense<0.000000e+00> : vector<16xf32>
    %810 = vector.multi_reduction <add>, %809, %cst_281 [1] : vector<16x64xf32> to vector<16xf32>
    %811 = vector.shape_cast %810 : vector<16xf32> to vector<16x1xf32>
    %cst_282 = arith.constant 6.400000e+01 : f32
    %812 = vector.broadcast %cst_282 : f32 to vector<16x1xf32>
    %813 = arith.divf %811, %812 : vector<16x1xf32>
    %814 = vector.broadcast %806 : vector<16x1xf32> to vector<16x64xf32>
    %815 = arith.subf %798, %814 : vector<16x64xf32>
    %cst_283 = arith.constant 9.99999974E-6 : f32
    %816 = vector.broadcast %cst_283 : f32 to vector<16x1xf32>
    %817 = arith.addf %813, %816 : vector<16x1xf32>
    %818 = math.rsqrt %817 : vector<16x1xf32>
    %819 = vector.broadcast %818 : vector<16x1xf32> to vector<16x64xf32>
    %820 = arith.mulf %815, %819 : vector<16x64xf32>
    %821 = vector.shape_cast %800 : vector<64xf32> to vector<1x64xf32>
    %822 = vector.broadcast %821 : vector<1x64xf32> to vector<16x64xf32>
    %823 = arith.mulf %820, %822 : vector<16x64xf32>
    %824 = vector.shape_cast %802 : vector<64xf32> to vector<1x64xf32>
    %825 = vector.broadcast %824 : vector<1x64xf32> to vector<16x64xf32>
    %826 = arith.addf %823, %825 : vector<16x64xf32>
    %827 = arith.truncf %826 : vector<16x64xf32> to vector<16x64xbf16>
    %c0_284 = arith.constant 0 : index
    %c0_285 = arith.constant 0 : index
    %828 = vector.load %arg17[%c0_284, %c0_285] : memref<64x128xbf16, #tpu.memory_space<vmem>>, vector<64x128xbf16>
    %cst_286 = arith.constant dense<0.000000e+00> : vector<16x128xf32>
    %829 = tpu.matmul %827, %828, %cst_286 {dimension_numbers = #tpu.dot_dimension_numbers<[1], [0], [0], [1], [0, 0, 1, 1], [], []>} : vector<16x64xbf16>, vector<64x128xbf16>, vector<16x128xf32> -> vector<16x128xf32>
    %c0_287 = arith.constant 0 : index
    %c0_288 = arith.constant 0 : index
    %830 = vector.load %arg18[%c0_287, %c0_288] : memref<1x128xf32, #tpu.memory_space<vmem>>, vector<1x128xf32>
    %831 = vector.shape_cast %830 : vector<1x128xf32> to vector<128xf32>
    %832 = vector.shape_cast %831 : vector<128xf32> to vector<1x128xf32>
    %833 = vector.broadcast %832 : vector<1x128xf32> to vector<16x128xf32>
    %834 = arith.addf %829, %833 : vector<16x128xf32>
    %c0_289 = arith.constant 0 : index
    %c0_290 = arith.constant 0 : index
    %835 = vector.load %arg19[%c0_289, %c0_290] : memref<16x128xf32, #tpu.memory_space<vmem>>, vector<16x128xf32>
    tpu.vector_store %arg19[%c0_289, %c0_290], %834 {strides = array<i32>} : memref<16x128xf32, #tpu.memory_space<vmem>>, vector<16x128xf32>,
    return
  }
  func.func @transform_0(%arg0: i32) -> (i32, i32) {
    %c0_i32 = arith.constant 0 : i32
    %c0_i32_0 = arith.constant 0 : i32
    %c0_i32_1 = arith.constant 0 : i32
    return %c0_i32, %c0_i32_0 : i32, i32
  }
  func.func @transform_1(%arg0: i32) -> (i32, i32) {
    %c0_i32 = arith.constant 0 : i32
    %c0_i32_0 = arith.constant 0 : i32
    %c0_i32_1 = arith.constant 0 : i32
    return %c0_i32, %c0_i32_0 : i32, i32
  }
  func.func @transform_2(%arg0: i32) -> (i32, i32) {
    %c0_i32 = arith.constant 0 : i32
    %c0_i32_0 = arith.constant 0 : i32
    %c0_i32_1 = arith.constant 0 : i32
    return %c0_i32, %c0_i32_0 : i32, i32
  }
  func.func @transform_3(%arg0: i32) -> (i32, i32, i32) {
    %c0_i32 = arith.constant 0 : i32
    %c0_i32_0 = arith.constant 0 : i32
    %c0_i32_1 = arith.constant 0 : i32
    %c0_i32_2 = arith.constant 0 : i32
    return %c0_i32, %c0_i32_0, %c0_i32_1 : i32, i32, i32
  }
  func.func @transform_4(%arg0: i32) -> (i32, i32, i32) {
    %c0_i32 = arith.constant 0 : i32
    %c0_i32_0 = arith.constant 0 : i32
    %c0_i32_1 = arith.constant 0 : i32
    %c0_i32_2 = arith.constant 0 : i32
    return %c0_i32, %c0_i32_0, %c0_i32_1 : i32, i32, i32
  }
  func.func @transform_5(%arg0: i32) -> (i32, i32, i32) {
    %c0_i32 = arith.constant 0 : i32
    %c0_i32_0 = arith.constant 0 : i32
    %c0_i32_1 = arith.constant 0 : i32
    %c0_i32_2 = arith.constant 0 : i32
    return %c0_i32, %c0_i32_0, %c0_i32_1 : i32, i32, i32
  }
  func.func @transform_6(%arg0: i32) -> (i32, i32, i32) {
    %c0_i32 = arith.constant 0 : i32
    %c0_i32_0 = arith.constant 0 : i32
    %c0_i32_1 = arith.constant 0 : i32
    %c0_i32_2 = arith.constant 0 : i32
    return %c0_i32, %c0_i32_0, %c0_i32_1 : i32, i32, i32
  }
  func.func @transform_7(%arg0: i32) -> (i32, i32) {
    %c0_i32 = arith.constant 0 : i32
    %c0_i32_0 = arith.constant 0 : i32
    %c0_i32_1 = arith.constant 0 : i32
    return %c0_i32, %c0_i32_0 : i32, i32
  }
  func.func @transform_8(%arg0: i32) -> (i32, i32) {
    %c0_i32 = arith.constant 0 : i32
    %c0_i32_0 = arith.constant 0 : i32
    %c0_i32_1 = arith.constant 0 : i32
    return %c0_i32, %c0_i32_0 : i32, i32
  }
  func.func @transform_9(%arg0: i32) -> (i32, i32) {
    %c0_i32 = arith.constant 0 : i32
    %c0_i32_0 = arith.constant 0 : i32
    %c0_i32_1 = arith.constant 0 : i32
    return %c0_i32, %c0_i32_0 : i32, i32
  }
  func.func @transform_10(%arg0: i32) -> (i32, i32, i32) {
    %c0_i32 = arith.constant 0 : i32
    %c0_i32_0 = arith.constant 0 : i32
    %c0_i32_1 = arith.constant 0 : i32
    %c0_i32_2 = arith.constant 0 : i32
    return %c0_i32, %c0_i32_0, %c0_i32_1 : i32, i32, i32
  }
  func.func @transform_11(%arg0: i32) -> (i32, i32) {
    %c0_i32 = arith.constant 0 : i32
    %c0_i32_0 = arith.constant 0 : i32
    %c0_i32_1 = arith.constant 0 : i32
    return %c0_i32, %c0_i32_0 : i32, i32
  }
  func.func @transform_12(%arg0: i32) -> (i32, i32, i32) {
    %c0_i32 = arith.constant 0 : i32
    %c0_i32_0 = arith.constant 0 : i32
    %c0_i32_1 = arith.constant 0 : i32
    %c0_i32_2 = arith.constant 0 : i32
    return %c0_i32, %c0_i32_0, %c0_i32_1 : i32, i32, i32
  }
  func.func @transform_13(%arg0: i32) -> (i32, i32) {
    %c0_i32 = arith.constant 0 : i32
    %c0_i32_0 = arith.constant 0 : i32
    %c0_i32_1 = arith.constant 0 : i32
    return %c0_i32, %c0_i32_0 : i32, i32
  }
  func.func @transform_14(%arg0: i32) -> (i32, i32) {
    %c0_i32 = arith.constant 0 : i32
    %c0_i32_0 = arith.constant 0 : i32
    %c0_i32_1 = arith.constant 0 : i32
    return %c0_i32, %c0_i32_0 : i32, i32
  }
  func.func @transform_15(%arg0: i32) -> (i32, i32) {
    %c0_i32 = arith.constant 0 : i32
    %c0_i32_0 = arith.constant 0 : i32
    %c0_i32_1 = arith.constant 0 : i32
    return %c0_i32, %c0_i32_0 : i32, i32
  }
  func.func @transform_16(%arg0: i32) -> (i32, i32) {
    %c0_i32 = arith.constant 0 : i32
    %c0_i32_0 = arith.constant 0 : i32
    %c0_i32_1 = arith.constant 0 : i32
    return %c0_i32, %c0_i32_0 : i32, i32
  }
  func.func @transform_17(%arg0: i32) -> (i32, i32) {
    %c0_i32 = arith.constant 0 : i32
    %c0_i32_0 = arith.constant 0 : i32
    %c0_i32_1 = arith.constant 0 : i32
    return %c0_i32, %c0_i32_0 : i32, i32
  }
  func.func @transform_18(%arg0: i32) -> (i32, i32) {
    %c0_i32 = arith.constant 0 : i32
    %c0_i32_0 = arith.constant 0 : i32
    %c0_i32_1 = arith.constant 0 : i32
    return %c0_i32, %c0_i32_0 : i32, i32
  }
}

</mosaic_0001>

<bundles_post_ra>
// kernel: tpu_custom_call.1
= control target key start
LH: loop header
LB: loop body
LE: loop exit
PB: predicated region body
PF: predicated region fallthrough
CT: control target
= control target key end

     0   :  { %s10448_s0 = inlined_call_operand.hbm [shape: f32[16,64], index: 0, kind: input, shape index: {}]   ;;  %s10449_s1 = inlined_call_operand.hbm [shape: f32[4,64], index: 1, kind: input, shape index: {}]   ;;  %s10450_s2 = inlined_call_operand.hbm [shape: f32[4,64], index: 2, kind: input, shape index: {}]   ;;  %s10451_s3 = inlined_call_operand.vmem [shape: bf16[4,64,64], index: 3, kind: input, shape index: {}]   ;;  %s10452_s4 = inlined_call_operand.vmem [shape: bf16[4,64,64], index: 4, kind: input, shape index: {}]   ;;  %s10453_s5 = inlined_call_operand.vmem [shape: bf16[4,64,64], index: 5, kind: input, shape index: {}]   ;;  %s10454_s6 = inlined_call_operand.vmem [shape: bf16[4,64,64], index: 6, kind: input, shape index: {}]   ;;  %s10455_s7 = inlined_call_operand.hbm [shape: f32[4,64], index: 7, kind: input, shape index: {}]   ;;  %s10456_s8 = inlined_call_operand.hbm [shape: f32[4,64], index: 8, kind: input, shape index: {}]   ;;  %s10457_s9 = inlined_call_operand.hbm [shape: f32[4,64], index: 9, kind: input, shape index: {}]   ;;  %s10458_s10 = inlined_call_operand.vmem [shape: bf16[4,64,256], index: 10, kind: input, shape index: {}]   ;;  %s10459_s11 = inlined_call_operand.hbm [shape: f32[4,256], index: 11, kind: input, shape index: {}]   ;;  %s10460_s12 = inlined_call_operand.vmem [shape: bf16[4,256,64], index: 12, kind: input, shape index: {}]   ;;  %s10461_s13 = inlined_call_operand.vmem [shape: f32[4,64], index: 13, kind: input, shape index: {}]   ;;  %s10462_s14 = inlined_call_operand.vmem [shape: f32[1,64], index: 14, kind: input, shape index: {}]   ;;  %s10463_s15 = inlined_call_operand.vmem [shape: f32[1,64], index: 15, kind: input, shape index: {}]   ;;  %s10464_s16 = inlined_call_operand.vmem [shape: bf16[64,128], index: 16, kind: input, shape index: {}]   ;;  %s10465_s17 = inlined_call_operand.vmem [shape: f32[1,128], index: 17, kind: input, shape index: {}]   ;;  %s10466_s18 = inlined_call_operand.hbm [shape: f32[16,128], index: 18, kind: output, shape index: {}]  }
   0x1   :  { %10471 = sst [smem:[#allocation20_spill]] %s10448_s0 }
   0x2   :  { %10472 = sst [smem:[#allocation21_spill]] %s10449_s1 }
   0x3   :  { %10473 = sst [smem:[#allocation22_spill]] %s10450_s2 }
   0x4   :  { %10474 = sst [smem:[#allocation23_spill]] %s10466_s18 }
   0x5   :  { %23 = vsyncpa [#allocation3], 0 }
   0x6   :  { %24 = vsyncpa [#allocation6], 0 }
   0x7   :  { %25 = vsyncpa [#allocation9], 0 }
   0x8   :  { %26 = vsyncpa [#allocation12], 0 }
   0x9   :  { %27 = vsyncpa [#allocation4], 0  ;;  %s8731_s27 = smov [#allocation5]   ;;  %s8732_s29 = smov [#allocation8]  }
   0xa   :  { %s46_s28 = sshll.u32 %s8731_s27, 4  ;;  %s74_s30 = sshll.u32 %s8732_s29, 4  ;;  %s47_s28 = int_to_ptr.vmem [resolvable:$true] %s46_s28  ;;  %s75_s30 = int_to_ptr.vmem [resolvable:$true] %s74_s30 }
   0xb   :  { %s10475_s1 = sld [smem:[#allocation21_spill]] }
  0x11   :  { %s8545_s20 = scalar_lea.hbm %s10475_s1, 64 }
  0x12   :  { %p8546_p0 = scmp.ne.s32.totalorder %s10475_s1, %s8545_s20  ;;  %p8549_p1 = scmp.lt.u32.totalorder %s8545_s20, %s10475_s1 }
  0x14   :  { %p8551_p2 = pnand %p8549_p1, %p8546_p0 }
  0x16   :  { %8554 = shalt.err (!%p8551_p2)
}
  0x17   :  { %s8555_s24 = scalar_lea.vmem %s47_s28, 64  ;;  %p8560_p4 = scmp.lt.s32.totalorder %s47_s28, %s47_s28 }
  0x18   :  { %p8556_p3 = scmp.ne.s32.totalorder %s47_s28, %s8555_s24  ;;  %p8561_p5 = scmp.lt.s32.totalorder %s8555_s24, %s8555_s24 }
  0x1a   :  { %p8562_p6 = por %p8561_p5, %p8560_p4 }
  0x1c   :  { %p8563_p7 = pnand %p8562_p6, %p8556_p3 }
  0x1e   :  { %8566 = shalt.err (!%p8563_p7)
}
  0x1f   :  { %49 = dma.hbm_to_vmem [thread:$0]  %s10475_s1, 64, %s47_s28, [#allocation6]  }
  0x20   :  { %s8567_s0 = scalar_lea.hbm %s10455_s7, 64 }
  0x21   :  { %p8568_p8 = scmp.ne.s32.totalorder %s10455_s7, %s8567_s0  ;;  %p8571_p9 = scmp.lt.u32.totalorder %s8567_s0, %s10455_s7 }
  0x23   :  { %p8573_p10 = pnand %p8571_p9, %p8568_p8 }
  0x25   :  { %8576 = shalt.err (!%p8573_p10)
}
  0x26   :  { %s8577_s2 = scalar_lea.vmem %s75_s30, 64  ;;  %p8582_p12 = scmp.lt.s32.totalorder %s75_s30, %s75_s30 }
  0x27   :  { %p8578_p11 = scmp.ne.s32.totalorder %s75_s30, %s8577_s2  ;;  %p8583_p13 = scmp.lt.s32.totalorder %s8577_s2, %s8577_s2 }
  0x29   :  { %p8584_p0 = por %p8583_p13, %p8582_p12 }
  0x2b   :  { %p8585_p1 = pnand %p8584_p0, %p8578_p11 }
  0x2d   :  { %8588 = shalt.err (!%p8585_p1)
}
  0x2e   :  { %77 = dma.hbm_to_vmem [thread:$0]  %s10455_s7, 64, %s75_s30, [#allocation9]  }
  0x2f   :  { %s8733_s23 = smov [#allocation11]   ;;  %s8734_s25 = smov [#allocation2]  }
  0x30   :  { %s94_s24 = sshll.u32 %s8733_s23, 4  ;;  %s33_s26 = sshll.u32 %s8734_s25, 4  ;;  %s95_s24 = int_to_ptr.vmem [resolvable:$true] %s94_s24  ;;  %s8870_s26 = int_to_ptr.vmem [resolvable:$true] %s33_s26 }
  0x31   :  { %s8589_s0 = scalar_lea.hbm %s10457_s9, 64 }
  0x32   :  { %p8590_p2 = scmp.ne.s32.totalorder %s10457_s9, %s8589_s0  ;;  %p8593_p3 = scmp.lt.u32.totalorder %s8589_s0, %s10457_s9 }
  0x34   :  { %p8595_p4 = pnand %p8593_p3, %p8590_p2 }
  0x36   :  { %8598 = shalt.err (!%p8595_p4)
}
  0x37   :  { %s8599_s7 = scalar_lea.vmem %s95_s24, 64  ;;  %p8604_p6 = scmp.lt.s32.totalorder %s95_s24, %s95_s24 }
  0x38   :  { %p8600_p5 = scmp.ne.s32.totalorder %s95_s24, %s8599_s7  ;;  %p8605_p7 = scmp.lt.s32.totalorder %s8599_s7, %s8599_s7 }
  0x3a   :  { %p8606_p8 = por %p8605_p7, %p8604_p6 }
  0x3c   :  { %p8607_p9 = pnand %p8606_p8, %p8600_p5 }
  0x3e   :  { %8610 = shalt.err (!%p8607_p9)
}
  0x3f   :  { %97 = dma.hbm_to_vmem [thread:$0]  %s10457_s9, 64, %s95_s24, [#allocation12]  }
  0x40   :  { %s10476_s23 = sld [smem:[#allocation20_spill]] }
  0x46   :  { %s8611_s25 = scalar_lea.hbm %s10476_s23, 256 }
  0x47   :  { %p8612_p10 = scmp.ne.s32.totalorder %s10476_s23, %s8611_s25  ;;  %p8615_p11 = scmp.lt.u32.totalorder %s8611_s25, %s10476_s23 }
  0x49   :  { %p8617_p12 = pnand %p8615_p11, %p8612_p10 }
  0x4b   :  { %8620 = shalt.err (!%p8617_p12)
}
  0x4c   :  { %s8621_s21 = scalar_lea.vmem %s8870_s26, 256  ;;  %p8626_p0 = scmp.lt.s32.totalorder %s8870_s26, %s8870_s26 }
  0x4d   :  { %p8622_p13 = scmp.ne.s32.totalorder %s8870_s26, %s8621_s21  ;;  %p8627_p1 = scmp.lt.s32.totalorder %s8621_s21, %s8621_s21 }
  0x4f   :  { %p8628_p2 = por %p8627_p1, %p8626_p0 }
  0x51   :  { %p8629_p3 = pnand %p8628_p2, %p8622_p13 }
  0x53   :  { %8632 = shalt.err (!%p8629_p3)
}
  0x54   :  { %s8735_s9 = smov 128   ;;  %s8736_s24 = smov 8  }
  0x55   :  { %39 = dma.hbm_to_vmem [thread:$0]  %s10476_s23, 256, %s8870_s26, [#allocation3], %s8735_s9, %s8735_s9, %s8736_s24  }
  0x56   :  { %s8737_s7 = smov [#allocation7]   ;;  %s8738_s2 = smov [#allocation10]  }
  0x57   :  { %s56_s30 = sshll.u32 %s8737_s7, 4  ;;  %s84_s28 = sshll.u32 %s8738_s2, 4  ;;  %s57_s30 = int_to_ptr.vmem [resolvable:$true] %s56_s30  ;;  %s85_s28 = int_to_ptr.vmem [resolvable:$true] %s84_s28 }
  0x58   :  { %s10477_s27 = sld [smem:[#allocation22_spill]] }
  0x5e   :  { %s8633_s29 = scalar_lea.hbm %s10477_s27, 64 }
  0x5f   :  { %p8634_p4 = scmp.ne.s32.totalorder %s10477_s27, %s8633_s29  ;;  %p8637_p5 = scmp.lt.u32.totalorder %s8633_s29, %s10477_s27 }
  0x61   :  { %p8639_p6 = pnand %p8637_p5, %p8634_p4 }
  0x63   :  { %8642 = shalt.err (!%p8639_p6)
}
  0x64   :  { %s8643_s26 = scalar_lea.vmem %s57_s30, 64  ;;  %p8648_p8 = scmp.lt.s32.totalorder %s57_s30, %s57_s30 }
  0x65   :  { %p8644_p7 = scmp.ne.s32.totalorder %s57_s30, %s8643_s26  ;;  %p8649_p9 = scmp.lt.s32.totalorder %s8643_s26, %s8643_s26 }
  0x67   :  { %p8650_p10 = por %p8649_p9, %p8648_p8 }
  0x69   :  { %p8651_p11 = pnand %p8650_p10, %p8644_p7 }
  0x6b   :  { %8654 = shalt.err (!%p8651_p11)
}
  0x6c   :  { %59 = dma.hbm_to_vmem [thread:$0]  %s10477_s27, 64, %s57_s30, [#allocation6]  }
  0x6d   :  { %s8655_s2 = scalar_lea.hbm %s10456_s8, 64 }
  0x6e   :  { %p8656_p12 = scmp.ne.s32.totalorder %s10456_s8, %s8655_s2  ;;  %p8659_p13 = scmp.lt.u32.totalorder %s8655_s2, %s10456_s8 }
  0x70   :  { %p8661_p0 = pnand %p8659_p13, %p8656_p12 }
  0x72   :  { %8664 = shalt.err (!%p8661_p0)
}
  0x73   :  { %s8665_s0 = scalar_lea.vmem %s85_s28, 64  ;;  %p8670_p2 = scmp.lt.s32.totalorder %s85_s28, %s85_s28 }
  0x74   :  { %p8666_p1 = scmp.ne.s32.totalorder %s85_s28, %s8665_s0  ;;  %p8671_p3 = scmp.lt.s32.totalorder %s8665_s0, %s8665_s0 }
  0x76   :  { %p8672_p4 = por %p8671_p3, %p8670_p2 }
  0x78   :  { %p8673_p5 = pnand %p8672_p4, %p8666_p1 }
  0x7a   :  { %8676 = shalt.err (!%p8673_p5)
}
  0x7b   :  { %87 = dma.hbm_to_vmem [thread:$0]  %s10456_s8, 64, %s85_s28, [#allocation9]  }
  0x7c   :  { %s8739_s19 = smov [#allocation13]   ;;  %s8677_s20 = scalar_lea.hbm %s10459_s11, 128 }
  0x7d   :  { %s106_s21 = sshll.u32 %s8739_s19, 4  ;;  %p8678_p6 = scmp.ne.s32.totalorder %s10459_s11, %s8677_s20  ;;  %s107_s21 = int_to_ptr.vmem [resolvable:$true] %s106_s21 }
  0x7e   :  { %p8681_p7 = scmp.lt.u32.totalorder %s8677_s20, %s10459_s11 }
  0x80   :  { %p8683_p8 = pnand %p8681_p7, %p8678_p6 }
  0x82   :  { %8686 = shalt.err (!%p8683_p8)
}
  0x83   :  { %s8687_s18 = scalar_lea.vmem %s107_s21, 128  ;;  %p8692_p10 = scmp.lt.s32.totalorder %s107_s21, %s107_s21 }
  0x84   :  { %p8688_p9 = scmp.ne.s32.totalorder %s107_s21, %s8687_s18  ;;  %p8693_p11 = scmp.lt.s32.totalorder %s8687_s18, %s8687_s18 }
  0x86   :  { %p8694_p12 = por %p8693_p11, %p8692_p10 }
  0x88   :  { %p8695_p13 = pnand %p8694_p12, %p8688_p9 }
  0x8a   :  { %8698 = shalt.err (!%p8695_p13)
}
  0x8b   :  { %109 = dma.hbm_to_vmem [thread:$0]  %s10459_s11, 128, %s107_s21, [#allocation12]  }
  0x8c   :  { %8721 = dma.done.wait [#allocation3], 256  }
  0x8d   :  { %8722 = vsyncadd [#allocation3], 4294967040 }
  0x8e   :  { %8723 = dma.done.wait [#allocation6], 128  }
  0x8f   :  { %8724 = vsyncadd [#allocation6], 4294967168 }
  0x90   :  { %8725 = dma.done.wait [#allocation9], 128  }
  0x91   :  { %8726 = vsyncadd [#allocation9], 4294967168 }
  0x92   :  { %8727 = dma.done.wait [#allocation12], 192  }
  0x93   :  { %8728 = vsyncadd [#allocation12], 4294967104  ;;  %vm154_vm0 = vcmask 523264   ;;  %v144_v0 = vld [vmem:[#allocation2] sm:$0xff]  ;;  %v145_v1 = vld [vmem:[#allocation2 + $0x8] sm:$0xff]  ;;  %v8740_v16 = vmov 0.0  }
  0x94   :  { %v155_v2 = vsel %vm154_vm0, %v144_v0, 0.0  ;;  %v158_v3 = vsel %vm154_vm0, %v145_v1, 0.0  ;;  %v8199_v14 = vld [vmem:[%s10451_s3] sm:$0xff]   ;;  %7531 = vmatprep.subr.bf16.mxu0 %v8740_v16  ;;  %7543 = vmatprep.subr.bf16.mxu1 %v8740_v16  ;;  %v8201_v17 = vld [vmem:[%s10451_s3 + $0x8] sm:$0xff]   ;;  %vm8741_vm1 = vmmov 0   ;;  %v8203_v19 = vld [vmem:[%s10451_s3 + $0x10] sm:$0xff]  }
  0x95   :  { %156 = vadd.xlane.f32.xlu0 %v155_v2  ;;  %v8200_v15 = vld [vmem:[%s10452_s4] sm:$0xff]   ;;  %7532 = vmatpush3.bf16.msra.mxu0 %v8199_v14  ;;  %v8202_v18 = vld [vmem:[%s10452_s4 + $0x8] sm:$0xff]   ;;  %v8204_v20 = vld [vmem:[%s10452_s4 + $0x10] sm:$0xff]   ;;  %vm423_vm2 = vcmask 130048   ;;  %vm548_vm3 = vcmask 1043456   ;;  %vm520_vm5 = vcmask 64512  }
  0x96   :  { %7544 = vmatpush3.bf16.msra.mxu1 %v8200_v15  ;;  %7533 = vmatprep.subr.bf16.mxu0 %v8740_v16  ;;  %v8205_v21 = vld [vmem:[%s10451_s3 + $0x18] sm:$0xff]   ;;  %v6738_v31 = vld [vmem:[#allocation5] ss:$0 sm:$0xff]  ;;  %v6739_v35 = vld [vmem:[#allocation7] ss:$0 sm:$0xff]  ;;  %s8743_s19 = smov 112  }
  0x97   :  { %7545 = vmatprep.subr.bf16.mxu1 %v8740_v16  ;;  %7539 = vmatprep.mubr.msk.bf16.mxu0 %vm8741_vm1, %v8740_v16  ;;  %v8206_v22 = vld [vmem:[%s10452_s4 + $0x18] sm:$0xff]   ;;  %v8207_v39 = vld [vmem:[%s10453_s5] sm:$0xff]   ;;  %v8208_v41 = vld [vmem:[%s10453_s5 + $0x8] sm:$0xff]   ;;  %s8744_s21 = smov 96   ;;  %s8745_s26 = smov 80   ;;  %vm1342_vm6 = vcmask 261120  }
  0x98   :  { %7551 = vmatprep.mubr.msk.bf16.mxu1 %vm8741_vm1, %v8740_v16  ;;  %v8209_v42 = vld [vmem:[%s10453_s5 + $0x10] sm:$0xff]   ;;  %v8210_v43 = vld [vmem:[%s10453_s5 + $0x18] sm:$0xff]   ;;  %s8746_s23 = smov 16   ;;  %s8747_s20 = smov 32   ;;  %vm1345_vm7 = vcmask 392192  }
  0x99   :  { %159 = vadd.xlane.f32.xlu0 %v158_v3  ;;  %7534 = vmatpush3.bf16.msra.mxu0 %v8201_v17  ;;  %s8748_s25 = smov 48  }
  0x9a   :  { %7546 = vmatpush3.bf16.msra.mxu1 %v8202_v18  ;;  %7535 = vmatprep.subr.bf16.mxu0 %v8740_v16 }
  0x9b   :  { %7547 = vmatprep.subr.bf16.mxu1 %v8740_v16 }
  0x9d   :  { %7536 = vmatpush3.bf16.msra.mxu0 %v8203_v19 }
  0x9e   :  { %7548 = vmatpush3.bf16.msra.mxu1 %v8204_v20  ;;  %7537 = vmatprep.subr.bf16.mxu0 %v8740_v16 }
  0x9f   :  { %7549 = vmatprep.subr.bf16.mxu1 %v8740_v16 }
  0xa1   :  { %7538 = vmatpush3.bf16.msra.mxu0 %v8205_v21 }
  0xa2   :  { %7550 = vmatpush3.bf16.msra.mxu1 %v8206_v22  ;;  %7555 = vmatprep.subr.bf16.mxu0 %v8740_v16 }
  0xa3   :  { %7567 = vmatprep.subr.bf16.mxu1 %v8740_v16 }
 0x122   :  { %v157_v4 = vpop.xlane.xlu0 %156 }
 0x123   :  { %v162_v5 = vmul.f32 0.015625, %v157_v4  ;;  %v8742_v4 = vmov -1e+30  }
 0x125   :  { %v164_v6 = vsub.f32 %v144_v0, %v162_v5  ;;  %v146_v0 = vlaneseq }
 0x126   :  { %v160_v7 = vpop.xlane.xlu0 %159 }
 0x127   :  { %v163_v8 = vmul.f32 0.015625, %v160_v7  ;;  %v166_v9 = vmul.f32 %v164_v6, %v164_v6  ;;  %v149_v2 = vand.u32 127, %v146_v0 }
 0x129   :  { %v165_v10 = vsub.f32 %v145_v1, %v163_v8  ;;  %v168_v11 = vsel %vm154_vm0, %v166_v9, 0.0  ;;  %v9034_v1 = vshrl.u32 %v146_v0, 7 }
 0x12a   :  { %169 = vadd.xlane.f32.xlu1 %v168_v11 }
 0x12b   :  { %v167_v12 = vmul.f32 %v165_v10, %v165_v10  ;;  %vm150_vm4 = vcmp.le.s32.totalorder %v149_v2, %v9034_v1 }
 0x12c   :  { %v9037_v5 = vsel %vm150_vm4, 0.0, %v8742_v4 }
 0x12d   :  { %v171_v13 = vsel %vm154_vm0, %v167_v12, 0.0 }
 0x12e   :  { %172 = vadd.xlane.f32.xlu1 %v171_v13 }
 0x1b7   :  { %v170_v23 = vpop.xlane.xlu1 %169 }
 0x1b8   :  { %v174_v24 = vmul.f32 0.015625, %v170_v23 }
 0x1ba   :  { %v176_v25 = vadd.f32 1e-05, %v174_v24 }
 0x1bb   :  { %v173_v26 = vpop.xlane.xlu1 %172 }
 0x1bc   :  { %8379 = vrsqrt.f32 %v176_v25  ;;  %v175_v27 = vmul.f32 0.015625, %v173_v26 }
 0x1be   :  { %v177_v28 = vadd.f32 1e-05, %v175_v27 }
 0x1c0   :  { %8381 = vrsqrt.f32 %v177_v28 }
 0x1c6   :  { %v8380_v29 = vpop.eup %8379 }
 0x1c7   :  { %v180_v30 = vmul.f32 %v8380_v29, %v164_v6 }
 0x1c9   :  { %v186_v34 = vmul.f32 %v6738_v31, %v180_v30 }
 0x1ca   :  { %v8382_v32 = vpop.eup %8381 }
 0x1cb   :  { %v181_v33 = vmul.f32 %v8382_v32, %v165_v10  ;;  %v192_v37 = vadd.f32 %v6739_v35, %v186_v34 }
 0x1cd   :  { %v187_v36 = vmul.f32 %v6738_v31, %v181_v33 }
 0x1cf   :  { %v193_v38 = vadd.f32 %v6739_v35, %v187_v36 }
 0x1d1   :  { %v194_v40 = vpack.c.bf16 %v193_v38, %v192_v37 }
 0x1d3   :  { %7540 = vmatmul.mubr.msk.bf16.vlgmr.msra.gmra.mrb[0].mxu0 %vm154_vm0, %v194_v40  ;;  %7552 = vmatmul.mubr.msk.bf16.vlgmr.msra.gmra.mrb[0].mxu1 %vm154_vm0, %v194_v40 }
 0x1d4   :  { %7556 = vmatpush3.bf16.msra.mxu0 %v8207_v39  ;;  %7563 = vmatprep.mubr.msk.bf16.mxu0 %vm8741_vm1, %v8740_v16 }
 0x1d5   :  { %7557 = vmatprep.subr.bf16.mxu0 %v8740_v16  ;;  %7569 = vmatprep.mubr.msk.bf16.mxu1 %vm8741_vm1, %v8740_v16 }
 0x1d8   :  { %7558 = vmatpush3.bf16.msra.mxu0 %v8208_v41 }
 0x1d9   :  { %7559 = vmatprep.subr.bf16.mxu0 %v8740_v16 }
 0x1dc   :  { %7560 = vmatpush3.bf16.msra.mxu0 %v8209_v42 }
 0x1dd   :  { %7561 = vmatprep.subr.bf16.mxu0 %v8740_v16 }
 0x1e0   :  { %7562 = vmatpush3.bf16.msra.mxu0 %v8210_v43 }
 0x1e1   :  { %7591 = vmatprep.subr.bf16.mxu0 %v8740_v16 }
 0x1e3   :  { %7564 = vmatmul.mubr.msk.bf16.vlgmr.msra.gmra.mrb[4].mxu0 %vm154_vm0, %v194_v40 }
 0x1e4   :  { %7593 = vmatprep.mubr.msk.bf16.mxu0 %vm8741_vm1, %v8740_v16 }
 0x2a6   :  { %v264_v44 = vpop.f32.mrb[0].mxu0  ;;  %v337_v45 = vpop.f32.mrb[0].mxu1 }
 0x2a7   :  { %v9007_v46 = vpack.c.bf16 %v337_v45, %v337_v45  ;;  %v7541_v47 = vpop.f32.mrb[1].mxu0  ;;  %v7553_v48 = vpop.f32.mrb[1].mxu1  ;;  %v9014_v55 = vpack.c.bf16 %v264_v44, %v264_v44 }
 0x2a8   :  { %v267_v49 = vpop.f32.mrb[2].mxu0  ;;  %v340_v50 = vpop.f32.mrb[2].mxu1 }
 0x2a9   :  { %v7542_v51 = vpop.f32.mrb[3].mxu0  ;;  %v7554_v52 = vpop.f32.mrb[3].mxu1  ;;  %v428_v53 = vsel %vm423_vm2, %v9007_v46, 0  ;;  %v9012_v54 = vpack.c.bf16 %v340_v50, %v340_v50  ;;  %v9023_v58 = vpack.c.bf16 %v267_v49, %v267_v49 }
 0x2aa   :  { %7568 = vmatpush3.bf16.xpose.msra.mxu1 %v428_v53 }
 0x2ab   :  { %7573 = vmatprep.subr.bf16.mxu1 %v8740_v16  ;;  %v474_v56 = vsel %vm423_vm2, %v9012_v54, 0 }
 0x2b1   :  { %7570 = vmatmul.mubr.msk.bf16.vlgmr.msra.gmra.mrb[4].mxu1 %vm423_vm2, %v9014_v55 }
 0x2b2   :  { %7574 = vmatpush3.bf16.xpose.msra.mxu1 %v474_v56  ;;  %7575 = vmatprep.mubr.msk.bf16.mxu1 %vm8741_vm1, %v8740_v16 }
 0x2b3   :  { %7579 = vmatprep.subr.bf16.mxu1 %v8740_v16 }
 0x2b6   :  { %v410_v57 = vpop.f32.mrb[4].mxu0 }
 0x2b7   :  { %v9025_v59 = vpack.c.bf16 %v410_v57, %v410_v57  ;;  %v7565_v60 = vpop.f32.mrb[5].mxu0 }
 0x2b8   :  { %v413_v61 = vpop.f32.mrb[6].mxu0 }
 0x2b9   :  { %v7566_v62 = vpop.f32.mrb[7].mxu0  ;;  %7576 = vmatmul.mubr.msk.bf16.vlgmr.msra.gmra.mrb[8].mxu1 %vm423_vm2, %v9023_v58  ;;  %v550_v63 = vsel %vm548_vm3, %v9025_v59, 0  ;;  %v9055_v36 = vpack.c.bf16 %v413_v61, %v413_v61 }
 0x2ba   :  { %7580 = vmatpush3.bf16.msra.mxu1 %v550_v63  ;;  %7581 = vmatprep.mubr.msk.bf16.mxu1 %vm8741_vm1, %v8740_v16 }
 0x2bb   :  { %7585 = vmatprep.subr.bf16.mxu1 %v8740_v16  ;;  %v596_v40 = vsel %vm548_vm3, %v9055_v36, 0 }
 0x384   :  { %v464_v3 = vpop.f32.mrb[4].mxu1 }
 0x385   :  { %v516_v6 = vmul.f32 0.5, %v464_v3  ;;  %v7571_v7 = vpop.f32.mrb[5].mxu1 }
 0x386   :  { %v467_v8 = vpop.f32.mrb[6].mxu1 }
 0x387   :  { %v7572_v9 = vpop.f32.mrb[7].mxu1  ;;  %v518_v10 = vadd.f32 %v516_v6, %v9037_v5 }
 0x389   :  { %v521_v11 = vsel %vm520_vm5, %v518_v10, -inf }
 0x38a   :  { %522 = vmax.xlane.f32.xlu0 %v521_v11 }
 0x38c   :  { %v510_v12 = vpop.f32.mrb[8].mxu1 }
 0x38d   :  { %v517_v13 = vmul.f32 0.5, %v510_v12  ;;  %v7577_v14 = vpop.f32.mrb[9].mxu1 }
 0x38e   :  { %v513_v15 = vpop.f32.mrb[10].mxu1 }
 0x38f   :  { %v7578_v17 = vpop.f32.mrb[11].mxu1  ;;  %v519_v18 = vadd.f32 %v517_v13, %v9037_v5 }
 0x391   :  { %v524_v19 = vsel %vm520_vm5, %v519_v18, -inf }
 0x392   :  { %525 = vmax.xlane.f32.xlu1 %v524_v19 }
 0x3a3   :  { %694 = vrot.lane.b32.xlu1 %v9012_v54, %s8743_s19 }
 0x417   :  { %v523_v20 = vpop.xlane.xlu0 %522 }
 0x418   :  { %v527_v21 = vsub.f32 %v518_v10, %v523_v20 }
 0x41a   :  { %v529_v22 = vmul.f32 1.442695, %v527_v21 }
 0x41c   :  { %8383 = vpow2.f32 %v529_v22 }
 0x41f   :  { %v526_v23 = vpop.xlane.xlu1 %525 }
 0x420   :  { %v528_v24 = vsub.f32 %v519_v18, %v526_v23 }
 0x422   :  { %v531_v25 = vmul.f32 1.442695, %v528_v24 }
 0x423   :  { %v695_v31 = vpop.permute.xlu1 %694 }
 0x424   :  { %8385 = vpow2.f32 %v531_v25  ;;  %v700_v44 = vsel %vm423_vm2, %v695_v31, 0 }
 0x426   :  { %v8384_v26 = vpop.eup %8383 }
 0x427   :  { %v533_v27 = vsel %vm520_vm5, %v8384_v26, 0.0 }
 0x428   :  { %534 = vadd.xlane.f32.xlu0 %v533_v27 }
 0x42e   :  { %v8386_v28 = vpop.eup %8385 }
 0x42f   :  { %v536_v29 = vsel %vm520_vm5, %v8386_v28, 0.0 }
 0x430   :  { %537 = vadd.xlane.f32.xlu1 %v536_v29 }
 0x43e   :  { %642 = vrot.lane.b32.xlu0 %v9007_v46, %s8743_s19 }
 0x441   :  { %639 = vrot.lane.b32.xlu1 %v9014_v55, %s8743_s19 }
 0x445   :  { %691 = vrot.lane.b32.xlu1 %v9023_v58, %s8743_s19 }
 0x4b5   :  { %v535_v30 = vpop.xlane.xlu0 %534 }
 0x4b6   :  { %8387 = vrcp.f32 %v535_v30 }
 0x4b9   :  { %v643_v32 = vpop.permute.xlu0 %642 }
 0x4ba   :  { %v648_v33 = vsel %vm423_vm2, %v643_v32, 0 }
 0x4bb   :  { %7592 = vmatpush3.bf16.xpose.msra.mxu0 %v648_v33 }
 0x4bc   :  { %7603 = vmatprep.subr.bf16.mxu0 %v8740_v16 }
 0x4bd   :  { %v538_v34 = vpop.xlane.xlu1 %537 }
 0x4be   :  { %8389 = vrcp.f32 %v538_v34 }
 0x4c0   :  { %v8388_v35 = vpop.eup %8387 }
 0x4c1   :  { %v640_v37 = vpop.permute.xlu1 %639  ;;  %v541_v38 = vmul.f32 %v8388_v35, %v8384_v26 }
 0x4c2   :  { %7594 = vmatmul.mubr.msk.bf16.vlgmr.msra.gmra.mrb[8].mxu0 %vm423_vm2, %v640_v37 }
 0x4c3   :  { %v543_v39 = vpack.c.bf16 %v541_v38, %v541_v38  ;;  %7605 = vmatprep.mubr.msk.bf16.mxu0 %vm8741_vm1, %v8740_v16 }
 0x4c5   :  { %7582 = vmatmul.mubr.msk.bf16.vlgmr.msra.gmra.mrb[12].mxu1 %vm520_vm5, %v543_v39  ;;  %v692_v45 = vpop.permute.xlu1 %691 }
 0x4c6   :  { %7586 = vmatpush3.bf16.msra.mxu1 %v596_v40  ;;  %7587 = vmatprep.mubr.msk.bf16.mxu1 %vm8741_vm1, %v8740_v16 }
 0x4c7   :  { %7597 = vmatprep.subr.bf16.mxu1 %v8740_v16 }
 0x4c8   :  { %v8390_v41 = vpop.eup %8389 }
 0x4c9   :  { %v542_v42 = vmul.f32 %v8390_v41, %v8386_v28 }
 0x4cb   :  { %v544_v43 = vpack.c.bf16 %v542_v42, %v542_v42 }
 0x4cd   :  { %7588 = vmatmul.mubr.msk.bf16.vlgmr.msra.gmra.mrb[16].mxu1 %vm520_vm5, %v544_v43 }
 0x4ce   :  { %7599 = vmatprep.mubr.msk.bf16.mxu1 %vm8741_vm1, %v8740_v16 }
 0x4cf   :  { %7598 = vmatpush3.bf16.xpose.msra.mxu1 %v700_v44 }
 0x4d0   :  { %7609 = vmatprep.subr.bf16.mxu1 %v8740_v16 }
 0x4d6   :  { %7600 = vmatmul.mubr.msk.bf16.vlgmr.msra.gmra.mrb[20].mxu1 %vm423_vm2, %v692_v45 }
 0x4d7   :  { %7611 = vmatprep.mubr.msk.bf16.mxu1 %vm8741_vm1, %v8740_v16 }
 0x595   :  { %v684_v47 = vpop.f32.mrb[8].mxu0 }
 0x596   :  { %v742_v48 = vmul.f32 0.5, %v684_v47  ;;  %v7595_v49 = vpop.f32.mrb[9].mxu0 }
 0x597   :  { %v687_v50 = vpop.f32.mrb[10].mxu0 }
 0x598   :  { %v9074_v51 = vpop.f32.mrb[12].mxu1  ;;  %v7596_v52 = vpop.f32.mrb[11].mxu0  ;;  %v744_v53 = vadd.f32 %v742_v48, %v9037_v5 }
 0x599   :  { %v7583_v56 = vpop.f32.mrb[13].mxu1 }
 0x59a   :  { %v589_v57 = vpop.f32.mrb[14].mxu1  ;;  %v746_v60 = vsel %vm520_vm5, %v744_v53, -inf }
 0x59b   :  { %v7584_v61 = vpop.f32.mrb[15].mxu1  ;;  %747 = vmax.xlane.f32.xlu0 %v746_v60 }
 0x5a0   :  { %v9078_v62 = vpop.f32.mrb[16].mxu1 }
 0x5a1   :  { %v7589_v63 = vpop.f32.mrb[17].mxu1 }
 0x5a2   :  { %v635_v0 = vpop.f32.mrb[18].mxu1 }
 0x5a3   :  { %v7590_v2 = vpop.f32.mrb[19].mxu1 }
 0x5a9   :  { %v736_v3 = vpop.f32.mrb[20].mxu1 }
 0x5aa   :  { %v743_v4 = vmul.f32 0.5, %v736_v3  ;;  %v7601_v6 = vpop.f32.mrb[21].mxu1 }
 0x5ab   :  { %v739_v7 = vpop.f32.mrb[22].mxu1 }
 0x5ac   :  { %v7602_v8 = vpop.f32.mrb[23].mxu1  ;;  %v745_v9 = vadd.f32 %v743_v4, %v9037_v5 }
 0x5ae   :  { %v749_v10 = vsel %vm520_vm5, %v745_v9, -inf }
 0x5af   :  { %750 = vmax.xlane.f32.xlu1 %v749_v10 }
 0x5c0   :  { %820 = vrot.lane.b32.xlu1 %v9055_v36, %s8743_s19 }
 0x5c4   :  { %870 = vrot.lane.b32.xlu1 %v9007_v46, %s8744_s21 }
 0x5c8   :  { %920 = vrot.lane.b32.xlu1 %v9012_v54, %s8744_s21 }
 0x5cc   :  { %918 = vrot.lane.b32.xlu1 %v9023_v58, %s8744_s21 }
 0x628   :  { %v748_v11 = vpop.xlane.xlu0 %747 }
 0x629   :  { %v752_v12 = vsub.f32 %v744_v53, %v748_v11 }
 0x62b   :  { %v754_v13 = vmul.f32 1.442695, %v752_v12 }
 0x62d   :  { %8391 = vpow2.f32 %v754_v13 }
 0x637   :  { %v8392_v14 = vpop.eup %8391 }
 0x638   :  { %v758_v15 = vsel %vm520_vm5, %v8392_v14, 0.0 }
 0x639   :  { %759 = vadd.xlane.f32.xlu0 %v758_v15 }
 0x63c   :  { %v751_v17 = vpop.xlane.xlu1 %750 }
 0x63d   :  { %v753_v18 = vsub.f32 %v745_v9, %v751_v17 }
 0x63f   :  { %v756_v19 = vmul.f32 1.442695, %v753_v18 }
 0x640   :  { %v821_v20 = vpop.permute.xlu1 %820 }
 0x641   :  { %8393 = vpow2.f32 %v756_v19  ;;  %v826_v21 = vsel %vm548_vm3, %v821_v20, 0 }
 0x642   :  { %7610 = vmatpush3.bf16.msra.mxu1 %v826_v21 }
 0x643   :  { %7621 = vmatprep.subr.bf16.mxu1 %v8740_v16 }
 0x644   :  { %v871_v30 = vpop.permute.xlu1 %870 }
 0x645   :  { %v876_v35 = vsel %vm423_vm2, %v871_v30, 0 }
 0x648   :  { %v921_v34 = vpop.permute.xlu1 %920 }
 0x649   :  { %v926_v38 = vsel %vm423_vm2, %v921_v34, 0 }
 0x64b   :  { %v8394_v22 = vpop.eup %8393 }
 0x64c   :  { %v761_v23 = vsel %vm520_vm5, %v8394_v22, 0.0  ;;  %v919_v40 = vpop.permute.xlu1 %918 }
 0x64d   :  { %762 = vadd.xlane.f32.xlu0 %v761_v23 }
 0x663   :  { %771 = vrot.lane.b32.xlu0 %v9025_v59, %s8743_s19 }
 0x667   :  { %868 = vrot.lane.b32.xlu0 %v9014_v55, %s8744_s21 }
 0x6c6   :  { %v760_v24 = vpop.xlane.xlu0 %759 }
 0x6c7   :  { %8395 = vrcp.f32 %v760_v24 }
 0x6d1   :  { %v8396_v25 = vpop.eup %8395 }
 0x6d2   :  { %v766_v27 = vmul.f32 %v8396_v25, %v8392_v14 }
 0x6d4   :  { %v768_v31 = vpack.c.bf16 %v766_v27, %v766_v27 }
 0x6da   :  { %v763_v26 = vpop.xlane.xlu0 %762 }
 0x6db   :  { %8397 = vrcp.f32 %v763_v26 }
 0x6de   :  { %v772_v28 = vpop.permute.xlu0 %771 }
 0x6df   :  { %v777_v29 = vsel %vm548_vm3, %v772_v28, 0 }
 0x6e0   :  { %7604 = vmatpush3.bf16.msra.mxu0 %v777_v29 }
 0x6e1   :  { %7615 = vmatprep.subr.bf16.mxu0 %v8740_v16 }
 0x6e2   :  { %v869_v39 = vpop.permute.xlu0 %868 }
 0x6e3   :  { %7606 = vmatmul.mubr.msk.bf16.vlgmr.msra.gmra.mrb[12].mxu0 %vm520_vm5, %v768_v31 }
 0x6e4   :  { %7617 = vmatprep.mubr.msk.bf16.mxu0 %vm8741_vm1, %v8740_v16 }
 0x6e5   :  { %v8398_v32 = vpop.eup %8397 }
 0x6e6   :  { %v767_v33 = vmul.f32 %v8398_v32, %v8394_v22 }
 0x6e8   :  { %v769_v37 = vpack.c.bf16 %v767_v33, %v767_v33 }
 0x6e9   :  { %7616 = vmatpush3.bf16.xpose.msra.mxu0 %v876_v35 }
 0x6ea   :  { %7612 = vmatmul.mubr.msk.bf16.vlgmr.msra.gmra.mrb[24].mxu1 %vm520_vm5, %v769_v37  ;;  %7627 = vmatprep.subr.bf16.mxu0 %v8740_v16 }
 0x6eb   :  { %7622 = vmatpush3.bf16.xpose.msra.mxu1 %v926_v38  ;;  %7623 = vmatprep.mubr.msk.bf16.mxu1 %vm8741_vm1, %v8740_v16 }
 0x6ec   :  { %7633 = vmatprep.subr.bf16.mxu1 %v8740_v16 }
 0x6f0   :  { %7618 = vmatmul.mubr.msk.bf16.vlgmr.msra.gmra.mrb[16].mxu0 %vm423_vm2, %v869_v39 }
 0x6f1   :  { %7629 = vmatprep.mubr.msk.bf16.mxu0 %vm8741_vm1, %v8740_v16 }
 0x6f2   :  { %7624 = vmatmul.mubr.msk.bf16.vlgmr.msra.gmra.mrb[28].mxu1 %vm423_vm2, %v919_v40 }
 0x6f3   :  { %7635 = vmatprep.mubr.msk.bf16.mxu1 %vm8741_vm1, %v8740_v16 }
 0x7b6   :  { %v9116_v41 = vpop.f32.mrb[12].mxu0 }
 0x7b7   :  { %v7607_v42 = vpop.f32.mrb[13].mxu0 }
 0x7b8   :  { %v816_v43 = vpop.f32.mrb[14].mxu0 }
 0x7b9   :  { %v7608_v44 = vpop.f32.mrb[15].mxu0 }
 0x7bd   :  { %v9118_v45 = vpop.f32.mrb[24].mxu1 }
 0x7be   :  { %v8139_v47 = vpack.i.bf16 %v9118_v45, %v9116_v41  ;;  %v7613_v48 = vpop.f32.mrb[25].mxu1 }
 0x7bf   :  { %v865_v49 = vpop.f32.mrb[26].mxu1 }
 0x7c0   :  { %v7614_v50 = vpop.f32.mrb[27].mxu1 }
 0x7c3   :  { %v912_v52 = vpop.f32.mrb[16].mxu0 }
 0x7c4   :  { %v968_v53 = vmul.f32 0.5, %v912_v52  ;;  %v7619_v56 = vpop.f32.mrb[17].mxu0 }
 0x7c5   :  { %v915_v57 = vpop.f32.mrb[18].mxu0  ;;  %v962_v60 = vpop.f32.mrb[28].mxu1 }
 0x7c6   :  { %v969_v61 = vmul.f32 0.5, %v962_v60  ;;  %v7620_v63 = vpop.f32.mrb[19].mxu0  ;;  %v7625_v0 = vpop.f32.mrb[29].mxu1  ;;  %v970_v2 = vadd.f32 %v968_v53, %v9037_v5 }
 0x7c7   :  { %v965_v3 = vpop.f32.mrb[30].mxu1 }
 0x7c8   :  { %v7626_v4 = vpop.f32.mrb[31].mxu1  ;;  %v972_v6 = vsel %vm520_vm5, %v970_v2, -inf  ;;  %v971_v7 = vadd.f32 %v969_v61, %v9037_v5 }
 0x7c9   :  { %973 = vmax.xlane.f32.xlu0 %v972_v6 }
 0x7ca   :  { %v975_v8 = vsel %vm520_vm5, %v971_v7, -inf }
 0x7cb   :  { %976 = vmax.xlane.f32.xlu1 %v975_v8 }
 0x7dc   :  { %1044 = vrot.lane.b32.xlu1 %v9055_v36, %s8744_s21 }
 0x7e0   :  { %1094 = vrot.lane.b32.xlu1 %v9007_v46, %s8745_s26 }
 0x7e4   :  { %1144 = vrot.lane.b32.xlu1 %v9012_v54, %s8745_s26 }
 0x7e8   :  { %1142 = vrot.lane.b32.xlu1 %v9023_v58, %s8745_s26 }
 0x856   :  { %v974_v9 = vpop.xlane.xlu0 %973 }
 0x857   :  { %v978_v10 = vsub.f32 %v970_v2, %v974_v9 }
 0x858   :  { %v977_v11 = vpop.xlane.xlu1 %976 }
 0x859   :  { %v980_v12 = vmul.f32 1.442695, %v978_v10  ;;  %v979_v13 = vsub.f32 %v971_v7, %v977_v11 }
 0x85b   :  { %8399 = vpow2.f32 %v980_v12  ;;  %v982_v14 = vmul.f32 1.442695, %v979_v13 }
 0x85c   :  { %v1045_v15 = vpop.permute.xlu1 %1044 }
 0x85d   :  { %8401 = vpow2.f32 %v982_v14  ;;  %v1050_v17 = vsel %vm548_vm3, %v1045_v15, 0 }
 0x85e   :  { %7634 = vmatpush3.bf16.msra.mxu1 %v1050_v17 }
 0x85f   :  { %7645 = vmatprep.subr.bf16.mxu1 %v8740_v16 }
 0x860   :  { %v1095_v24 = vpop.permute.xlu1 %1094 }
 0x864   :  { %v1145_v29 = vpop.permute.xlu1 %1144 }
 0x865   :  { %v8400_v46 = vpop.eup %8399  ;;  %v1150_v31 = vsel %vm423_vm2, %v1145_v29, 0 }
 0x866   :  { %v984_v54 = vsel %vm520_vm5, %v8400_v46, 0.0 }
 0x867   :  { %v8402_v18 = vpop.eup %8401  ;;  %985 = vadd.xlane.f32.xlu0 %v984_v54 }
 0x868   :  { %v987_v58 = vsel %vm520_vm5, %v8402_v18, 0.0  ;;  %v1143_v33 = vpop.permute.xlu1 %1142 }
 0x86b   :  { %988 = vadd.xlane.f32.xlu0 %v987_v58 }
 0x881   :  { %996 = vrot.lane.b32.xlu0 %v9025_v59, %s8744_s21 }
 0x885   :  { %1092 = vrot.lane.b32.xlu0 %v9014_v55, %s8745_s26  ;;  %v1100_v55 = vsel %vm423_vm2, %v1095_v24, 0  ;;  %v8214_v24 = vld [vmem:[%s10454_s6 + $0x18] sm:$0xff]  }
 0x8f4   :  { %v986_v19 = vpop.xlane.xlu0 %985 }
 0x8f5   :  { %8403 = vrcp.f32 %v986_v19 }
 0x8f8   :  { %v989_v20 = vpop.xlane.xlu0 %988 }
 0x8f9   :  { %8405 = vrcp.f32 %v989_v20 }
 0x8fc   :  { %v997_v21 = vpop.permute.xlu0 %996 }
 0x8fd   :  { %v1002_v22 = vsel %vm548_vm3, %v997_v21, 0  ;;  %v8211_v21 = vld [vmem:[%s10454_s6] sm:$0xff]  }
 0x8fe   :  { %7628 = vmatpush3.bf16.msra.mxu0 %v1002_v22  ;;  %v8212_v22 = vld [vmem:[%s10454_s6 + $0x8] sm:$0xff]  }
 0x8ff   :  { %v8404_v23 = vpop.eup %8403  ;;  %7639 = vmatprep.subr.bf16.mxu0 %v8740_v16 }
 0x900   :  { %v992_v25 = vmul.f32 %v8404_v23, %v8400_v46  ;;  %v1093_v32 = vpop.permute.xlu0 %1092  ;;  %v8213_v23 = vld [vmem:[%s10454_s6 + $0x10] sm:$0xff]  }
 0x902   :  { %v994_v26 = vpack.c.bf16 %v992_v25, %v992_v25 }
 0x903   :  { %v8406_v27 = vpop.eup %8405 }
 0x904   :  { %7630 = vmatmul.mubr.msk.bf16.vlgmr.msra.gmra.mrb[20].mxu0 %vm520_vm5, %v994_v26  ;;  %v993_v28 = vmul.f32 %v8406_v27, %v8402_v18 }
 0x905   :  { %7641 = vmatprep.mubr.msk.bf16.mxu0 %vm8741_vm1, %v8740_v16 }
 0x906   :  { %v995_v30 = vpack.c.bf16 %v993_v28, %v993_v28 }
 0x907   :  { %7640 = vmatpush3.bf16.xpose.msra.mxu0 %v1100_v55 }
 0x908   :  { %7636 = vmatmul.mubr.msk.bf16.vlgmr.msra.gmra.mrb[32].mxu1 %vm520_vm5, %v995_v30  ;;  %7651 = vmatprep.subr.bf16.mxu0 %v8740_v16 }
 0x909   :  { %7646 = vmatpush3.bf16.xpose.msra.mxu1 %v1150_v31  ;;  %7647 = vmatprep.mubr.msk.bf16.mxu1 %vm8741_vm1, %v8740_v16 }
 0x90a   :  { %7657 = vmatprep.subr.bf16.mxu1 %v8740_v16 }
 0x90e   :  { %7642 = vmatmul.mubr.msk.bf16.vlgmr.msra.gmra.mrb[24].mxu0 %vm423_vm2, %v1093_v32 }
 0x90f   :  { %7653 = vmatprep.mubr.msk.bf16.mxu0 %vm8741_vm1, %v8740_v16 }
 0x910   :  { %7648 = vmatmul.mubr.msk.bf16.vlgmr.msra.gmra.mrb[36].mxu1 %vm423_vm2, %v1143_v33 }
 0x911   :  { %7659 = vmatprep.mubr.msk.bf16.mxu1 %vm8741_vm1, %v8740_v16 }
 0x9d7   :  { %v1038_v34 = vpop.f32.mrb[20].mxu0 }
 0x9d8   :  { %v7631_v35 = vpop.f32.mrb[21].mxu0 }
 0x9d9   :  { %v1041_v37 = vpop.f32.mrb[22].mxu0 }
 0x9da   :  { %v7632_v38 = vpop.f32.mrb[23].mxu0 }
 0x9db   :  { %v1086_v39 = vpop.f32.mrb[32].mxu1 }
 0x9dc   :  { %v8144_v40 = vpack.i.bf16 %v1086_v39, %v1038_v34  ;;  %v7637_v42 = vpop.f32.mrb[33].mxu1 }
 0x9dd   :  { %v1089_v43 = vpop.f32.mrb[34].mxu1 }
 0x9de   :  { %v7638_v44 = vpop.f32.mrb[35].mxu1 }
 0x9e1   :  { %v1136_v48 = vpop.f32.mrb[24].mxu0 }
 0x9e2   :  { %v1192_v49 = vmul.f32 0.5, %v1136_v48  ;;  %v7643_v50 = vpop.f32.mrb[25].mxu0 }
 0x9e3   :  { %v1139_v52 = vpop.f32.mrb[26].mxu0  ;;  %v1186_v53 = vpop.f32.mrb[36].mxu1 }
 0x9e4   :  { %v1193_v56 = vmul.f32 0.5, %v1186_v53  ;;  %v7644_v57 = vpop.f32.mrb[27].mxu0  ;;  %v7649_v60 = vpop.f32.mrb[37].mxu1  ;;  %v1194_v61 = vadd.f32 %v1192_v49, %v9037_v5 }
 0x9e5   :  { %v1189_v63 = vpop.f32.mrb[38].mxu1  ;;  %v6771_v57 = vld [vmem:[#allocation8] ss:$0 sm:$0xff] }
 0x9e6   :  { %v7650_v0 = vpop.f32.mrb[39].mxu1  ;;  %v1196_v2 = vsel %vm520_vm5, %v1194_v61, -inf  ;;  %v1195_v3 = vadd.f32 %v1193_v56, %v9037_v5 }
 0x9e7   :  { %1197 = vmax.xlane.f32.xlu0 %v1196_v2  ;;  %v8543_v0 = vld [vmem:[#allocation2] sm:$0xff] }
 0x9e8   :  { %v1199_v4 = vsel %vm520_vm5, %v1195_v3, -inf }
 0x9e9   :  { %1200 = vmax.xlane.f32.xlu1 %v1199_v4  ;;  %v8544_v4 = vld [vmem:[#allocation2 + $0x8] sm:$0xff] }
 0x9fa   :  { %1268 = vrot.lane.b32.xlu1 %v9055_v36, %s8745_s26 }
 0x9fe   :  { %8140 = vrot.lane.b32.xlu1 %v8139_v47, %s8746_s23 }
 0xa02   :  { %8145 = vrot.lane.b32.xlu1 %v8144_v40, %s8747_s20 }
 0xa74   :  { %v1198_v6 = vpop.xlane.xlu0 %1197 }
 0xa75   :  { %v1202_v7 = vsub.f32 %v1194_v61, %v1198_v6 }
 0xa76   :  { %v1201_v8 = vpop.xlane.xlu1 %1200 }
 0xa77   :  { %v1204_v9 = vmul.f32 1.442695, %v1202_v7  ;;  %v1203_v10 = vsub.f32 %v1195_v3, %v1201_v8 }
 0xa79   :  { %8407 = vpow2.f32 %v1204_v9  ;;  %v1206_v11 = vmul.f32 1.442695, %v1203_v10 }
 0xa7a   :  { %v1269_v12 = vpop.permute.xlu1 %1268 }
 0xa7b   :  { %8409 = vpow2.f32 %v1206_v11  ;;  %v1274_v36 = vsel %vm548_vm3, %v1269_v12, 0 }
 0xa7c   :  { %7658 = vmatpush3.bf16.msra.mxu1 %v1274_v36 }
 0xa7e   :  { %v8141_v33 = vpop.permute.xlu1 %8140 }
 0xa7f   :  { %v8143_v35 = vunpack.i.h.bf16 %v8141_v33  ;;  %v8142_v37 = vunpack.i.l.bf16 %v8141_v33 }
 0xa81   :  { %v1341_v42 = vsel %vm423_vm2, %v9078_v62, %v8143_v35  ;;  %v1340_v43 = vsel %vm423_vm2, %v9074_v51, %v8142_v37 }
 0xa82   :  { %v8146_v34 = vpop.permute.xlu1 %8145 }
 0xa83   :  { %v8408_v13 = vpop.eup %8407  ;;  %v8148_v38 = vunpack.i.h.bf16 %v8146_v34  ;;  %v8147_v39 = vunpack.i.l.bf16 %v8146_v34 }
 0xa84   :  { %v1208_v14 = vsel %vm520_vm5, %v8408_v13, 0.0 }
 0xa85   :  { %v8410_v41 = vpop.eup %8409  ;;  %1209 = vadd.xlane.f32.xlu0 %v1208_v14  ;;  %v1344_v49 = vsel %vm1342_vm6, %v1341_v42, %v8148_v38  ;;  %v1343_v50 = vsel %vm1342_vm6, %v1340_v43, %v8147_v39 }
 0xa86   :  { %v1211_v45 = vsel %vm520_vm5, %v8410_v41, 0.0 }
 0xa89   :  { %1212 = vadd.xlane.f32.xlu0 %v1211_v45 }
 0xa9f   :  { %1220 = vrot.lane.b32.xlu0 %v9025_v59, %s8745_s26 }
 0xb12   :  { %v1210_v47 = vpop.xlane.xlu0 %1209 }
 0xb13   :  { %8411 = vrcp.f32 %v1210_v47 }
 0xb16   :  { %v1213_v15 = vpop.xlane.xlu0 %1212 }
 0xb17   :  { %8413 = vrcp.f32 %v1213_v15  ;;  %v8217_v15 = vld [vmem:[%s10458_s10 + $0x4] ss:$8 sps:$4 sm:$0xff]  }
 0xb18   :  { %1536 = vmatprep.subr.bf16.mxu1 %v8217_v15 }
 0xb1a   :  { %v1221_v17 = vpop.permute.xlu0 %1220 }
 0xb1b   :  { %v1226_v46 = vsel %vm548_vm3, %v1221_v17, 0  ;;  %v8215_v17 = vld [vmem:[%s10458_s10] ss:$8 sps:$4 sm:$0xff]  }
 0xb1c   :  { %7652 = vmatpush3.bf16.msra.mxu0 %v1226_v46  ;;  %v8220_v46 = vld [vmem:[%s10458_s10 + $0x14] ss:$8 sps:$4 sm:$0xff]  }
 0xb1d   :  { %v8412_v54 = vpop.eup %8411  ;;  %7663 = vmatprep.subr.bf16.mxu0 %v8740_v16 }
 0xb1e   :  { %v1216_v18 = vmul.f32 %v8412_v54, %v8408_v13  ;;  %v8218_v54 = vld [vmem:[%s10458_s10 + $0x10] ss:$8 sps:$4 sm:$0xff]  }
 0xb20   :  { %v1218_v58 = vpack.c.bf16 %v1216_v18, %v1216_v18  ;;  %v8223_v18 = vld [vmem:[%s10458_s10 + $0x24] ss:$8 sps:$4 sm:$0xff]  }
 0xb21   :  { %v8414_v19 = vpop.eup %8413 }
 0xb22   :  { %7654 = vmatmul.mubr.msk.bf16.vlgmr.msra.gmra.mrb[28].mxu0 %vm520_vm5, %v1218_v58  ;;  %v1217_v20 = vmul.f32 %v8414_v19, %v8410_v41  ;;  %v8221_v58 = vld [vmem:[%s10458_s10 + $0x20] ss:$8 sps:$4 sm:$0xff]   ;;  %v8224_v19 = vld [vmem:[%s10458_s10 + $0x30] ss:$8 sps:$4 sm:$0xff]  }
 0xb23   :  { %7671 = vmatprep.mubr.msk.bf16.mxu0 %vm8741_vm1, %v8740_v16  ;;  %7664 = vmatpush3.bf16.msra.mxu0 %v8211_v21  ;;  %v8227_v21 = vld [vmem:[%s10460_s12 + $0x40] sm:$0xff]  }
 0xb24   :  { %v1219_v59 = vpack.c.bf16 %v1217_v20, %v1217_v20  ;;  %7665 = vmatprep.subr.bf16.mxu0 %v8740_v16  ;;  %v8226_v20 = vld [vmem:[%s10458_s10 + $0x34] ss:$8 sps:$4 sm:$0xff]  }
 0xb26   :  { %7660 = vmatmul.mubr.msk.bf16.vlgmr.msra.gmra.mrb[40].mxu1 %vm520_vm5, %v1219_v59  ;;  %v8749_v59 = vmov 0  }
 0xb27   :  { %7666 = vmatpush3.bf16.msra.mxu0 %v8212_v22  ;;  %1537 = vmatpush1.bf16.msra.mxu1 %v8215_v17  ;;  %v8228_v22 = vld [vmem:[%s10460_s12] sm:$0xff]  }
 0xb28   :  { %7667 = vmatprep.subr.bf16.mxu0 %v8740_v16  ;;  %1538 = vmatprep.subr.bf16.mxu1 %v8220_v46  ;;  %v6788_v46 = vld [vmem:[%s10461_s13] ss:$0 sm:$0xff] }
 0xb29   :  { %1568 = vmatprep.mubr.bf16.mxu1 %v8749_v59 }
 0xb2b   :  { %7668 = vmatpush3.bf16.msra.mxu0 %v8213_v23  ;;  %1539 = vmatpush1.bf16.msra.mxu1 %v8218_v54  ;;  %v8229_v23 = vld [vmem:[%s10460_s12 + $0x48] sm:$0xff]  }
 0xb2c   :  { %7669 = vmatprep.subr.bf16.mxu0 %v8740_v16  ;;  %1540 = vmatprep.subr.bf16.mxu1 %v8223_v18 }
 0xb2f   :  { %7670 = vmatpush3.bf16.msra.mxu0 %v8214_v24  ;;  %1541 = vmatpush1.bf16.msra.mxu1 %v8221_v58  ;;  %v8230_v24 = vld [vmem:[%s10460_s12 + $0x8] sm:$0xff]  }
 0xb30   :  { %1542 = vmatprep.subr.bf16.mxu1 %v8226_v20  ;;  %7282 = vmatprep.subr.bf16.mxu0 %v8227_v21 }
 0xb33   :  { %1543 = vmatpush1.bf16.msra.mxu1 %v8224_v19 }
 0xb34   :  { %7675 = vmatprep.subr.bf16.mxu1 %v8740_v16 }
 0xbf5   :  { %v1262_v25 = vpop.f32.mrb[28].mxu0 }
 0xbf6   :  { %v7655_v26 = vpop.f32.mrb[29].mxu0 }
 0xbf7   :  { %v1265_v27 = vpop.f32.mrb[30].mxu0  ;;  %v8232_v26 = vld [vmem:[%s10460_s12 + $0x10] sm:$0xff]  }
 0xbf8   :  { %v7656_v28 = vpop.f32.mrb[31].mxu0  ;;  %v8233_v27 = vld [vmem:[%s10460_s12 + $0x58] sm:$0xff]  }
 0xbf9   :  { %v1310_v29 = vpop.f32.mrb[40].mxu1  ;;  %v8234_v28 = vld [vmem:[%s10460_s12 + $0x18] sm:$0xff]  }
 0xbfa   :  { %v8149_v55 = vpack.i.bf16 %v1310_v29, %v1262_v25  ;;  %v7661_v30 = vpop.f32.mrb[41].mxu1  ;;  %v8231_v25 = vld [vmem:[%s10460_s12 + $0x50] sm:$0xff]   ;;  %v8235_v29 = vld [vmem:[%s10460_s12 + $0x60] sm:$0xff]  }
 0xbfb   :  { %v1313_v31 = vpop.f32.mrb[42].mxu1  ;;  %v8237_v30 = vld [vmem:[%s10460_s12 + $0x68] sm:$0xff]  }
 0xbfc   :  { %v7662_v32 = vpop.f32.mrb[43].mxu1  ;;  %8150 = vrot.lane.b32.xlu0 %v8149_v55, %s8748_s25  ;;  %v8236_v55 = vld [vmem:[%s10460_s12 + $0x20] sm:$0xff]  }
 0xc6e   :  { %v8151_v40 = vpop.permute.xlu0 %8150 }
 0xc6f   :  { %v8153_v44 = vunpack.i.h.bf16 %v8151_v40  ;;  %v8152_v48 = vunpack.i.l.bf16 %v8151_v40  ;;  %v6777_v40 = vld [vmem:[#allocation10] ss:$0 sm:$0xff] }
 0xc71   :  { %v1347_v52 = vsel %vm1345_vm7, %v1344_v49, %v8153_v44  ;;  %v1346_v53 = vsel %vm1345_vm7, %v1343_v50, %v8152_v48  ;;  %v6778_v48 = vld [vmem:[#allocation11] ss:$0 sm:$0xff] }
 0xc72   :  { %v1348_v56 = vpack.c.bf16 %v1347_v52, %v1346_v53 }
 0xc74   :  { %7672 = vmatmul.mubr.msk.bf16.vlgmr.msra.gmra.mrb[32].mxu0 %vm154_vm0, %v1348_v56  ;;  %v8238_v56 = vld [vmem:[%s10460_s12 + $0x28] sm:$0xff]  }
 0xc75   :  { %7283 = vmatpush3.bf16.msra.mxu0 %v8228_v22 }
 0xc76   :  { %7284 = vmatprep.subr.bf16.mxu0 %v8229_v23 }
 0xc79   :  { %7285 = vmatpush3.bf16.msra.mxu0 %v8230_v24 }
 0xc7a   :  { %7286 = vmatprep.subr.bf16.mxu0 %v8231_v25 }
 0xc7d   :  { %7287 = vmatpush3.bf16.msra.mxu0 %v8232_v26 }
 0xc7e   :  { %7288 = vmatprep.subr.bf16.mxu0 %v8233_v27 }
 0xc81   :  { %7289 = vmatpush3.bf16.msra.mxu0 %v8234_v28 }
 0xc82   :  { %7290 = vmatprep.subr.bf16.mxu0 %v8235_v29 }
 0xc85   :  { %7291 = vmatpush3.bf16.msra.mxu0 %v8236_v55 }
 0xc86   :  { %7292 = vmatprep.subr.bf16.mxu0 %v8237_v30 }
 0xc89   :  { %7293 = vmatpush3.bf16.msra.mxu0 %v8238_v56 }
 0xd47   :  { %v1423_v60 = vpop.f32.mrb[32].mxu0 }
 0xd48   :  { %v1424_v61 = vadd.f32 %v6771_v57, %v1423_v60  ;;  %v7673_v62 = vpop.f32.mrb[33].mxu0  ;;  %v8240_v60 = vld [vmem:[%s10460_s12 + $0x30] sm:$0xff]  }
 0xd49   :  { %v1426_v63 = vpop.f32.mrb[34].mxu0  ;;  %v8242_v62 = vld [vmem:[%s10460_s12 + $0x38] sm:$0xff]  }
 0xd4a   :  { %v9207_v51 = vadd.f32 %v8543_v0, %v1424_v61  ;;  %v1427_v2 = vadd.f32 %v6771_v57, %v1426_v63  ;;  %v7674_v3 = vpop.f32.mrb[35].mxu0  ;;  %v8239_v57 = vld [vmem:[%s10460_s12 + $0x70] sm:$0xff]   ;;  %v8241_v61 = vld [vmem:[%s10460_s12 + $0x78] sm:$0xff]   ;;  %v9298_v63 = vsub.s32 0, %v9034_v1 }
 0xd4b   :  { %7294 = vmatprep.subr.bf16.mxu0 %v8239_v57  ;;  %v1481_v0 = vld [vmem:[#allocation13] ss:$4 sm:$0x3]  ;;  %v6805_v57 = vld [vmem:[#allocation5 + $0x1] ss:$0 sm:$0xff] }
 0xd4c   :  { %v9209_v6 = vadd.f32 %v8544_v4, %v1427_v2  ;;  %v1434_v7 = vsel %vm154_vm0, %v9207_v51, 0.0  ;;  %7295 = vmatpush3.bf16.msra.mxu0 %v8240_v60  ;;  %v9301_v2 = vsub.s32 1, %v9034_v1  ;;  %v1486_v3 = vrot.slane %v1481_v0, %v9298_v63 }
 0xd4d   :  { %1435 = vadd.xlane.f32.xlu1 %v1434_v7  ;;  %7296 = vmatprep.subr.bf16.mxu0 %v8241_v61 }
 0xd4e   :  { %v1437_v8 = vsel %vm154_vm0, %v9209_v6, 0.0  ;;  %v1490_v4 = vrot.slane %v1481_v0, %v9301_v2 }
 0xd4f   :  { %1438 = vadd.xlane.f32.xlu0 %v1437_v8 }
 0xd50   :  { %7297 = vmatpush3.bf16.msra.mxu0 %v8242_v62 }
 0xd51   :  { %7699 = vmatprep.subr.bf16.mxu0 %v8740_v16 }
 0xdda   :  { %v1436_v9 = vpop.xlane.xlu1 %1435 }
 0xddb   :  { %v1440_v10 = vmul.f32 0.015625, %v1436_v9 }
 0xddc   :  { %v1439_v11 = vpop.xlane.xlu0 %1438 }
 0xddd   :  { %v1442_v12 = vsub.f32 %v9207_v51, %v1440_v10  ;;  %v1441_v36 = vmul.f32 0.015625, %v1439_v11 }
 0xddf   :  { %v1443_v13 = vsub.f32 %v9209_v6, %v1441_v36  ;;  %v1444_v14 = vmul.f32 %v1442_v12, %v1442_v12 }
 0xde1   :  { %v1446_v41 = vsel %vm154_vm0, %v1444_v14, 0.0  ;;  %v1445_v45 = vmul.f32 %v1443_v13, %v1443_v13 }
 0xde2   :  { %1447 = vadd.xlane.f32.xlu0 %v1446_v41 }
 0xde3   :  { %v1449_v47 = vsel %vm154_vm0, %v1445_v45, 0.0 }
 0xde6   :  { %1450 = vadd.xlane.f32.xlu0 %v1449_v47 }
 0xe6f   :  { %v1448_v31 = vpop.xlane.xlu0 %1447 }
 0xe70   :  { %v1452_v32 = vmul.f32 0.015625, %v1448_v31 }
 0xe72   :  { %v1454_v33 = vadd.f32 1e-05, %v1452_v32 }
 0xe73   :  { %v1451_v34 = vpop.xlane.xlu0 %1450 }
 0xe74   :  { %8415 = vrsqrt.f32 %v1454_v33  ;;  %v1453_v35 = vmul.f32 0.015625, %v1451_v34  ;;  %v8243_v34 = vld [vmem:[%s10451_s3 + $0x20] sm:$0xff]  }
 0xe76   :  { %v1455_v37 = vadd.f32 1e-05, %v1453_v35  ;;  %v8244_v35 = vld [vmem:[%s10453_s5 + $0x20] sm:$0xff]  }
 0xe78   :  { %8417 = vrsqrt.f32 %v1455_v37  ;;  %v8245_v37 = vld [vmem:[%s10451_s3 + $0x28] sm:$0xff]  }
 0xe7e   :  { %v8416_v38 = vpop.eup %8415 }
 0xe7f   :  { %v1458_v39 = vmul.f32 %v8416_v38, %v1442_v12  ;;  %v8246_v38 = vld [vmem:[%s10453_s5 + $0x28] sm:$0xff]  }
 0xe81   :  { %v1464_v43 = vmul.f32 %v6777_v40, %v1458_v39  ;;  %v8247_v39 = vld [vmem:[%s10451_s3 + $0x30] sm:$0xff]  }
 0xe82   :  { %v8418_v42 = vpop.eup %8417 }
 0xe83   :  { %v1459_v44 = vmul.f32 %v8418_v42, %v1443_v13  ;;  %v1470_v50 = vadd.f32 %v6778_v48, %v1464_v43  ;;  %v8249_v42 = vld [vmem:[%s10451_s3 + $0x38] sm:$0xff]  }
 0xe84   :  { %v8250_v43 = vld [vmem:[%s10453_s5 + $0x38] sm:$0xff]  }
 0xe85   :  { %v1465_v49 = vmul.f32 %v6777_v40, %v1459_v44  ;;  %v8248_v40 = vld [vmem:[%s10453_s5 + $0x30] sm:$0xff]  }
 0xe87   :  { %v1471_v52 = vadd.f32 %v6778_v48, %v1465_v49 }
 0xe89   :  { %v1472_v53 = vpack.c.bf16 %v1471_v52, %v1470_v50 }
 0xe8b   :  { %6787 = vmatmul.mubr.msk.bf16.vlgmr.msra.gmra.mrb[44].mxu1 %vm154_vm0, %v1472_v53 }
 0xe8c   :  { %7683 = vmatprep.mubr.msk.bf16.mxu1 %vm8741_vm1, %v8740_v16  ;;  %7676 = vmatpush3.bf16.msra.mxu1 %v8243_v34 }
 0xe8d   :  { %7677 = vmatprep.subr.bf16.mxu1 %v8740_v16 }
 0xe90   :  { %7678 = vmatpush3.bf16.msra.mxu1 %v8245_v37 }
 0xe91   :  { %7679 = vmatprep.subr.bf16.mxu1 %v8740_v16 }
 0xe94   :  { %7680 = vmatpush3.bf16.msra.mxu1 %v8247_v39 }
 0xe95   :  { %7681 = vmatprep.subr.bf16.mxu1 %v8740_v16 }
 0xe98   :  { %7682 = vmatpush3.bf16.msra.mxu1 %v8249_v42 }
 0xe99   :  { %7687 = vmatprep.subr.bf16.mxu1 %v8740_v16 }
 0xf5e   :  { %v1570_v7 = vpop.f32.mrb[44].mxu1 }
 0xf5f   :  { %v1571_v8 = vadd.f32 %v1570_v7, %v1486_v3  ;;  %v1572_v9 = vpop.f32.mrb[45].mxu1 }
 0xf60   :  { %v1573_v10 = vadd.f32 %v1572_v9, %v1490_v4  ;;  %v1574_v11 = vpop.f32.mrb[46].mxu1  ;;  %v8251_v9 = vld [vmem:[%s10452_s4 + $0x20] sm:$0xff]  }
 0xf61   :  { %v1575_v12 = vadd.f32 %v1574_v11, %v1486_v3  ;;  %v1576_v36 = vpop.f32.mrb[47].mxu1  ;;  %v1579_v14 = vmax.f32 %v1571_v8, 0.0  ;;  %v6806_v3 = vld [vmem:[#allocation7 + $0x1] ss:$0 sm:$0xff]  ;;  %v8252_v11 = vld [vmem:[%s10452_s4 + $0x28] sm:$0xff]  }
 0xf62   :  { %v1577_v13 = vadd.f32 %v1576_v36, %v1490_v4  ;;  %v1580_v45 = vmax.f32 %v1573_v10, 0.0  ;;  %v8254_v36 = vld [vmem:[%s10452_s4 + $0x38] sm:$0xff]  }
 0xf63   :  { %v1581_v41 = vmax.f32 %v1575_v12, 0.0  ;;  %v8253_v12 = vld [vmem:[%s10452_s4 + $0x30] sm:$0xff]  }
 0xf64   :  { %v1582_v47 = vmax.f32 %v1577_v13, 0.0 }
 0xf65   :  { %v1583_v15 = vpack.c.bf16 %v1581_v41, %v1579_v14 }
 0xf66   :  { %v1584_v17 = vpack.c.bf16 %v1582_v47, %v1580_v45 }
 0xf68   :  { %1750 = vmatprep.mubr.bf16.mxu0 %v1584_v17 }
 0xf69   :  { %1751 = vmatmul.mubr.bf16.vlgmr.msra.gmra.mrb[36].mxu0 %v1583_v15 }
 0xf6a   :  { %7707 = vmatprep.mubr.msk.bf16.mxu0 %vm8741_vm1, %v8740_v16  ;;  %7700 = vmatpush3.bf16.msra.mxu0 %v8244_v35 }
 0xf6b   :  { %7701 = vmatprep.subr.bf16.mxu0 %v8740_v16 }
 0xf6e   :  { %7702 = vmatpush3.bf16.msra.mxu0 %v8246_v38 }
 0xf6f   :  { %7703 = vmatprep.subr.bf16.mxu0 %v8740_v16 }
 0xf72   :  { %7704 = vmatpush3.bf16.msra.mxu0 %v8248_v40 }
 0xf73   :  { %7705 = vmatprep.subr.bf16.mxu0 %v8740_v16 }
 0xf76   :  { %7706 = vmatpush3.bf16.msra.mxu0 %v8250_v43 }
 0xf77   :  { %7723 = vmatprep.subr.bf16.mxu0 %v8740_v16 }
0x103c   :  { %v7298_v1 = vpop.f32.mrb[36].mxu0 }
0x103d   :  { %v7299_v54 = vpop.f32.mrb[37].mxu0 }
0x103e   :  { %v7300_v18 = vadd.f32 %v7299_v54, %v7298_v1  ;;  %v7301_v58 = vpop.f32.mrb[38].mxu0 }
0x103f   :  { %v7302_v19 = vpop.f32.mrb[39].mxu0 }
0x1040   :  { %v1753_v20 = vadd.f32 %v7300_v18, %v6788_v46  ;;  %v7303_v21 = vadd.f32 %v7302_v19, %v7301_v58 }
0x1042   :  { %v9311_v22 = vadd.f32 %v1753_v20, %v9207_v51  ;;  %v1756_v23 = vadd.f32 %v7303_v21, %v6788_v46 }
0x1044   :  { %v9314_v24 = vadd.f32 %v1756_v23, %v9209_v6  ;;  %v1763_v25 = vsel %vm154_vm0, %v9311_v22, 0.0 }
0x1045   :  { %1764 = vadd.xlane.f32.xlu1 %v1763_v25 }
0x1046   :  { %v1766_v26 = vsel %vm154_vm0, %v9314_v24, 0.0 }
0x1047   :  { %1767 = vadd.xlane.f32.xlu0 %v1766_v26 }
0x10d2   :  { %v1765_v27 = vpop.xlane.xlu1 %1764 }
0x10d3   :  { %v1769_v28 = vmul.f32 0.015625, %v1765_v27 }
0x10d4   :  { %v1768_v29 = vpop.xlane.xlu0 %1767 }
0x10d5   :  { %v1771_v55 = vsub.f32 %v9311_v22, %v1769_v28  ;;  %v1770_v30 = vmul.f32 0.015625, %v1768_v29 }
0x10d7   :  { %v1772_v51 = vsub.f32 %v9314_v24, %v1770_v30  ;;  %v1773_v31 = vmul.f32 %v1771_v55, %v1771_v55 }
0x10d9   :  { %v1775_v6 = vsel %vm154_vm0, %v1773_v31, 0.0  ;;  %v1774_v32 = vmul.f32 %v1772_v51, %v1772_v51 }
0x10da   :  { %1776 = vadd.xlane.f32.xlu1 %v1775_v6 }
0x10db   :  { %v1778_v33 = vsel %vm154_vm0, %v1774_v32, 0.0 }
0x10dc   :  { %1779 = vadd.xlane.f32.xlu0 %v1778_v33 }
0x1167   :  { %v1777_v44 = vpop.xlane.xlu1 %1776 }
0x1168   :  { %v1781_v48 = vmul.f32 0.015625, %v1777_v44 }
0x1169   :  { %v1780_v49 = vpop.xlane.xlu0 %1779 }
0x116a   :  { %v1783_v50 = vadd.f32 1e-05, %v1781_v48  ;;  %v1782_v52 = vmul.f32 0.015625, %v1780_v49 }
0x116c   :  { %8419 = vrsqrt.f32 %v1783_v50  ;;  %v1784_v53 = vadd.f32 1e-05, %v1782_v52 }
0x116e   :  { %8421 = vrsqrt.f32 %v1784_v53 }
0x1176   :  { %v8420_v56 = vpop.eup %8419 }
0x1177   :  { %v1787_v60 = vmul.f32 %v8420_v56, %v1771_v55 }
0x1178   :  { %v8422_v61 = vpop.eup %8421 }
0x1179   :  { %v1793_v62 = vmul.f32 %v6805_v57, %v1787_v60  ;;  %v1788_v0 = vmul.f32 %v8422_v61, %v1772_v51 }
0x117b   :  { %v1794_v4 = vmul.f32 %v6805_v57, %v1788_v0  ;;  %v1799_v7 = vadd.f32 %v6806_v3, %v1793_v62 }
0x117d   :  { %v1800_v8 = vadd.f32 %v6806_v3, %v1794_v4 }
0x117f   :  { %v1801_v10 = vpack.c.bf16 %v1800_v8, %v1799_v7 }
0x1181   :  { %7684 = vmatmul.mubr.msk.bf16.vlgmr.msra.gmra.mrb[48].mxu1 %vm154_vm0, %v1801_v10  ;;  %7708 = vmatmul.mubr.msk.bf16.vlgmr.msra.gmra.mrb[40].mxu0 %vm154_vm0, %v1801_v10 }
0x1182   :  { %7688 = vmatpush3.bf16.msra.mxu1 %v8251_v9  ;;  %7695 = vmatprep.mubr.msk.bf16.mxu1 %vm8741_vm1, %v8740_v16 }
0x1183   :  { %7689 = vmatprep.subr.bf16.mxu1 %v8740_v16  ;;  %7725 = vmatprep.mubr.msk.bf16.mxu0 %vm8741_vm1, %v8740_v16 }
0x1186   :  { %7690 = vmatpush3.bf16.msra.mxu1 %v8252_v11 }
0x1187   :  { %7691 = vmatprep.subr.bf16.mxu1 %v8740_v16 }
0x118a   :  { %7692 = vmatpush3.bf16.msra.mxu1 %v8253_v12 }
0x118b   :  { %7693 = vmatprep.subr.bf16.mxu1 %v8740_v16 }
0x118e   :  { %7694 = vmatpush3.bf16.msra.mxu1 %v8254_v36 }
0x118f   :  { %7711 = vmatprep.subr.bf16.mxu1 %v8740_v16 }
0x1191   :  { %7696 = vmatmul.mubr.msk.bf16.vlgmr.msra.gmra.mrb[52].mxu1 %vm154_vm0, %v1801_v10 }
0x1192   :  { %7713 = vmatprep.mubr.msk.bf16.mxu1 %vm8741_vm1, %v8740_v16 }
0x1254   :  { %v1872_v13 = vpop.f32.mrb[48].mxu1  ;;  %v2020_v14 = vpop.f32.mrb[40].mxu0 }
0x1255   :  { %v9381_v41 = vpack.c.bf16 %v2020_v14, %v2020_v14  ;;  %v7685_v45 = vpop.f32.mrb[49].mxu1  ;;  %v7709_v47 = vpop.f32.mrb[41].mxu0  ;;  %v9393_v26 = vpack.c.bf16 %v1872_v13, %v1872_v13 }
0x1256   :  { %v1875_v15 = vpop.f32.mrb[50].mxu1  ;;  %v2023_v17 = vpop.f32.mrb[42].mxu0 }
0x1257   :  { %v7686_v1 = vpop.f32.mrb[51].mxu1  ;;  %v7710_v46 = vpop.f32.mrb[43].mxu0  ;;  %v2157_v54 = vsel %vm548_vm3, %v9381_v41, 0  ;;  %v9402_v28 = vpack.c.bf16 %v2023_v17, %v2023_v17  ;;  %v9404_v29 = vpack.c.bf16 %v1875_v15, %v1875_v15 }
0x1258   :  { %7724 = vmatpush3.bf16.msra.mxu0 %v2157_v54 }
0x1259   :  { %7735 = vmatprep.subr.bf16.mxu0 %v8740_v16  ;;  %v2203_v55 = vsel %vm548_vm3, %v9402_v28, 0 }
0x1264   :  { %v1946_v18 = vpop.f32.mrb[52].mxu1 }
0x1265   :  { %v9386_v58 = vpack.c.bf16 %v1946_v18, %v1946_v18  ;;  %v7697_v19 = vpop.f32.mrb[53].mxu1 }
0x1266   :  { %v1949_v20 = vpop.f32.mrb[54].mxu1 }
0x1267   :  { %v7698_v21 = vpop.f32.mrb[55].mxu1  ;;  %v2037_v23 = vsel %vm423_vm2, %v9386_v58, 0  ;;  %v9391_v25 = vpack.c.bf16 %v1949_v20, %v1949_v20 }
0x1268   :  { %7712 = vmatpush3.bf16.xpose.msra.mxu1 %v2037_v23 }
0x1269   :  { %7717 = vmatprep.subr.bf16.mxu1 %v8740_v16  ;;  %v2083_v27 = vsel %vm423_vm2, %v9391_v25, 0 }
0x126f   :  { %7714 = vmatmul.mubr.msk.bf16.vlgmr.msra.gmra.mrb[56].mxu1 %vm423_vm2, %v9393_v26 }
0x1270   :  { %7718 = vmatpush3.bf16.xpose.msra.mxu1 %v2083_v27  ;;  %7719 = vmatprep.mubr.msk.bf16.mxu1 %vm8741_vm1, %v8740_v16 }
0x1271   :  { %7729 = vmatprep.subr.bf16.mxu1 %v8740_v16 }
0x1277   :  { %7720 = vmatmul.mubr.msk.bf16.vlgmr.msra.gmra.mrb[60].mxu1 %vm423_vm2, %v9404_v29 }
0x1278   :  { %7730 = vmatpush3.bf16.msra.mxu1 %v2203_v55  ;;  %7731 = vmatprep.mubr.msk.bf16.mxu1 %vm8741_vm1, %v8740_v16 }
0x1279   :  { %7741 = vmatprep.subr.bf16.mxu1 %v8740_v16 }
0x1342   :  { %v2073_v30 = vpop.f32.mrb[56].mxu1 }
0x1343   :  { %v2125_v51 = vmul.f32 0.5, %v2073_v30  ;;  %v7715_v31 = vpop.f32.mrb[57].mxu1 }
0x1344   :  { %v2076_v6 = vpop.f32.mrb[58].mxu1 }
0x1345   :  { %v7716_v32 = vpop.f32.mrb[59].mxu1  ;;  %v2127_v33 = vadd.f32 %v2125_v51, %v9037_v5 }
0x1347   :  { %v2129_v34 = vsel %vm520_vm5, %v2127_v33, -inf }
0x1348   :  { %2130 = vmax.xlane.f32.xlu1 %v2129_v34 }
0x134a   :  { %v2119_v35 = vpop.f32.mrb[60].mxu1 }
0x134b   :  { %v2126_v37 = vmul.f32 0.5, %v2119_v35  ;;  %v7721_v38 = vpop.f32.mrb[61].mxu1 }
0x134c   :  { %v2122_v39 = vpop.f32.mrb[62].mxu1 }
0x134d   :  { %v7722_v40 = vpop.f32.mrb[63].mxu1  ;;  %v2128_v42 = vadd.f32 %v2126_v37, %v9037_v5 }
0x134f   :  { %v2132_v43 = vsel %vm520_vm5, %v2128_v42, -inf }
0x1350   :  { %2133 = vmax.xlane.f32.xlu0 %v2132_v43 }
0x1359   :  { %2249 = vrot.lane.b32.xlu1 %v9386_v58, %s8743_s19 }
0x13d5   :  { %v2131_v44 = vpop.xlane.xlu1 %2130 }
0x13d6   :  { %v2135_v48 = vsub.f32 %v2127_v33, %v2131_v44 }
0x13d8   :  { %v2137_v49 = vmul.f32 1.442695, %v2135_v48 }
0x13d9   :  { %v2250_v62 = vpop.permute.xlu1 %2249 }
0x13da   :  { %8423 = vpow2.f32 %v2137_v49  ;;  %v2255_v9 = vsel %vm423_vm2, %v2250_v62, 0 }
0x13dd   :  { %v2134_v50 = vpop.xlane.xlu0 %2133 }
0x13de   :  { %v2136_v52 = vsub.f32 %v2128_v42, %v2134_v50 }
0x13e0   :  { %v2139_v53 = vmul.f32 1.442695, %v2136_v52 }
0x13e2   :  { %8425 = vpow2.f32 %v2139_v53 }
0x13e4   :  { %v8424_v56 = vpop.eup %8423 }
0x13e5   :  { %v2141_v57 = vsel %vm520_vm5, %v8424_v56, 0.0 }
0x13e6   :  { %2142 = vadd.xlane.f32.xlu1 %v2141_v57 }
0x13ec   :  { %v8426_v60 = vpop.eup %8425 }
0x13ed   :  { %v2144_v61 = vsel %vm520_vm5, %v8426_v60, 0.0 }
0x13ee   :  { %2145 = vadd.xlane.f32.xlu0 %v2144_v61 }
0x13f7   :  { %2246 = vrot.lane.b32.xlu1 %v9393_v26, %s8743_s19 }
0x13fb   :  { %2298 = vrot.lane.b32.xlu1 %v9404_v29, %s8743_s19 }
0x1404   :  { %2301 = vrot.lane.b32.xlu0 %v9391_v25, %s8743_s19 }
0x1473   :  { %v2143_v0 = vpop.xlane.xlu1 %2142 }
0x1474   :  { %8427 = vrcp.f32 %v2143_v0 }
0x1477   :  { %v2247_v13 = vpop.permute.xlu1 %2246 }
0x147b   :  { %v2146_v3 = vpop.xlane.xlu0 %2145  ;;  %v2299_v45 = vpop.permute.xlu1 %2298 }
0x147c   :  { %8429 = vrcp.f32 %v2146_v3 }
0x147e   :  { %v8428_v4 = vpop.eup %8427 }
0x147f   :  { %v2149_v7 = vmul.f32 %v8428_v4, %v8424_v56  ;;  %v2302_v12 = vpop.permute.xlu0 %2301 }
0x1480   :  { %v2307_v14 = vsel %vm423_vm2, %v2302_v12, 0 }
0x1481   :  { %v2151_v8 = vpack.c.bf16 %v2149_v7, %v2149_v7 }
0x1483   :  { %7726 = vmatmul.mubr.msk.bf16.vlgmr.msra.gmra.mrb[44].mxu0 %vm520_vm5, %v2151_v8 }
0x1484   :  { %7736 = vmatpush3.bf16.xpose.msra.mxu0 %v2255_v9  ;;  %7737 = vmatprep.mubr.msk.bf16.mxu0 %vm8741_vm1, %v8740_v16 }
0x1485   :  { %7747 = vmatprep.subr.bf16.mxu0 %v8740_v16 }
0x1486   :  { %v8430_v10 = vpop.eup %8429 }
0x1487   :  { %v2150_v11 = vmul.f32 %v8430_v10, %v8426_v60 }
0x1489   :  { %v2152_v36 = vpack.c.bf16 %v2150_v11, %v2150_v11 }
0x148b   :  { %7732 = vmatmul.mubr.msk.bf16.vlgmr.msra.gmra.mrb[64].mxu1 %vm520_vm5, %v2152_v36  ;;  %7738 = vmatmul.mubr.msk.bf16.vlgmr.msra.gmra.mrb[48].mxu0 %vm423_vm2, %v2247_v13 }
0x148c   :  { %7742 = vmatpush3.bf16.xpose.msra.mxu1 %v2307_v14  ;;  %7743 = vmatprep.mubr.msk.bf16.mxu1 %vm8741_vm1, %v8740_v16 }
0x148d   :  { %7753 = vmatprep.subr.bf16.mxu1 %v8740_v16  ;;  %7749 = vmatprep.mubr.msk.bf16.mxu0 %vm8741_vm1, %v8740_v16 }
0x1493   :  { %7744 = vmatmul.mubr.msk.bf16.vlgmr.msra.gmra.mrb[68].mxu1 %vm423_vm2, %v2299_v45 }
0x1494   :  { %7755 = vmatprep.mubr.msk.bf16.mxu1 %vm8741_vm1, %v8740_v16 }
0x1556   :  { %v9443_v47 = vpop.f32.mrb[44].mxu0 }
0x1557   :  { %v7727_v15 = vpop.f32.mrb[45].mxu0 }
0x1558   :  { %v2196_v17 = vpop.f32.mrb[46].mxu0 }
0x1559   :  { %v7728_v1 = vpop.f32.mrb[47].mxu0 }
0x155e   :  { %v9445_v46 = vpop.f32.mrb[64].mxu1  ;;  %v2291_v54 = vpop.f32.mrb[48].mxu0 }
0x155f   :  { %v2349_v18 = vmul.f32 0.5, %v2291_v54  ;;  %v7733_v19 = vpop.f32.mrb[65].mxu1  ;;  %v7739_v20 = vpop.f32.mrb[49].mxu0 }
0x1560   :  { %v2242_v21 = vpop.f32.mrb[66].mxu1  ;;  %v2294_v23 = vpop.f32.mrb[50].mxu0 }
0x1561   :  { %v7734_v27 = vpop.f32.mrb[67].mxu1  ;;  %v7740_v55 = vpop.f32.mrb[51].mxu0  ;;  %v2351_v30 = vadd.f32 %v2349_v18, %v9037_v5 }
0x1563   :  { %v2353_v51 = vsel %vm520_vm5, %v2351_v30, -inf }
0x1564   :  { %2354 = vmax.xlane.f32.xlu1 %v2353_v51 }
0x1566   :  { %v2343_v31 = vpop.f32.mrb[68].mxu1 }
0x1567   :  { %v2350_v6 = vmul.f32 0.5, %v2343_v31  ;;  %v7745_v32 = vpop.f32.mrb[69].mxu1 }
0x1568   :  { %v2346_v33 = vpop.f32.mrb[70].mxu1 }
0x1569   :  { %v7746_v34 = vpop.f32.mrb[71].mxu1  ;;  %v2352_v35 = vadd.f32 %v2350_v6, %v9037_v5 }
0x156b   :  { %v2356_v37 = vsel %vm520_vm5, %v2352_v35, -inf }
0x156c   :  { %2357 = vmax.xlane.f32.xlu0 %v2356_v37 }
0x1575   :  { %2378 = vrot.lane.b32.xlu1 %v9381_v41, %s8743_s19 }
0x1579   :  { %2477 = vrot.lane.b32.xlu1 %v9386_v58, %s8744_s21 }
0x157d   :  { %2527 = vrot.lane.b32.xlu1 %v9391_v25, %s8744_s21 }
0x1581   :  { %2475 = vrot.lane.b32.xlu1 %v9393_v26, %s8744_s21 }
0x15f1   :  { %v2355_v38 = vpop.xlane.xlu1 %2354 }
0x15f2   :  { %v2359_v39 = vsub.f32 %v2351_v30, %v2355_v38 }
0x15f4   :  { %v2361_v40 = vmul.f32 1.442695, %v2359_v39 }
0x15f5   :  { %v2379_v42 = vpop.permute.xlu1 %2378 }
0x15f6   :  { %8431 = vpow2.f32 %v2361_v40  ;;  %v2384_v43 = vsel %vm548_vm3, %v2379_v42, 0 }
0x15f7   :  { %7748 = vmatpush3.bf16.msra.mxu0 %v2384_v43 }
0x15f8   :  { %7759 = vmatprep.subr.bf16.mxu0 %v8740_v16 }
0x15f9   :  { %v2358_v44 = vpop.xlane.xlu0 %2357  ;;  %v2478_v62 = vpop.permute.xlu1 %2477 }
0x15fa   :  { %v2360_v48 = vsub.f32 %v2352_v35, %v2358_v44  ;;  %v2483_v8 = vsel %vm423_vm2, %v2478_v62, 0 }
0x15fc   :  { %v2363_v49 = vmul.f32 1.442695, %v2360_v48 }
0x15fd   :  { %v2528_v9 = vpop.permute.xlu1 %2527 }
0x15fe   :  { %8433 = vpow2.f32 %v2363_v49  ;;  %v2533_v13 = vsel %vm423_vm2, %v2528_v9, 0 }
0x1600   :  { %v8432_v50 = vpop.eup %8431 }
0x1601   :  { %v2365_v52 = vsel %vm520_vm5, %v8432_v50, 0.0  ;;  %v2476_v36 = vpop.permute.xlu1 %2475 }
0x1602   :  { %2366 = vadd.xlane.f32.xlu0 %v2365_v52 }
0x1608   :  { %v8434_v53 = vpop.eup %8433 }
0x1609   :  { %v2368_v56 = vsel %vm520_vm5, %v8434_v53, 0.0 }
0x160a   :  { %2369 = vadd.xlane.f32.xlu0 %v2368_v56 }
0x1620   :  { %2427 = vrot.lane.b32.xlu0 %v9402_v28, %s8743_s19 }
0x1624   :  { %2525 = vrot.lane.b32.xlu0 %v9404_v29, %s8744_s21 }
0x168f   :  { %v2367_v57 = vpop.xlane.xlu0 %2366 }
0x1690   :  { %8435 = vrcp.f32 %v2367_v57 }
0x1697   :  { %v2370_v60 = vpop.xlane.xlu0 %2369 }
0x1698   :  { %8437 = vrcp.f32 %v2370_v60 }
0x169a   :  { %v8436_v61 = vpop.eup %8435 }
0x169b   :  { %v2428_v0 = vpop.permute.xlu0 %2427  ;;  %v2373_v3 = vmul.f32 %v8436_v61, %v8432_v50 }
0x169c   :  { %v2433_v4 = vsel %vm548_vm3, %v2428_v0, 0 }
0x169d   :  { %7754 = vmatpush3.bf16.msra.mxu1 %v2433_v4  ;;  %v2375_v7 = vpack.c.bf16 %v2373_v3, %v2373_v3 }
0x169e   :  { %7765 = vmatprep.subr.bf16.mxu1 %v8740_v16 }
0x169f   :  { %7750 = vmatmul.mubr.msk.bf16.vlgmr.msra.gmra.mrb[52].mxu0 %vm520_vm5, %v2375_v7  ;;  %v2526_v14 = vpop.permute.xlu0 %2525 }
0x16a0   :  { %7760 = vmatpush3.bf16.xpose.msra.mxu0 %v2483_v8  ;;  %7761 = vmatprep.mubr.msk.bf16.mxu0 %vm8741_vm1, %v8740_v16 }
0x16a1   :  { %7771 = vmatprep.subr.bf16.mxu0 %v8740_v16 }
0x16a2   :  { %v8438_v10 = vpop.eup %8437 }
0x16a3   :  { %v2374_v11 = vmul.f32 %v8438_v10, %v8434_v53 }
0x16a5   :  { %v2376_v12 = vpack.c.bf16 %v2374_v11, %v2374_v11 }
0x16a7   :  { %7756 = vmatmul.mubr.msk.bf16.vlgmr.msra.gmra.mrb[72].mxu1 %vm520_vm5, %v2376_v12  ;;  %7762 = vmatmul.mubr.msk.bf16.vlgmr.msra.gmra.mrb[56].mxu0 %vm423_vm2, %v2476_v36 }
0x16a8   :  { %7766 = vmatpush3.bf16.xpose.msra.mxu1 %v2533_v13  ;;  %7767 = vmatprep.mubr.msk.bf16.mxu1 %vm8741_vm1, %v8740_v16 }
0x16a9   :  { %7777 = vmatprep.subr.bf16.mxu1 %v8740_v16  ;;  %7773 = vmatprep.mubr.msk.bf16.mxu0 %vm8741_vm1, %v8740_v16 }
0x16af   :  { %7768 = vmatmul.mubr.msk.bf16.vlgmr.msra.gmra.mrb[76].mxu1 %vm423_vm2, %v2526_v14 }
0x16b0   :  { %7779 = vmatprep.mubr.msk.bf16.mxu1 %vm8741_vm1, %v8740_v16 }
0x1772   :  { %v9485_v45 = vpop.f32.mrb[52].mxu0 }
0x1773   :  { %v7751_v15 = vpop.f32.mrb[53].mxu0 }
0x1774   :  { %v2423_v17 = vpop.f32.mrb[54].mxu0 }
0x1775   :  { %v7752_v1 = vpop.f32.mrb[55].mxu0 }
0x177a   :  { %v9487_v54 = vpop.f32.mrb[72].mxu1  ;;  %v2519_v18 = vpop.f32.mrb[56].mxu0 }
0x177b   :  { %v8154_v19 = vpack.i.bf16 %v9487_v54, %v9485_v45  ;;  %v2575_v20 = vmul.f32 0.5, %v2519_v18  ;;  %v7757_v21 = vpop.f32.mrb[73].mxu1  ;;  %v7763_v23 = vpop.f32.mrb[57].mxu0 }
0x177c   :  { %v2472_v27 = vpop.f32.mrb[74].mxu1  ;;  %v2522_v55 = vpop.f32.mrb[58].mxu0 }
0x177d   :  { %v7758_v30 = vpop.f32.mrb[75].mxu1  ;;  %v7764_v51 = vpop.f32.mrb[59].mxu0  ;;  %v2577_v31 = vadd.f32 %v2575_v20, %v9037_v5 }
0x177f   :  { %v2579_v6 = vsel %vm520_vm5, %v2577_v31, -inf }
0x1780   :  { %2580 = vmax.xlane.f32.xlu1 %v2579_v6 }
0x1782   :  { %v2569_v32 = vpop.f32.mrb[76].mxu1 }
0x1783   :  { %v2576_v33 = vmul.f32 0.5, %v2569_v32  ;;  %v7769_v34 = vpop.f32.mrb[77].mxu1 }
0x1784   :  { %v2572_v35 = vpop.f32.mrb[78].mxu1 }
0x1785   :  { %v7770_v37 = vpop.f32.mrb[79].mxu1  ;;  %v2578_v38 = vadd.f32 %v2576_v33, %v9037_v5 }
0x1787   :  { %v2582_v39 = vsel %vm520_vm5, %v2578_v38, -inf }
0x1788   :  { %2583 = vmax.xlane.f32.xlu0 %v2582_v39 }
0x1791   :  { %2603 = vrot.lane.b32.xlu1 %v9381_v41, %s8744_s21 }
0x1795   :  { %2701 = vrot.lane.b32.xlu1 %v9386_v58, %s8745_s26 }
0x1799   :  { %2751 = vrot.lane.b32.xlu1 %v9391_v25, %s8745_s26 }
0x179d   :  { %2699 = vrot.lane.b32.xlu1 %v9393_v26, %s8745_s26 }
0x180d   :  { %v2581_v40 = vpop.xlane.xlu1 %2580 }
0x180e   :  { %v2585_v42 = vsub.f32 %v2577_v31, %v2581_v40 }
0x1810   :  { %v2587_v43 = vmul.f32 1.442695, %v2585_v42 }
0x1811   :  { %v2604_v44 = vpop.permute.xlu1 %2603 }
0x1812   :  { %8439 = vpow2.f32 %v2587_v43  ;;  %v2609_v48 = vsel %vm548_vm3, %v2604_v44, 0 }
0x1813   :  { %7772 = vmatpush3.bf16.msra.mxu0 %v2609_v48 }
0x1814   :  { %7783 = vmatprep.subr.bf16.mxu0 %v8740_v16 }
0x1815   :  { %v2584_v49 = vpop.xlane.xlu0 %2583  ;;  %v2702_v61 = vpop.permute.xlu1 %2701 }
0x1816   :  { %v2586_v50 = vsub.f32 %v2578_v38, %v2584_v49  ;;  %v2707_v7 = vsel %vm423_vm2, %v2702_v61, 0 }
0x1818   :  { %v2589_v52 = vmul.f32 1.442695, %v2586_v50 }
0x1819   :  { %v2752_v8 = vpop.permute.xlu1 %2751 }
0x181a   :  { %8441 = vpow2.f32 %v2589_v52  ;;  %v2757_v12 = vsel %vm423_vm2, %v2752_v8, 0  ;;  %v8258_v8 = vld [vmem:[%s10454_s6 + $0x38] sm:$0xff]  }
0x181c   :  { %v8440_v58 = vpop.eup %8439 }
0x181d   :  { %v2591_v25 = vsel %vm520_vm5, %v8440_v58, 0.0  ;;  %v2700_v11 = vpop.permute.xlu1 %2699 }
0x181e   :  { %2592 = vadd.xlane.f32.xlu0 %v2591_v25 }
0x1824   :  { %v8442_v53 = vpop.eup %8441 }
0x1825   :  { %v2594_v26 = vsel %vm520_vm5, %v8442_v53, 0.0 }
0x1826   :  { %2595 = vadd.xlane.f32.xlu0 %v2594_v26 }
0x183c   :  { %2651 = vrot.lane.b32.xlu0 %v9402_v28, %s8744_s21 }
0x1840   :  { %2749 = vrot.lane.b32.xlu0 %v9404_v29, %s8745_s26 }
0x18ab   :  { %v2593_v56 = vpop.xlane.xlu0 %2592 }
0x18ac   :  { %8443 = vrcp.f32 %v2593_v56 }
0x18b3   :  { %v2596_v57 = vpop.xlane.xlu0 %2595 }
0x18b4   :  { %8445 = vrcp.f32 %v2596_v57 }
0x18b6   :  { %v8444_v60 = vpop.eup %8443 }
0x18b7   :  { %v2652_v62 = vpop.permute.xlu0 %2651  ;;  %v2599_v0 = vmul.f32 %v8444_v60, %v8440_v58 }
0x18b8   :  { %v2657_v3 = vsel %vm548_vm3, %v2652_v62, 0 }
0x18b9   :  { %7778 = vmatpush3.bf16.msra.mxu1 %v2657_v3  ;;  %v2601_v4 = vpack.c.bf16 %v2599_v0, %v2599_v0 }
0x18ba   :  { %7789 = vmatprep.subr.bf16.mxu1 %v8740_v16 }
0x18bb   :  { %7774 = vmatmul.mubr.msk.bf16.vlgmr.msra.gmra.mrb[60].mxu0 %vm520_vm5, %v2601_v4  ;;  %v2750_v36 = vpop.permute.xlu0 %2749  ;;  %v8256_v4 = vld [vmem:[%s10454_s6 + $0x28] sm:$0xff]  }
0x18bc   :  { %7784 = vmatpush3.bf16.xpose.msra.mxu0 %v2707_v7  ;;  %7785 = vmatprep.mubr.msk.bf16.mxu0 %vm8741_vm1, %v8740_v16  ;;  %v8257_v7 = vld [vmem:[%s10454_s6 + $0x30] sm:$0xff]  }
0x18bd   :  { %7795 = vmatprep.subr.bf16.mxu0 %v8740_v16 }
0x18be   :  { %v8446_v29 = vpop.eup %8445 }
0x18bf   :  { %v2600_v9 = vmul.f32 %v8446_v29, %v8442_v53 }
0x18c1   :  { %v2602_v10 = vpack.c.bf16 %v2600_v9, %v2600_v9 }
0x18c3   :  { %7780 = vmatmul.mubr.msk.bf16.vlgmr.msra.gmra.mrb[80].mxu1 %vm520_vm5, %v2602_v10  ;;  %7786 = vmatmul.mubr.msk.bf16.vlgmr.msra.gmra.mrb[64].mxu0 %vm423_vm2, %v2700_v11 }
0x18c4   :  { %7790 = vmatpush3.bf16.xpose.msra.mxu1 %v2757_v12  ;;  %7791 = vmatprep.mubr.msk.bf16.mxu1 %vm8741_vm1, %v8740_v16 }
0x18c5   :  { %7801 = vmatprep.subr.bf16.mxu1 %v8740_v16  ;;  %7797 = vmatprep.mubr.msk.bf16.mxu0 %vm8741_vm1, %v8740_v16 }
0x18cb   :  { %7792 = vmatmul.mubr.msk.bf16.vlgmr.msra.gmra.mrb[84].mxu1 %vm423_vm2, %v2750_v36 }
0x18cc   :  { %7803 = vmatprep.mubr.msk.bf16.mxu1 %vm8741_vm1, %v8740_v16 }
0x198e   :  { %v2645_v13 = vpop.f32.mrb[60].mxu0 }
0x198f   :  { %v7775_v14 = vpop.f32.mrb[61].mxu0 }
0x1990   :  { %v2648_v15 = vpop.f32.mrb[62].mxu0 }
0x1991   :  { %v7776_v17 = vpop.f32.mrb[63].mxu0 }
0x1996   :  { %v2693_v1 = vpop.f32.mrb[80].mxu1  ;;  %v2743_v18 = vpop.f32.mrb[64].mxu0 }
0x1997   :  { %v8159_v20 = vpack.i.bf16 %v2693_v1, %v2645_v13  ;;  %v2799_v21 = vmul.f32 0.5, %v2743_v18  ;;  %v7781_v23 = vpop.f32.mrb[81].mxu1  ;;  %v7787_v27 = vpop.f32.mrb[65].mxu0 }
0x1998   :  { %v2696_v55 = vpop.f32.mrb[82].mxu1  ;;  %v2746_v30 = vpop.f32.mrb[66].mxu0 }
0x1999   :  { %v7782_v51 = vpop.f32.mrb[83].mxu1  ;;  %v7788_v31 = vpop.f32.mrb[67].mxu0  ;;  %v2801_v6 = vadd.f32 %v2799_v21, %v9037_v5 }
0x199b   :  { %v2803_v32 = vsel %vm520_vm5, %v2801_v6, -inf }
0x199c   :  { %2804 = vmax.xlane.f32.xlu1 %v2803_v32 }
0x199e   :  { %v2793_v33 = vpop.f32.mrb[84].mxu1 }
0x199f   :  { %v2800_v34 = vmul.f32 0.5, %v2793_v33  ;;  %v7793_v35 = vpop.f32.mrb[85].mxu1 }
0x19a0   :  { %v2796_v37 = vpop.f32.mrb[86].mxu1 }
0x19a1   :  { %v7794_v38 = vpop.f32.mrb[87].mxu1  ;;  %v2802_v39 = vadd.f32 %v2800_v34, %v9037_v5  ;;  %v6870_v37 = vld [vmem:[#allocation8 + $0x1] ss:$0 sm:$0xff] }
0x19a3   :  { %v2806_v40 = vsel %vm520_vm5, %v2802_v39, -inf }
0x19a4   :  { %2807 = vmax.xlane.f32.xlu0 %v2806_v40 }
0x19ad   :  { %2827 = vrot.lane.b32.xlu1 %v9381_v41, %s8745_s26 }
0x19b1   :  { %8155 = vrot.lane.b32.xlu1 %v8154_v19, %s8746_s23 }
0x19b5   :  { %8160 = vrot.lane.b32.xlu1 %v8159_v20, %s8747_s20 }
0x1a29   :  { %v2805_v42 = vpop.xlane.xlu1 %2804 }
0x1a2a   :  { %v2809_v43 = vsub.f32 %v2801_v6, %v2805_v42 }
0x1a2c   :  { %v2811_v44 = vmul.f32 1.442695, %v2809_v43 }
0x1a2d   :  { %v2828_v48 = vpop.permute.xlu1 %2827 }
0x1a2e   :  { %8447 = vpow2.f32 %v2811_v44  ;;  %v2833_v49 = vsel %vm548_vm3, %v2828_v48, 0 }
0x1a2f   :  { %7796 = vmatpush3.bf16.msra.mxu0 %v2833_v49 }
0x1a30   :  { %7807 = vmatprep.subr.bf16.mxu0 %v8740_v16 }
0x1a31   :  { %v2808_v50 = vpop.xlane.xlu0 %2807  ;;  %v8156_v17 = vpop.permute.xlu1 %8155 }
0x1a32   :  { %v2810_v52 = vsub.f32 %v2802_v39, %v2808_v50  ;;  %v8158_v18 = vunpack.i.h.bf16 %v8156_v17  ;;  %v8157_v20 = vunpack.i.l.bf16 %v8156_v17 }
0x1a34   :  { %v2813_v41 = vmul.f32 1.442695, %v2810_v52  ;;  %v2948_v55 = vsel %vm423_vm2, %v9445_v46, %v8158_v18  ;;  %v2947_v30 = vsel %vm423_vm2, %v9443_v47, %v8157_v20 }
0x1a35   :  { %v8161_v1 = vpop.permute.xlu1 %8160 }
0x1a36   :  { %8449 = vpow2.f32 %v2813_v41  ;;  %v8163_v21 = vunpack.i.h.bf16 %v8161_v1  ;;  %v8162_v23 = vunpack.i.l.bf16 %v8161_v1 }
0x1a38   :  { %v8448_v58 = vpop.eup %8447  ;;  %v2950_v6 = vsel %vm1342_vm6, %v2948_v55, %v8163_v21  ;;  %v2949_v32 = vsel %vm1342_vm6, %v2947_v30, %v8162_v23  ;;  %v6876_v23 = vld [vmem:[#allocation10 + $0x1] ss:$0 sm:$0xff] }
0x1a39   :  { %v2815_v45 = vsel %vm520_vm5, %v8448_v58, 0.0 }
0x1a3a   :  { %2816 = vadd.xlane.f32.xlu0 %v2815_v45 }
0x1a40   :  { %v8450_v54 = vpop.eup %8449 }
0x1a41   :  { %v2818_v19 = vsel %vm520_vm5, %v8450_v54, 0.0 }
0x1a42   :  { %2819 = vadd.xlane.f32.xlu0 %v2818_v19 }
0x1a58   :  { %2875 = vrot.lane.b32.xlu0 %v9402_v28, %s8745_s26  ;;  %v8255_v28 = vld [vmem:[%s10454_s6 + $0x20] sm:$0xff]  }
0x1ac7   :  { %v2817_v25 = vpop.xlane.xlu0 %2816 }
0x1ac8   :  { %8451 = vrcp.f32 %v2817_v25 }
0x1acf   :  { %v2820_v53 = vpop.xlane.xlu0 %2819 }
0x1ad0   :  { %8453 = vrcp.f32 %v2820_v53  ;;  %v8261_v53 = vld [vmem:[%s10458_s10 + $0x44] ss:$8 sps:$4 sm:$0xff]  }
0x1ad2   :  { %v8452_v26 = vpop.eup %8451 }
0x1ad3   :  { %v2876_v56 = vpop.permute.xlu0 %2875  ;;  %v2823_v57 = vmul.f32 %v8452_v26, %v8448_v58  ;;  %v8259_v26 = vld [vmem:[%s10458_s10 + $0x40] ss:$8 sps:$4 sm:$0xff]  }
0x1ad4   :  { %v2881_v60 = vsel %vm548_vm3, %v2876_v56, 0  ;;  %v8264_v56 = vld [vmem:[%s10458_s10 + $0x54] ss:$8 sps:$4 sm:$0xff]  }
0x1ad5   :  { %7802 = vmatpush3.bf16.msra.mxu1 %v2881_v60  ;;  %v2825_v61 = vpack.c.bf16 %v2823_v57, %v2823_v57  ;;  %v8262_v57 = vld [vmem:[%s10458_s10 + $0x50] ss:$8 sps:$4 sm:$0xff]   ;;  %v8267_v60 = vld [vmem:[%s10458_s10 + $0x64] ss:$8 sps:$4 sm:$0xff]  }
0x1ad6   :  { %3144 = vmatprep.subr.bf16.mxu1 %v8261_v53 }
0x1ad7   :  { %7798 = vmatmul.mubr.msk.bf16.vlgmr.msra.gmra.mrb[68].mxu0 %vm520_vm5, %v2825_v61  ;;  %v8265_v61 = vld [vmem:[%s10458_s10 + $0x60] ss:$8 sps:$4 sm:$0xff]  }
0x1ad8   :  { %7815 = vmatprep.mubr.msk.bf16.mxu0 %vm8741_vm1, %v8740_v16  ;;  %7808 = vmatpush3.bf16.msra.mxu0 %v8255_v28  ;;  %v8272_v28 = vld [vmem:[%s10460_s12 + $0x80] sm:$0xff]  }
0x1ad9   :  { %7809 = vmatprep.subr.bf16.mxu0 %v8740_v16 }
0x1ada   :  { %v8454_v62 = vpop.eup %8453 }
0x1adb   :  { %v2824_v0 = vmul.f32 %v8454_v62, %v8450_v54  ;;  %v8268_v62 = vld [vmem:[%s10458_s10 + $0x70] ss:$8 sps:$4 sm:$0xff]  }
0x1adc   :  { %7810 = vmatpush3.bf16.msra.mxu0 %v8256_v4  ;;  %v8273_v4 = vld [vmem:[%s10460_s12 + $0xc8] sm:$0xff]  }
0x1add   :  { %v2826_v3 = vpack.c.bf16 %v2824_v0, %v2824_v0  ;;  %7811 = vmatprep.subr.bf16.mxu0 %v8740_v16  ;;  %v8270_v0 = vld [vmem:[%s10458_s10 + $0x74] ss:$8 sps:$4 sm:$0xff]  }
0x1adf   :  { %7804 = vmatmul.mubr.msk.bf16.vlgmr.msra.gmra.mrb[88].mxu1 %vm520_vm5, %v2826_v3  ;;  %v8271_v3 = vld [vmem:[%s10460_s12 + $0xc0] sm:$0xff]  }
0x1ae0   :  { %3176 = vmatprep.mubr.bf16.mxu1 %v8749_v59  ;;  %7812 = vmatpush3.bf16.msra.mxu0 %v8257_v7  ;;  %v8274_v7 = vld [vmem:[%s10460_s12 + $0x88] sm:$0xff]  }
0x1ae1   :  { %7813 = vmatprep.subr.bf16.mxu0 %v8740_v16  ;;  %3145 = vmatpush1.bf16.msra.mxu1 %v8259_v26 }
0x1ae2   :  { %3146 = vmatprep.subr.bf16.mxu1 %v8264_v56  ;;  %v6927_v56 = vld [vmem:[%s10461_s13 + $0x1] ss:$0 sm:$0xff] }
0x1ae4   :  { %7814 = vmatpush3.bf16.msra.mxu0 %v8258_v8  ;;  %v8275_v8 = vld [vmem:[%s10460_s12 + $0xd0] sm:$0xff]  }
0x1ae5   :  { %3147 = vmatpush1.bf16.msra.mxu1 %v8262_v57  ;;  %7356 = vmatprep.subr.bf16.mxu0 %v8271_v3 }
0x1ae6   :  { %3148 = vmatprep.subr.bf16.mxu1 %v8267_v60 }
0x1ae9   :  { %3149 = vmatpush1.bf16.msra.mxu1 %v8265_v61 }
0x1aea   :  { %3150 = vmatprep.subr.bf16.mxu1 %v8270_v0 }
0x1aed   :  { %3151 = vmatpush1.bf16.msra.mxu1 %v8268_v62 }
0x1aee   :  { %7819 = vmatprep.subr.bf16.mxu1 %v8740_v16 }
0x1baa   :  { %v2869_v29 = vpop.f32.mrb[68].mxu0 }
0x1bab   :  { %v7799_v9 = vpop.f32.mrb[69].mxu0 }
0x1bac   :  { %v2872_v10 = vpop.f32.mrb[70].mxu0  ;;  %v8277_v9 = vld [vmem:[%s10460_s12 + $0xd8] sm:$0xff]  }
0x1bad   :  { %v7800_v11 = vpop.f32.mrb[71].mxu0  ;;  %v8278_v10 = vld [vmem:[%s10460_s12 + $0x98] sm:$0xff]  }
0x1bae   :  { %v8279_v11 = vld [vmem:[%s10460_s12 + $0xe0] sm:$0xff]  }
0x1bb2   :  { %v2917_v12 = vpop.f32.mrb[88].mxu1 }
0x1bb3   :  { %v8164_v36 = vpack.i.bf16 %v2917_v12, %v2869_v29  ;;  %v7805_v13 = vpop.f32.mrb[89].mxu1  ;;  %v8276_v29 = vld [vmem:[%s10460_s12 + $0x90] sm:$0xff]   ;;  %v8280_v12 = vld [vmem:[%s10460_s12 + $0xa0] sm:$0xff]  }
0x1bb4   :  { %v2920_v14 = vpop.f32.mrb[90].mxu1 }
0x1bb5   :  { %8165 = vrot.lane.b32.xlu1 %v8164_v36, %s8748_s25  ;;  %v7806_v15 = vpop.f32.mrb[91].mxu1  ;;  %v8281_v36 = vld [vmem:[%s10460_s12 + $0xe8] sm:$0xff]  }
0x1c27   :  { %v8166_v27 = vpop.permute.xlu1 %8165 }
0x1c28   :  { %v8168_v51 = vunpack.i.h.bf16 %v8166_v27  ;;  %v8167_v31 = vunpack.i.l.bf16 %v8166_v27 }
0x1c2a   :  { %v2952_v33 = vsel %vm1345_vm7, %v2950_v6, %v8168_v51  ;;  %v2951_v34 = vsel %vm1345_vm7, %v2949_v32, %v8167_v31  ;;  %v6877_v51 = vld [vmem:[#allocation11 + $0x1] ss:$0 sm:$0xff] }
0x1c2b   :  { %v2953_v35 = vpack.c.bf16 %v2952_v33, %v2951_v34  ;;  %v8282_v34 = vld [vmem:[%s10460_s12 + $0xa8] sm:$0xff]  }
0x1c2d   :  { %7816 = vmatmul.mubr.msk.bf16.vlgmr.msra.gmra.mrb[72].mxu0 %vm154_vm0, %v2953_v35  ;;  %v8283_v35 = vld [vmem:[%s10460_s12 + $0xf0] sm:$0xff]  }
0x1c2e   :  { %7357 = vmatpush3.bf16.msra.mxu0 %v8272_v28 }
0x1c2f   :  { %7358 = vmatprep.subr.bf16.mxu0 %v8273_v4 }
0x1c32   :  { %7359 = vmatpush3.bf16.msra.mxu0 %v8274_v7 }
0x1c33   :  { %7360 = vmatprep.subr.bf16.mxu0 %v8275_v8 }
0x1c36   :  { %7361 = vmatpush3.bf16.msra.mxu0 %v8276_v29 }
0x1c37   :  { %7362 = vmatprep.subr.bf16.mxu0 %v8277_v9 }
0x1c3a   :  { %7363 = vmatpush3.bf16.msra.mxu0 %v8278_v10 }
0x1c3b   :  { %7364 = vmatprep.subr.bf16.mxu0 %v8279_v11 }
0x1c3e   :  { %7365 = vmatpush3.bf16.msra.mxu0 %v8280_v12 }
0x1c3f   :  { %7366 = vmatprep.subr.bf16.mxu0 %v8281_v36 }
0x1c42   :  { %7367 = vmatpush3.bf16.msra.mxu0 %v8282_v34 }
0x1c43   :  { %7368 = vmatprep.subr.bf16.mxu0 %v8283_v35  ;;  %v6944_v35 = vld [vmem:[#allocation5 + $0x2] ss:$0 sm:$0xff] }
0x1d00   :  { %v3029_v38 = vpop.f32.mrb[72].mxu0 }
0x1d01   :  { %v3030_v39 = vadd.f32 %v6870_v37, %v3029_v38  ;;  %v7817_v46 = vpop.f32.mrb[73].mxu0  ;;  %v8285_v38 = vld [vmem:[%s10460_s12 + $0xf8] sm:$0xff]  }
0x1d02   :  { %v3032_v40 = vpop.f32.mrb[74].mxu0  ;;  %v3089_v46 = vld [vmem:[#allocation13 + $0x1] ss:$4 sm:$0x3] }
0x1d03   :  { %v9578_v47 = vadd.f32 %v3030_v39, %v9311_v22  ;;  %v3033_v42 = vadd.f32 %v6870_v37, %v3032_v40  ;;  %v7818_v43 = vpop.f32.mrb[75].mxu0  ;;  %v8284_v37 = vld [vmem:[%s10460_s12 + $0xb0] sm:$0xff]   ;;  %v8286_v39 = vld [vmem:[%s10460_s12 + $0xb8] sm:$0xff]   ;;  %v3094_v40 = vrot.slane %v3089_v46, %v9298_v63 }
0x1d04   :  { %7369 = vmatpush3.bf16.msra.mxu0 %v8284_v37 }
0x1d05   :  { %v9581_v44 = vadd.f32 %v3033_v42, %v9314_v24  ;;  %v3040_v48 = vsel %vm154_vm0, %v9578_v47, 0.0  ;;  %7370 = vmatprep.subr.bf16.mxu0 %v8285_v38  ;;  %v3098_v42 = vrot.slane %v3089_v46, %v9301_v2 }
0x1d06   :  { %3041 = vadd.xlane.f32.xlu0 %v3040_v48 }
0x1d07   :  { %v3043_v49 = vsel %vm154_vm0, %v9581_v44, 0.0 }
0x1d08   :  { %3044 = vadd.xlane.f32.xlu1 %v3043_v49  ;;  %7371 = vmatpush3.bf16.msra.mxu0 %v8286_v39 }
0x1d09   :  { %7843 = vmatprep.subr.bf16.mxu0 %v8740_v16 }
0x1d93   :  { %v3042_v50 = vpop.xlane.xlu0 %3041 }
0x1d94   :  { %v3046_v52 = vmul.f32 0.015625, %v3042_v50 }
0x1d95   :  { %v3045_v41 = vpop.xlane.xlu1 %3044 }
0x1d96   :  { %v3048_v58 = vsub.f32 %v9578_v47, %v3046_v52  ;;  %v3047_v22 = vmul.f32 0.015625, %v3045_v41 }
0x1d98   :  { %v3049_v45 = vsub.f32 %v9581_v44, %v3047_v22  ;;  %v3050_v54 = vmul.f32 %v3048_v58, %v3048_v58 }
0x1d9a   :  { %v3052_v24 = vsel %vm154_vm0, %v3050_v54, 0.0  ;;  %v3051_v19 = vmul.f32 %v3049_v45, %v3049_v45 }
0x1d9b   :  { %3053 = vadd.xlane.f32.xlu0 %v3052_v24 }
0x1d9c   :  { %v3055_v25 = vsel %vm154_vm0, %v3051_v19, 0.0 }
0x1d9f   :  { %3056 = vadd.xlane.f32.xlu0 %v3055_v25 }
0x1e28   :  { %v3054_v13 = vpop.xlane.xlu0 %3053 }
0x1e29   :  { %v3058_v14 = vmul.f32 0.015625, %v3054_v13 }
0x1e2b   :  { %v3060_v15 = vadd.f32 1e-05, %v3058_v14 }
0x1e2c   :  { %v3057_v17 = vpop.xlane.xlu0 %3056 }
0x1e2d   :  { %8455 = vrsqrt.f32 %v3060_v15  ;;  %v3059_v1 = vmul.f32 0.015625, %v3057_v17  ;;  %v8287_v17 = vld [vmem:[%s10451_s3 + $0x40] sm:$0xff]  }
0x1e2f   :  { %v3061_v18 = vadd.f32 1e-05, %v3059_v1  ;;  %v8288_v1 = vld [vmem:[%s10453_s5 + $0x40] sm:$0xff]  }
0x1e31   :  { %8457 = vrsqrt.f32 %v3061_v18  ;;  %v8289_v18 = vld [vmem:[%s10451_s3 + $0x48] sm:$0xff]  }
0x1e37   :  { %v8456_v20 = vpop.eup %8455 }
0x1e38   :  { %v3064_v21 = vmul.f32 %v8456_v20, %v3048_v58  ;;  %v8290_v20 = vld [vmem:[%s10453_s5 + $0x48] sm:$0xff]  }
0x1e3a   :  { %v3070_v55 = vmul.f32 %v6876_v23, %v3064_v21  ;;  %v8291_v21 = vld [vmem:[%s10451_s3 + $0x50] sm:$0xff]  }
0x1e3b   :  { %v8458_v27 = vpop.eup %8457 }
0x1e3c   :  { %v3065_v30 = vmul.f32 %v8458_v27, %v3049_v45  ;;  %v3076_v6 = vadd.f32 %v6877_v51, %v3070_v55  ;;  %v8293_v27 = vld [vmem:[%s10451_s3 + $0x58] sm:$0xff]  }
0x1e3d   :  { %v8294_v55 = vld [vmem:[%s10453_s5 + $0x58] sm:$0xff]  }
0x1e3e   :  { %v3071_v31 = vmul.f32 %v6876_v23, %v3065_v30  ;;  %v8292_v23 = vld [vmem:[%s10453_s5 + $0x50] sm:$0xff]  }
0x1e40   :  { %v3077_v32 = vadd.f32 %v6877_v51, %v3071_v31 }
0x1e42   :  { %v3078_v33 = vpack.c.bf16 %v3077_v32, %v3076_v6 }
0x1e44   :  { %6894 = vmatmul.mubr.msk.bf16.vlgmr.msra.gmra.mrb[92].mxu1 %vm154_vm0, %v3078_v33 }
0x1e45   :  { %7827 = vmatprep.mubr.msk.bf16.mxu1 %vm8741_vm1, %v8740_v16  ;;  %7820 = vmatpush3.bf16.msra.mxu1 %v8287_v17 }
0x1e46   :  { %7821 = vmatprep.subr.bf16.mxu1 %v8740_v16 }
0x1e49   :  { %7822 = vmatpush3.bf16.msra.mxu1 %v8289_v18 }
0x1e4a   :  { %7823 = vmatprep.subr.bf16.mxu1 %v8740_v16 }
0x1e4d   :  { %7824 = vmatpush3.bf16.msra.mxu1 %v8291_v21 }
0x1e4e   :  { %7825 = vmatprep.subr.bf16.mxu1 %v8740_v16 }
0x1e51   :  { %7826 = vmatpush3.bf16.msra.mxu1 %v8293_v27 }
0x1e52   :  { %7831 = vmatprep.subr.bf16.mxu1 %v8740_v16 }
0x1f17   :  { %v3178_v43 = vpop.f32.mrb[92].mxu1 }
0x1f18   :  { %v3179_v48 = vadd.f32 %v3178_v43, %v3094_v40  ;;  %v3180_v49 = vpop.f32.mrb[93].mxu1 }
0x1f19   :  { %v3181_v50 = vadd.f32 %v3180_v49, %v3098_v42  ;;  %v3182_v52 = vpop.f32.mrb[94].mxu1  ;;  %v8295_v49 = vld [vmem:[%s10452_s4 + $0x40] sm:$0xff]  }
0x1f1a   :  { %v3183_v41 = vadd.f32 %v3182_v52, %v3094_v40  ;;  %v3184_v58 = vpop.f32.mrb[95].mxu1  ;;  %v3187_v45 = vmax.f32 %v3179_v48, 0.0  ;;  %v6945_v40 = vld [vmem:[#allocation7 + $0x2] ss:$0 sm:$0xff]  ;;  %v8296_v52 = vld [vmem:[%s10452_s4 + $0x48] sm:$0xff]  }
0x1f1b   :  { %v3185_v22 = vadd.f32 %v3184_v58, %v3098_v42  ;;  %v3188_v24 = vmax.f32 %v3181_v50, 0.0  ;;  %v8298_v58 = vld [vmem:[%s10452_s4 + $0x58] sm:$0xff]  }
0x1f1c   :  { %v3189_v54 = vmax.f32 %v3183_v41, 0.0  ;;  %v8297_v41 = vld [vmem:[%s10452_s4 + $0x50] sm:$0xff]  }
0x1f1d   :  { %v3190_v19 = vmax.f32 %v3185_v22, 0.0 }
0x1f1e   :  { %v3191_v25 = vpack.c.bf16 %v3189_v54, %v3187_v45 }
0x1f1f   :  { %v3192_v53 = vpack.c.bf16 %v3190_v19, %v3188_v24 }
0x1f21   :  { %3359 = vmatprep.mubr.bf16.mxu0 %v3192_v53 }
0x1f22   :  { %3360 = vmatmul.mubr.bf16.vlgmr.msra.gmra.mrb[76].mxu0 %v3191_v25 }
0x1f23   :  { %7851 = vmatprep.mubr.msk.bf16.mxu0 %vm8741_vm1, %v8740_v16  ;;  %7844 = vmatpush3.bf16.msra.mxu0 %v8288_v1 }
0x1f24   :  { %7845 = vmatprep.subr.bf16.mxu0 %v8740_v16 }
0x1f27   :  { %7846 = vmatpush3.bf16.msra.mxu0 %v8290_v20 }
0x1f28   :  { %7847 = vmatprep.subr.bf16.mxu0 %v8740_v16 }
0x1f2b   :  { %7848 = vmatpush3.bf16.msra.mxu0 %v8292_v23 }
0x1f2c   :  { %7849 = vmatprep.subr.bf16.mxu0 %v8740_v16 }
0x1f2f   :  { %7850 = vmatpush3.bf16.msra.mxu0 %v8294_v55 }
0x1f30   :  { %7867 = vmatprep.subr.bf16.mxu0 %v8740_v16 }
0x1ff5   :  { %v7372_v26 = vpop.f32.mrb[76].mxu0 }
0x1ff6   :  { %v7373_v57 = vpop.f32.mrb[77].mxu0 }
0x1ff7   :  { %v7374_v60 = vadd.f32 %v7373_v57, %v7372_v26  ;;  %v7375_v61 = vpop.f32.mrb[78].mxu0 }
0x1ff8   :  { %v7376_v62 = vpop.f32.mrb[79].mxu0 }
0x1ff9   :  { %v3362_v0 = vadd.f32 %v7374_v60, %v6927_v56  ;;  %v7377_v3 = vadd.f32 %v7376_v62, %v7375_v61 }
0x1ffb   :  { %v9676_v28 = vadd.f32 %v3362_v0, %v9578_v47  ;;  %v3365_v4 = vadd.f32 %v7377_v3, %v6927_v56 }
0x1ffd   :  { %v9679_v7 = vadd.f32 %v3365_v4, %v9581_v44  ;;  %v3372_v8 = vsel %vm154_vm0, %v9676_v28, 0.0 }
0x1ffe   :  { %3373 = vadd.xlane.f32.xlu0 %v3372_v8 }
0x1fff   :  { %v3375_v29 = vsel %vm154_vm0, %v9679_v7, 0.0 }
0x2000   :  { %3376 = vadd.xlane.f32.xlu1 %v3375_v29 }
0x208b   :  { %v3374_v9 = vpop.xlane.xlu0 %3373 }
0x208c   :  { %v3378_v10 = vmul.f32 0.015625, %v3374_v9 }
0x208d   :  { %v3377_v11 = vpop.xlane.xlu1 %3376 }
0x208e   :  { %v3380_v12 = vsub.f32 %v9676_v28, %v3378_v10  ;;  %v3379_v36 = vmul.f32 0.015625, %v3377_v11 }
0x2090   :  { %v3381_v47 = vsub.f32 %v9679_v7, %v3379_v36  ;;  %v3382_v13 = vmul.f32 %v3380_v12, %v3380_v12 }
0x2092   :  { %v3384_v44 = vsel %vm154_vm0, %v3382_v13, 0.0  ;;  %v3383_v14 = vmul.f32 %v3381_v47, %v3381_v47 }
0x2093   :  { %3385 = vadd.xlane.f32.xlu0 %v3384_v44 }
0x2094   :  { %v3387_v15 = vsel %vm154_vm0, %v3383_v14, 0.0 }
0x2095   :  { %3388 = vadd.xlane.f32.xlu1 %v3387_v15 }
0x2120   :  { %v3386_v30 = vpop.xlane.xlu0 %3385 }
0x2121   :  { %v3390_v51 = vmul.f32 0.015625, %v3386_v30 }
0x2122   :  { %v3389_v31 = vpop.xlane.xlu1 %3388 }
0x2123   :  { %v3392_v6 = vadd.f32 1e-05, %v3390_v51  ;;  %v3391_v32 = vmul.f32 0.015625, %v3389_v31 }
0x2125   :  { %8459 = vrsqrt.f32 %v3392_v6  ;;  %v3393_v33 = vadd.f32 1e-05, %v3391_v32 }
0x2127   :  { %8461 = vrsqrt.f32 %v3393_v33 }
0x212f   :  { %v8460_v34 = vpop.eup %8459 }
0x2130   :  { %v3396_v37 = vmul.f32 %v8460_v34, %v3380_v12 }
0x2131   :  { %v8462_v38 = vpop.eup %8461 }
0x2132   :  { %v3402_v39 = vmul.f32 %v6944_v35, %v3396_v37  ;;  %v3397_v46 = vmul.f32 %v8462_v38, %v3381_v47 }
0x2134   :  { %v3403_v42 = vmul.f32 %v6944_v35, %v3397_v46  ;;  %v3408_v43 = vadd.f32 %v6945_v40, %v3402_v39 }
0x2136   :  { %v3409_v48 = vadd.f32 %v6945_v40, %v3403_v42 }
0x2138   :  { %v3410_v50 = vpack.c.bf16 %v3409_v48, %v3408_v43 }
0x213a   :  { %7828 = vmatmul.mubr.msk.bf16.vlgmr.msra.gmra.mrb[96].mxu1 %vm154_vm0, %v3410_v50  ;;  %7852 = vmatmul.mubr.msk.bf16.vlgmr.msra.gmra.mrb[80].mxu0 %vm154_vm0, %v3410_v50 }
0x213b   :  { %7832 = vmatpush3.bf16.msra.mxu1 %v8295_v49  ;;  %7839 = vmatprep.mubr.msk.bf16.mxu1 %vm8741_vm1, %v8740_v16 }
0x213c   :  { %7833 = vmatprep.subr.bf16.mxu1 %v8740_v16  ;;  %7869 = vmatprep.mubr.msk.bf16.mxu0 %vm8741_vm1, %v8740_v16 }
0x213f   :  { %7834 = vmatpush3.bf16.msra.mxu1 %v8296_v52 }
0x2140   :  { %7835 = vmatprep.subr.bf16.mxu1 %v8740_v16 }
0x2143   :  { %7836 = vmatpush3.bf16.msra.mxu1 %v8297_v41 }
0x2144   :  { %7837 = vmatprep.subr.bf16.mxu1 %v8740_v16 }
0x2147   :  { %7838 = vmatpush3.bf16.msra.mxu1 %v8298_v58 }
0x2148   :  { %7855 = vmatprep.subr.bf16.mxu1 %v8740_v16 }
0x214a   :  { %7840 = vmatmul.mubr.msk.bf16.vlgmr.msra.gmra.mrb[100].mxu1 %vm154_vm0, %v3410_v50 }
0x214b   :  { %7857 = vmatprep.mubr.msk.bf16.mxu1 %vm8741_vm1, %v8740_v16 }
0x220d   :  { %v3481_v22 = vpop.f32.mrb[96].mxu1  ;;  %v3629_v45 = vpop.f32.mrb[80].mxu0 }
0x220e   :  { %v9746_v54 = vpack.c.bf16 %v3629_v45, %v3629_v45  ;;  %v7829_v24 = vpop.f32.mrb[97].mxu1  ;;  %v7853_v19 = vpop.f32.mrb[81].mxu0  ;;  %v9758_v29 = vpack.c.bf16 %v3481_v22, %v3481_v22 }
0x220f   :  { %v3484_v25 = vpop.f32.mrb[98].mxu1  ;;  %v3632_v53 = vpop.f32.mrb[82].mxu0 }
0x2210   :  { %v7830_v26 = vpop.f32.mrb[99].mxu1  ;;  %v7854_v56 = vpop.f32.mrb[83].mxu0  ;;  %v3766_v57 = vsel %vm548_vm3, %v9746_v54, 0  ;;  %v9767_v10 = vpack.c.bf16 %v3632_v53, %v3632_v53  ;;  %v9769_v11 = vpack.c.bf16 %v3484_v25, %v3484_v25 }
0x2211   :  { %7868 = vmatpush3.bf16.msra.mxu0 %v3766_v57 }
0x2212   :  { %7879 = vmatprep.subr.bf16.mxu0 %v8740_v16  ;;  %v3812_v12 = vsel %vm548_vm3, %v9767_v10, 0 }
0x221d   :  { %v3555_v60 = vpop.f32.mrb[100].mxu1 }
0x221e   :  { %v9751_v61 = vpack.c.bf16 %v3555_v60, %v3555_v60  ;;  %v7841_v62 = vpop.f32.mrb[101].mxu1 }
0x221f   :  { %v3558_v0 = vpop.f32.mrb[102].mxu1 }
0x2220   :  { %v7842_v3 = vpop.f32.mrb[103].mxu1  ;;  %v3646_v4 = vsel %vm423_vm2, %v9751_v61, 0  ;;  %v9756_v8 = vpack.c.bf16 %v3558_v0, %v3558_v0 }
0x2221   :  { %7856 = vmatpush3.bf16.xpose.msra.mxu1 %v3646_v4 }
0x2222   :  { %7861 = vmatprep.subr.bf16.mxu1 %v8740_v16  ;;  %v3692_v9 = vsel %vm423_vm2, %v9756_v8, 0 }
0x2228   :  { %7858 = vmatmul.mubr.msk.bf16.vlgmr.msra.gmra.mrb[104].mxu1 %vm423_vm2, %v9758_v29 }
0x2229   :  { %7862 = vmatpush3.bf16.xpose.msra.mxu1 %v3692_v9  ;;  %7863 = vmatprep.mubr.msk.bf16.mxu1 %vm8741_vm1, %v8740_v16 }
0x222a   :  { %7873 = vmatprep.subr.bf16.mxu1 %v8740_v16 }
0x2230   :  { %7864 = vmatmul.mubr.msk.bf16.vlgmr.msra.gmra.mrb[108].mxu1 %vm423_vm2, %v9769_v11 }
0x2231   :  { %7874 = vmatpush3.bf16.msra.mxu1 %v3812_v12  ;;  %7875 = vmatprep.mubr.msk.bf16.mxu1 %vm8741_vm1, %v8740_v16 }
0x2232   :  { %7885 = vmatprep.subr.bf16.mxu1 %v8740_v16 }
0x22fb   :  { %v3682_v36 = vpop.f32.mrb[104].mxu1 }
0x22fc   :  { %v3734_v47 = vmul.f32 0.5, %v3682_v36  ;;  %v7859_v13 = vpop.f32.mrb[105].mxu1 }
0x22fd   :  { %v3685_v44 = vpop.f32.mrb[106].mxu1 }
0x22fe   :  { %v7860_v14 = vpop.f32.mrb[107].mxu1  ;;  %v3736_v15 = vadd.f32 %v3734_v47, %v9037_v5 }
0x2300   :  { %v3738_v17 = vsel %vm520_vm5, %v3736_v15, -inf }
0x2301   :  { %3739 = vmax.xlane.f32.xlu0 %v3738_v17 }
0x2303   :  { %v3728_v1 = vpop.f32.mrb[108].mxu1 }
0x2304   :  { %v3735_v18 = vmul.f32 0.5, %v3728_v1  ;;  %v7865_v20 = vpop.f32.mrb[109].mxu1 }
0x2305   :  { %v3731_v21 = vpop.f32.mrb[110].mxu1 }
0x2306   :  { %v7866_v23 = vpop.f32.mrb[111].mxu1  ;;  %v3737_v27 = vadd.f32 %v3735_v18, %v9037_v5 }
0x2308   :  { %v3741_v55 = vsel %vm520_vm5, %v3737_v27, -inf }
0x2309   :  { %3742 = vmax.xlane.f32.xlu1 %v3741_v55 }
0x231a   :  { %3910 = vrot.lane.b32.xlu1 %v9756_v8, %s8743_s19 }
0x238e   :  { %v3740_v30 = vpop.xlane.xlu0 %3739 }
0x238f   :  { %v3744_v51 = vsub.f32 %v3736_v15, %v3740_v30 }
0x2391   :  { %v3746_v31 = vmul.f32 1.442695, %v3744_v51 }
0x2393   :  { %8463 = vpow2.f32 %v3746_v31 }
0x2396   :  { %v3743_v6 = vpop.xlane.xlu1 %3742 }
0x2397   :  { %v3745_v32 = vsub.f32 %v3737_v27, %v3743_v6 }
0x2399   :  { %v3748_v33 = vmul.f32 1.442695, %v3745_v32 }
0x239a   :  { %v3911_v46 = vpop.permute.xlu1 %3910 }
0x239b   :  { %8465 = vpow2.f32 %v3748_v33  ;;  %v3916_v45 = vsel %vm423_vm2, %v3911_v46, 0 }
0x239d   :  { %v8464_v34 = vpop.eup %8463 }
0x239e   :  { %v3750_v35 = vsel %vm520_vm5, %v8464_v34, 0.0 }
0x239f   :  { %3751 = vadd.xlane.f32.xlu0 %v3750_v35 }
0x23a5   :  { %v8466_v37 = vpop.eup %8465 }
0x23a6   :  { %v3753_v38 = vsel %vm520_vm5, %v8466_v37, 0.0 }
0x23a7   :  { %3754 = vadd.xlane.f32.xlu1 %v3753_v38 }
0x23b5   :  { %3858 = vrot.lane.b32.xlu0 %v9751_v61, %s8743_s19 }
0x23b8   :  { %3855 = vrot.lane.b32.xlu1 %v9758_v29, %s8743_s19 }
0x23bc   :  { %3907 = vrot.lane.b32.xlu1 %v9769_v11, %s8743_s19 }
0x242c   :  { %v3752_v39 = vpop.xlane.xlu0 %3751 }
0x242d   :  { %8467 = vrcp.f32 %v3752_v39 }
0x2430   :  { %v3859_v48 = vpop.permute.xlu0 %3858 }
0x2431   :  { %v3864_v50 = vsel %vm423_vm2, %v3859_v48, 0 }
0x2434   :  { %v3755_v40 = vpop.xlane.xlu1 %3754 }
0x2435   :  { %8469 = vrcp.f32 %v3755_v40 }
0x2437   :  { %v8468_v42 = vpop.eup %8467 }
0x2438   :  { %v3758_v43 = vmul.f32 %v8468_v42, %v8464_v34  ;;  %v3856_v22 = vpop.permute.xlu1 %3855 }
0x243a   :  { %v3760_v49 = vpack.c.bf16 %v3758_v43, %v3758_v43 }
0x243c   :  { %7870 = vmatmul.mubr.msk.bf16.vlgmr.msra.gmra.mrb[84].mxu0 %vm520_vm5, %v3760_v49  ;;  %v3908_v24 = vpop.permute.xlu1 %3907 }
0x243d   :  { %7880 = vmatpush3.bf16.xpose.msra.mxu0 %v3864_v50  ;;  %7881 = vmatprep.mubr.msk.bf16.mxu0 %vm8741_vm1, %v8740_v16 }
0x243e   :  { %7891 = vmatprep.subr.bf16.mxu0 %v8740_v16 }
0x243f   :  { %v8470_v52 = vpop.eup %8469 }
0x2440   :  { %v3759_v41 = vmul.f32 %v8470_v52, %v8466_v37 }
0x2442   :  { %v3761_v58 = vpack.c.bf16 %v3759_v41, %v3759_v41 }
0x2444   :  { %7876 = vmatmul.mubr.msk.bf16.vlgmr.msra.gmra.mrb[112].mxu1 %vm520_vm5, %v3761_v58  ;;  %7882 = vmatmul.mubr.msk.bf16.vlgmr.msra.gmra.mrb[88].mxu0 %vm423_vm2, %v3856_v22 }
0x2445   :  { %7886 = vmatpush3.bf16.xpose.msra.mxu1 %v3916_v45  ;;  %7887 = vmatprep.mubr.msk.bf16.mxu1 %vm8741_vm1, %v8740_v16 }
0x2446   :  { %7897 = vmatprep.subr.bf16.mxu1 %v8740_v16  ;;  %7893 = vmatprep.mubr.msk.bf16.mxu0 %vm8741_vm1, %v8740_v16 }
0x244c   :  { %7888 = vmatmul.mubr.msk.bf16.vlgmr.msra.gmra.mrb[116].mxu1 %vm423_vm2, %v3908_v24 }
0x244d   :  { %7899 = vmatprep.mubr.msk.bf16.mxu1 %vm8741_vm1, %v8740_v16 }
0x250f   :  { %v9808_v19 = vpop.f32.mrb[84].mxu0 }
0x2510   :  { %v7871_v25 = vpop.f32.mrb[85].mxu0 }
0x2511   :  { %v3805_v53 = vpop.f32.mrb[86].mxu0 }
0x2512   :  { %v7872_v26 = vpop.f32.mrb[87].mxu0 }
0x2517   :  { %v9810_v56 = vpop.f32.mrb[112].mxu1  ;;  %v3900_v57 = vpop.f32.mrb[88].mxu0 }
0x2518   :  { %v3958_v60 = vmul.f32 0.5, %v3900_v57  ;;  %v7877_v62 = vpop.f32.mrb[113].mxu1  ;;  %v7883_v0 = vpop.f32.mrb[89].mxu0 }
0x2519   :  { %v3851_v3 = vpop.f32.mrb[114].mxu1  ;;  %v3903_v4 = vpop.f32.mrb[90].mxu0 }
0x251a   :  { %v3960_v9 = vadd.f32 %v3958_v60, %v9037_v5  ;;  %v7878_v12 = vpop.f32.mrb[115].mxu1  ;;  %v7884_v36 = vpop.f32.mrb[91].mxu0 }
0x251c   :  { %v3962_v47 = vsel %vm520_vm5, %v3960_v9, -inf }
0x251d   :  { %3963 = vmax.xlane.f32.xlu0 %v3962_v47 }
0x251f   :  { %v3952_v13 = vpop.f32.mrb[116].mxu1 }
0x2520   :  { %v3959_v44 = vmul.f32 0.5, %v3952_v13  ;;  %v7889_v14 = vpop.f32.mrb[117].mxu1 }
0x2521   :  { %v3955_v15 = vpop.f32.mrb[118].mxu1 }
0x2522   :  { %v3961_v17 = vadd.f32 %v3959_v44, %v9037_v5  ;;  %v7890_v1 = vpop.f32.mrb[119].mxu1 }
0x2524   :  { %v3965_v18 = vsel %vm520_vm5, %v3961_v17, -inf }
0x2525   :  { %3966 = vmax.xlane.f32.xlu1 %v3965_v18 }
0x2536   :  { %4036 = vrot.lane.b32.xlu1 %v9767_v10, %s8743_s19 }
0x253a   :  { %4086 = vrot.lane.b32.xlu1 %v9751_v61, %s8744_s21 }
0x253e   :  { %4136 = vrot.lane.b32.xlu1 %v9756_v8, %s8744_s21 }
0x2542   :  { %4134 = vrot.lane.b32.xlu1 %v9769_v11, %s8744_s21 }
0x25aa   :  { %v3964_v20 = vpop.xlane.xlu0 %3963 }
0x25ab   :  { %v3968_v21 = vsub.f32 %v3960_v9, %v3964_v20 }
0x25ad   :  { %v3970_v23 = vmul.f32 1.442695, %v3968_v21 }
0x25af   :  { %8471 = vpow2.f32 %v3970_v23 }
0x25b2   :  { %v3967_v27 = vpop.xlane.xlu1 %3966 }
0x25b3   :  { %v3969_v55 = vsub.f32 %v3961_v17, %v3967_v27 }
0x25b5   :  { %v3972_v30 = vmul.f32 1.442695, %v3969_v55 }
0x25b6   :  { %v4037_v51 = vpop.permute.xlu1 %4036 }
0x25b7   :  { %8473 = vpow2.f32 %v3972_v30  ;;  %v4042_v31 = vsel %vm548_vm3, %v4037_v51, 0 }
0x25b8   :  { %7898 = vmatpush3.bf16.msra.mxu1 %v4042_v31 }
0x25b9   :  { %v8472_v6 = vpop.eup %8471  ;;  %7909 = vmatprep.subr.bf16.mxu1 %v8740_v16 }
0x25ba   :  { %v3974_v32 = vsel %vm520_vm5, %v8472_v6, 0.0  ;;  %v4087_v43 = vpop.permute.xlu1 %4086 }
0x25bb   :  { %3975 = vadd.xlane.f32.xlu0 %v3974_v32  ;;  %v4092_v52 = vsel %vm423_vm2, %v4087_v43, 0 }
0x25be   :  { %v4137_v50 = vpop.permute.xlu1 %4136 }
0x25bf   :  { %v4142_v58 = vsel %vm423_vm2, %v4137_v50, 0 }
0x25c1   :  { %v8474_v33 = vpop.eup %8473 }
0x25c2   :  { %v3977_v34 = vsel %vm520_vm5, %v8474_v33, 0.0  ;;  %v4135_v45 = vpop.permute.xlu1 %4134 }
0x25c3   :  { %3978 = vadd.xlane.f32.xlu0 %v3977_v34 }
0x25d9   :  { %3987 = vrot.lane.b32.xlu0 %v9746_v54, %s8743_s19 }
0x25dd   :  { %4084 = vrot.lane.b32.xlu0 %v9758_v29, %s8744_s21 }
0x2648   :  { %v3976_v35 = vpop.xlane.xlu0 %3975 }
0x2649   :  { %8475 = vrcp.f32 %v3976_v35 }
0x2650   :  { %v3979_v37 = vpop.xlane.xlu0 %3978 }
0x2651   :  { %8477 = vrcp.f32 %v3979_v37 }
0x2653   :  { %v8476_v38 = vpop.eup %8475 }
0x2654   :  { %v3982_v39 = vmul.f32 %v8476_v38, %v8472_v6  ;;  %v3988_v46 = vpop.permute.xlu0 %3987 }
0x2655   :  { %v3993_v40 = vsel %vm548_vm3, %v3988_v46, 0 }
0x2656   :  { %7892 = vmatpush3.bf16.msra.mxu0 %v3993_v40  ;;  %v3984_v42 = vpack.c.bf16 %v3982_v39, %v3982_v39 }
0x2657   :  { %7903 = vmatprep.subr.bf16.mxu0 %v8740_v16 }
0x2658   :  { %v4085_v22 = vpop.permute.xlu0 %4084 }
0x2659   :  { %7894 = vmatmul.mubr.msk.bf16.vlgmr.msra.gmra.mrb[92].mxu0 %vm520_vm5, %v3984_v42 }
0x265a   :  { %7905 = vmatprep.mubr.msk.bf16.mxu0 %vm8741_vm1, %v8740_v16 }
0x265b   :  { %v8478_v48 = vpop.eup %8477 }
0x265c   :  { %v3983_v49 = vmul.f32 %v8478_v48, %v8474_v33 }
0x265e   :  { %v3985_v41 = vpack.c.bf16 %v3983_v49, %v3983_v49 }
0x265f   :  { %7904 = vmatpush3.bf16.xpose.msra.mxu0 %v4092_v52 }
0x2660   :  { %7900 = vmatmul.mubr.msk.bf16.vlgmr.msra.gmra.mrb[120].mxu1 %vm520_vm5, %v3985_v41  ;;  %7915 = vmatprep.subr.bf16.mxu0 %v8740_v16 }
0x2661   :  { %7910 = vmatpush3.bf16.xpose.msra.mxu1 %v4142_v58  ;;  %7911 = vmatprep.mubr.msk.bf16.mxu1 %vm8741_vm1, %v8740_v16 }
0x2662   :  { %7921 = vmatprep.subr.bf16.mxu1 %v8740_v16 }
0x2666   :  { %7906 = vmatmul.mubr.msk.bf16.vlgmr.msra.gmra.mrb[96].mxu0 %vm423_vm2, %v4085_v22 }
0x2667   :  { %7917 = vmatprep.mubr.msk.bf16.mxu0 %vm8741_vm1, %v8740_v16 }
0x2668   :  { %7912 = vmatmul.mubr.msk.bf16.vlgmr.msra.gmra.mrb[124].mxu1 %vm423_vm2, %v4135_v45 }
0x2669   :  { %7923 = vmatprep.mubr.msk.bf16.mxu1 %vm8741_vm1, %v8740_v16 }
0x272c   :  { %v9850_v24 = vpop.f32.mrb[92].mxu0 }
0x272d   :  { %v7895_v25 = vpop.f32.mrb[93].mxu0 }
0x272e   :  { %v4032_v53 = vpop.f32.mrb[94].mxu0 }
0x272f   :  { %v7896_v26 = vpop.f32.mrb[95].mxu0 }
0x2733   :  { %v9852_v57 = vpop.f32.mrb[120].mxu1 }
0x2734   :  { %v8169_v60 = vpack.i.bf16 %v9852_v57, %v9850_v24  ;;  %v7901_v62 = vpop.f32.mrb[121].mxu1 }
0x2735   :  { %v4081_v0 = vpop.f32.mrb[122].mxu1 }
0x2736   :  { %v7902_v3 = vpop.f32.mrb[123].mxu1 }
0x2739   :  { %v4128_v4 = vpop.f32.mrb[96].mxu0 }
0x273a   :  { %v4184_v9 = vmul.f32 0.5, %v4128_v4  ;;  %v7907_v12 = vpop.f32.mrb[97].mxu0 }
0x273b   :  { %v4131_v36 = vpop.f32.mrb[98].mxu0  ;;  %v4178_v47 = vpop.f32.mrb[124].mxu1 }
0x273c   :  { %v4186_v13 = vadd.f32 %v4184_v9, %v9037_v5  ;;  %v4185_v44 = vmul.f32 0.5, %v4178_v47  ;;  %v7908_v14 = vpop.f32.mrb[99].mxu0  ;;  %v7913_v15 = vpop.f32.mrb[125].mxu1 }
0x273d   :  { %v4181_v17 = vpop.f32.mrb[126].mxu1 }
0x273e   :  { %v4187_v1 = vadd.f32 %v4185_v44, %v9037_v5  ;;  %v7914_v18 = vpop.f32.mrb[127].mxu1  ;;  %v4188_v20 = vsel %vm520_vm5, %v4186_v13, -inf }
0x273f   :  { %4189 = vmax.xlane.f32.xlu0 %v4188_v20 }
0x2740   :  { %v4191_v21 = vsel %vm520_vm5, %v4187_v1, -inf }
0x2741   :  { %4192 = vmax.xlane.f32.xlu1 %v4191_v21 }
0x2752   :  { %4260 = vrot.lane.b32.xlu1 %v9767_v10, %s8744_s21 }
0x2756   :  { %4310 = vrot.lane.b32.xlu1 %v9751_v61, %s8745_s26 }
0x275a   :  { %4360 = vrot.lane.b32.xlu1 %v9756_v8, %s8745_s26 }
0x275e   :  { %4358 = vrot.lane.b32.xlu1 %v9769_v11, %s8745_s26 }
0x27cc   :  { %v4190_v23 = vpop.xlane.xlu0 %4189 }
0x27cd   :  { %v4194_v27 = vsub.f32 %v4186_v13, %v4190_v23 }
0x27ce   :  { %v4193_v55 = vpop.xlane.xlu1 %4192 }
0x27cf   :  { %v4196_v30 = vmul.f32 1.442695, %v4194_v27  ;;  %v4195_v51 = vsub.f32 %v4187_v1, %v4193_v55 }
0x27d1   :  { %8479 = vpow2.f32 %v4196_v30  ;;  %v4198_v31 = vmul.f32 1.442695, %v4195_v51 }
0x27d2   :  { %v4261_v6 = vpop.permute.xlu1 %4260 }
0x27d3   :  { %8481 = vpow2.f32 %v4198_v31  ;;  %v4266_v32 = vsel %vm548_vm3, %v4261_v6, 0 }
0x27d4   :  { %7922 = vmatpush3.bf16.msra.mxu1 %v4266_v32 }
0x27d5   :  { %7933 = vmatprep.subr.bf16.mxu1 %v8740_v16 }
0x27d6   :  { %v4311_v46 = vpop.permute.xlu1 %4310 }
0x27da   :  { %v4361_v49 = vpop.permute.xlu1 %4360 }
0x27db   :  { %v8480_v61 = vpop.eup %8479  ;;  %v4366_v52 = vsel %vm423_vm2, %v4361_v49, 0 }
0x27dc   :  { %v4200_v8 = vsel %vm520_vm5, %v8480_v61, 0.0 }
0x27dd   :  { %v8482_v33 = vpop.eup %8481  ;;  %4201 = vadd.xlane.f32.xlu0 %v4200_v8 }
0x27de   :  { %v4203_v11 = vsel %vm520_vm5, %v8482_v33, 0.0  ;;  %v4359_v58 = vpop.permute.xlu1 %4358 }
0x27e1   :  { %4204 = vadd.xlane.f32.xlu0 %v4203_v11 }
0x27f7   :  { %4212 = vrot.lane.b32.xlu0 %v9746_v54, %s8744_s21 }
0x27fb   :  { %4308 = vrot.lane.b32.xlu0 %v9758_v29, %s8745_s26  ;;  %v4316_v29 = vsel %vm423_vm2, %v4311_v46, 0 }
0x286a   :  { %v4202_v34 = vpop.xlane.xlu0 %4201 }
0x286b   :  { %8483 = vrcp.f32 %v4202_v34 }
0x286e   :  { %v4205_v35 = vpop.xlane.xlu0 %4204 }
0x286f   :  { %8485 = vrcp.f32 %v4205_v35 }
0x2872   :  { %v4213_v37 = vpop.permute.xlu0 %4212 }
0x2873   :  { %v4218_v38 = vsel %vm548_vm3, %v4213_v37, 0 }
0x2874   :  { %7916 = vmatpush3.bf16.msra.mxu0 %v4218_v38 }
0x2875   :  { %v8484_v39 = vpop.eup %8483  ;;  %7927 = vmatprep.subr.bf16.mxu0 %v8740_v16 }
0x2876   :  { %v4208_v40 = vmul.f32 %v8484_v39, %v8480_v61  ;;  %v4309_v41 = vpop.permute.xlu0 %4308 }
0x2878   :  { %v4210_v42 = vpack.c.bf16 %v4208_v40, %v4208_v40  ;;  %v8299_v40 = vld [vmem:[%s10454_s6 + $0x40] sm:$0xff]  }
0x2879   :  { %v8486_v43 = vpop.eup %8485 }
0x287a   :  { %v4209_v48 = vmul.f32 %v8486_v43, %v8482_v33  ;;  %7918 = vmatmul.mubr.msk.bf16.vlgmr.msra.gmra.mrb[100].mxu0 %vm520_vm5, %v4210_v42  ;;  %v8300_v42 = vld [vmem:[%s10454_s6 + $0x48] sm:$0xff]   ;;  %v8301_v43 = vld [vmem:[%s10454_s6 + $0x50] sm:$0xff]  }
0x287b   :  { %7929 = vmatprep.mubr.msk.bf16.mxu0 %vm8741_vm1, %v8740_v16 }
0x287c   :  { %v4211_v50 = vpack.c.bf16 %v4209_v48, %v4209_v48  ;;  %v8302_v48 = vld [vmem:[%s10454_s6 + $0x58] sm:$0xff]  }
0x287d   :  { %7928 = vmatpush3.bf16.xpose.msra.mxu0 %v4316_v29 }
0x287e   :  { %7924 = vmatmul.mubr.msk.bf16.vlgmr.msra.gmra.mrb[128].mxu1 %vm520_vm5, %v4211_v50  ;;  %7939 = vmatprep.subr.bf16.mxu0 %v8740_v16 }
0x287f   :  { %7934 = vmatpush3.bf16.xpose.msra.mxu1 %v4366_v52  ;;  %7935 = vmatprep.mubr.msk.bf16.mxu1 %vm8741_vm1, %v8740_v16 }
0x2880   :  { %7945 = vmatprep.subr.bf16.mxu1 %v8740_v16 }
0x2884   :  { %7930 = vmatmul.mubr.msk.bf16.vlgmr.msra.gmra.mrb[104].mxu0 %vm423_vm2, %v4309_v41 }
0x2885   :  { %7941 = vmatprep.mubr.msk.bf16.mxu0 %vm8741_vm1, %v8740_v16 }
0x2886   :  { %7936 = vmatmul.mubr.msk.bf16.vlgmr.msra.gmra.mrb[132].mxu1 %vm423_vm2, %v4359_v58 }
0x2887   :  { %7947 = vmatprep.mubr.msk.bf16.mxu1 %vm8741_vm1, %v8740_v16 }
0x294d   :  { %v4254_v22 = vpop.f32.mrb[100].mxu0 }
0x294e   :  { %v7919_v45 = vpop.f32.mrb[101].mxu0 }
0x294f   :  { %v4257_v25 = vpop.f32.mrb[102].mxu0 }
0x2950   :  { %v7920_v53 = vpop.f32.mrb[103].mxu0 }
0x2951   :  { %v4302_v26 = vpop.f32.mrb[128].mxu1 }
0x2952   :  { %v8174_v62 = vpack.i.bf16 %v4302_v26, %v4254_v22  ;;  %v7925_v0 = vpop.f32.mrb[129].mxu1 }
0x2953   :  { %v4305_v3 = vpop.f32.mrb[130].mxu1 }
0x2954   :  { %v7926_v4 = vpop.f32.mrb[131].mxu1 }
0x2957   :  { %v4352_v9 = vpop.f32.mrb[104].mxu0 }
0x2958   :  { %v4408_v12 = vmul.f32 0.5, %v4352_v9  ;;  %v7931_v36 = vpop.f32.mrb[105].mxu0 }
0x2959   :  { %v4355_v47 = vpop.f32.mrb[106].mxu0  ;;  %v4402_v13 = vpop.f32.mrb[132].mxu1 }
0x295a   :  { %v4410_v44 = vadd.f32 %v4408_v12, %v9037_v5  ;;  %v4409_v14 = vmul.f32 0.5, %v4402_v13  ;;  %v7932_v15 = vpop.f32.mrb[107].mxu0  ;;  %v7937_v17 = vpop.f32.mrb[133].mxu1 }
0x295b   :  { %v4405_v1 = vpop.f32.mrb[134].mxu1 }
0x295c   :  { %v4411_v18 = vadd.f32 %v4409_v14, %v9037_v5  ;;  %v7938_v20 = vpop.f32.mrb[135].mxu1  ;;  %v4412_v21 = vsel %vm520_vm5, %v4410_v44, -inf }
0x295d   :  { %4413 = vmax.xlane.f32.xlu0 %v4412_v21 }
0x295e   :  { %v4415_v23 = vsel %vm520_vm5, %v4411_v18, -inf }
0x295f   :  { %4416 = vmax.xlane.f32.xlu1 %v4415_v23 }
0x2970   :  { %4484 = vrot.lane.b32.xlu1 %v9767_v10, %s8745_s26 }
0x2974   :  { %8170 = vrot.lane.b32.xlu1 %v8169_v60, %s8746_s23 }
0x2978   :  { %8175 = vrot.lane.b32.xlu1 %v8174_v62, %s8747_s20 }
0x29ea   :  { %v4414_v27 = vpop.xlane.xlu0 %4413 }
0x29eb   :  { %v4418_v55 = vsub.f32 %v4410_v44, %v4414_v27 }
0x29ec   :  { %v4417_v30 = vpop.xlane.xlu1 %4416 }
0x29ed   :  { %v4420_v51 = vmul.f32 1.442695, %v4418_v55  ;;  %v4419_v31 = vsub.f32 %v4411_v18, %v4417_v30  ;;  %v7009_v18 = vld [vmem:[#allocation8 + $0x2] ss:$0 sm:$0xff] }
0x29ef   :  { %8487 = vpow2.f32 %v4420_v51  ;;  %v4422_v6 = vmul.f32 1.442695, %v4419_v31 }
0x29f0   :  { %v4485_v32 = vpop.permute.xlu1 %4484 }
0x29f1   :  { %8489 = vpow2.f32 %v4422_v6  ;;  %v4490_v61 = vsel %vm548_vm3, %v4485_v32, 0 }
0x29f2   :  { %7946 = vmatpush3.bf16.msra.mxu1 %v4490_v61 }
0x29f4   :  { %v8171_v53 = vpop.permute.xlu1 %8170 }
0x29f5   :  { %v8173_v62 = vunpack.i.h.bf16 %v8171_v53  ;;  %v8172_v0 = vunpack.i.l.bf16 %v8171_v53 }
0x29f7   :  { %v4557_v12 = vsel %vm423_vm2, %v9810_v56, %v8173_v62  ;;  %v4556_v36 = vsel %vm423_vm2, %v9808_v19, %v8172_v0 }
0x29f8   :  { %v8176_v26 = vpop.permute.xlu1 %8175 }
0x29f9   :  { %v8488_v10 = vpop.eup %8487  ;;  %v8178_v3 = vunpack.i.h.bf16 %v8176_v26  ;;  %v8177_v4 = vunpack.i.l.bf16 %v8176_v26 }
0x29fa   :  { %v4424_v8 = vsel %vm520_vm5, %v8488_v10, 0.0 }
0x29fb   :  { %v8490_v33 = vpop.eup %8489  ;;  %4425 = vadd.xlane.f32.xlu0 %v4424_v8  ;;  %v4558_v44 = vsel %vm1342_vm6, %v4556_v36, %v8177_v4  ;;  %v4559_v14 = vsel %vm1342_vm6, %v4557_v12, %v8178_v3  ;;  %v7015_v4 = vld [vmem:[#allocation10 + $0x2] ss:$0 sm:$0xff] }
0x29fc   :  { %v4427_v24 = vsel %vm520_vm5, %v8490_v33, 0.0 }
0x29ff   :  { %4428 = vadd.xlane.f32.xlu0 %v4427_v24 }
0x2a15   :  { %4436 = vrot.lane.b32.xlu0 %v9746_v54, %s8745_s26 }
0x2a88   :  { %v4426_v57 = vpop.xlane.xlu0 %4425 }
0x2a89   :  { %8491 = vrcp.f32 %v4426_v57 }
0x2a8c   :  { %v4429_v60 = vpop.xlane.xlu0 %4428 }
0x2a8d   :  { %8493 = vrcp.f32 %v4429_v60  ;;  %v8305_v60 = vld [vmem:[%s10458_s10 + $0x84] ss:$8 sps:$4 sm:$0xff]  }
0x2a8e   :  { %4753 = vmatprep.subr.bf16.mxu1 %v8305_v60 }
0x2a90   :  { %v4437_v11 = vpop.permute.xlu0 %4436 }
0x2a91   :  { %v4442_v34 = vsel %vm548_vm3, %v4437_v11, 0  ;;  %v8303_v11 = vld [vmem:[%s10458_s10 + $0x80] ss:$8 sps:$4 sm:$0xff]  }
0x2a92   :  { %7940 = vmatpush3.bf16.msra.mxu0 %v4442_v34  ;;  %v8308_v34 = vld [vmem:[%s10458_s10 + $0x94] ss:$8 sps:$4 sm:$0xff]  }
0x2a93   :  { %v8492_v35 = vpop.eup %8491  ;;  %7951 = vmatprep.subr.bf16.mxu0 %v8740_v16 }
0x2a94   :  { %v4432_v37 = vmul.f32 %v8492_v35, %v8488_v10  ;;  %v8306_v35 = vld [vmem:[%s10458_s10 + $0x90] ss:$8 sps:$4 sm:$0xff]  }
0x2a96   :  { %v4434_v38 = vpack.c.bf16 %v4432_v37, %v4432_v37  ;;  %v8311_v37 = vld [vmem:[%s10458_s10 + $0xa4] ss:$8 sps:$4 sm:$0xff]  }
0x2a97   :  { %v8494_v39 = vpop.eup %8493 }
0x2a98   :  { %v4433_v46 = vmul.f32 %v8494_v39, %v8490_v33  ;;  %7942 = vmatmul.mubr.msk.bf16.vlgmr.msra.gmra.mrb[108].mxu0 %vm520_vm5, %v4434_v38  ;;  %v8309_v38 = vld [vmem:[%s10458_s10 + $0xa0] ss:$8 sps:$4 sm:$0xff]   ;;  %v8312_v39 = vld [vmem:[%s10458_s10 + $0xb0] ss:$8 sps:$4 sm:$0xff]  }
0x2a99   :  { %7959 = vmatprep.mubr.msk.bf16.mxu0 %vm8741_vm1, %v8740_v16  ;;  %7952 = vmatpush3.bf16.msra.mxu0 %v8299_v40  ;;  %v8316_v40 = vld [vmem:[%s10460_s12 + $0x100] sm:$0xff]  }
0x2a9a   :  { %v4435_v54 = vpack.c.bf16 %v4433_v46, %v4433_v46  ;;  %7953 = vmatprep.subr.bf16.mxu0 %v8740_v16  ;;  %v8314_v46 = vld [vmem:[%s10458_s10 + $0xb4] ss:$8 sps:$4 sm:$0xff]  }
0x2a9c   :  { %7948 = vmatmul.mubr.msk.bf16.vlgmr.msra.gmra.mrb[136].mxu1 %vm520_vm5, %v4435_v54  ;;  %v8315_v54 = vld [vmem:[%s10460_s12 + $0x140] sm:$0xff]  }
0x2a9d   :  { %4785 = vmatprep.mubr.bf16.mxu1 %v8749_v59  ;;  %7954 = vmatpush3.bf16.msra.mxu0 %v8300_v42  ;;  %v8317_v42 = vld [vmem:[%s10460_s12 + $0x148] sm:$0xff]  }
0x2a9e   :  { %7955 = vmatprep.subr.bf16.mxu0 %v8740_v16  ;;  %4754 = vmatpush1.bf16.msra.mxu1 %v8303_v11 }
0x2a9f   :  { %4755 = vmatprep.subr.bf16.mxu1 %v8308_v34  ;;  %v7066_v34 = vld [vmem:[%s10461_s13 + $0x2] ss:$0 sm:$0xff] }
0x2aa1   :  { %7956 = vmatpush3.bf16.msra.mxu0 %v8301_v43  ;;  %v8318_v43 = vld [vmem:[%s10460_s12 + $0x108] sm:$0xff]  }
0x2aa2   :  { %7957 = vmatprep.subr.bf16.mxu0 %v8740_v16  ;;  %4756 = vmatpush1.bf16.msra.mxu1 %v8306_v35 }
0x2aa3   :  { %4757 = vmatprep.subr.bf16.mxu1 %v8311_v37 }
0x2aa5   :  { %7958 = vmatpush3.bf16.msra.mxu0 %v8302_v48  ;;  %v8319_v48 = vld [vmem:[%s10460_s12 + $0x150] sm:$0xff]  }
0x2aa6   :  { %4758 = vmatpush1.bf16.msra.mxu1 %v8309_v38  ;;  %7430 = vmatprep.subr.bf16.mxu0 %v8315_v54 }
0x2aa7   :  { %4759 = vmatprep.subr.bf16.mxu1 %v8314_v46 }
0x2aaa   :  { %4760 = vmatpush1.bf16.msra.mxu1 %v8312_v39 }
0x2aab   :  { %7963 = vmatprep.subr.bf16.mxu1 %v8740_v16 }
0x2b6b   :  { %v4478_v49 = vpop.f32.mrb[108].mxu0 }
0x2b6c   :  { %v7943_v29 = vpop.f32.mrb[109].mxu0 }
0x2b6d   :  { %v4481_v50 = vpop.f32.mrb[110].mxu0  ;;  %v8321_v29 = vld [vmem:[%s10460_s12 + $0x158] sm:$0xff]  }
0x2b6e   :  { %v7944_v52 = vpop.f32.mrb[111].mxu0  ;;  %v8322_v50 = vld [vmem:[%s10460_s12 + $0x118] sm:$0xff]  }
0x2b6f   :  { %v4526_v41 = vpop.f32.mrb[136].mxu1  ;;  %v8323_v52 = vld [vmem:[%s10460_s12 + $0x160] sm:$0xff]  }
0x2b70   :  { %v8179_v58 = vpack.i.bf16 %v4526_v41, %v4478_v49  ;;  %v7949_v22 = vpop.f32.mrb[137].mxu1  ;;  %v8320_v49 = vld [vmem:[%s10460_s12 + $0x110] sm:$0xff]   ;;  %v8324_v41 = vld [vmem:[%s10460_s12 + $0x120] sm:$0xff]  }
0x2b71   :  { %v4529_v45 = vpop.f32.mrb[138].mxu1 }
0x2b72   :  { %8180 = vrot.lane.b32.xlu0 %v8179_v58, %s8748_s25  ;;  %v7950_v25 = vpop.f32.mrb[139].mxu1  ;;  %v8325_v58 = vld [vmem:[%s10460_s12 + $0x168] sm:$0xff]  }
0x2be4   :  { %v8181_v9 = vpop.permute.xlu0 %8180 }
0x2be5   :  { %v8183_v47 = vunpack.i.h.bf16 %v8181_v9  ;;  %v8182_v13 = vunpack.i.l.bf16 %v8181_v9 }
0x2be7   :  { %v4561_v15 = vsel %vm1345_vm7, %v4559_v14, %v8183_v47  ;;  %v4560_v17 = vsel %vm1345_vm7, %v4558_v44, %v8182_v13  ;;  %v7016_v47 = vld [vmem:[#allocation11 + $0x2] ss:$0 sm:$0xff] }
0x2be8   :  { %v4562_v1 = vpack.c.bf16 %v4561_v15, %v4560_v17  ;;  %v8326_v17 = vld [vmem:[%s10460_s12 + $0x128] sm:$0xff]  }
0x2bea   :  { %7960 = vmatmul.mubr.msk.bf16.vlgmr.msra.gmra.mrb[112].mxu0 %vm154_vm0, %v4562_v1  ;;  %v8327_v1 = vld [vmem:[%s10460_s12 + $0x170] sm:$0xff]  }
0x2beb   :  { %7431 = vmatpush3.bf16.msra.mxu0 %v8316_v40 }
0x2bec   :  { %7432 = vmatprep.subr.bf16.mxu0 %v8317_v42 }
0x2bef   :  { %7433 = vmatpush3.bf16.msra.mxu0 %v8318_v43 }
0x2bf0   :  { %7434 = vmatprep.subr.bf16.mxu0 %v8319_v48 }
0x2bf3   :  { %7435 = vmatpush3.bf16.msra.mxu0 %v8320_v49 }
0x2bf4   :  { %7436 = vmatprep.subr.bf16.mxu0 %v8321_v29 }
0x2bf7   :  { %7437 = vmatpush3.bf16.msra.mxu0 %v8322_v50 }
0x2bf8   :  { %7438 = vmatprep.subr.bf16.mxu0 %v8323_v52 }
0x2bfb   :  { %7439 = vmatpush3.bf16.msra.mxu0 %v8324_v41 }
0x2bfc   :  { %7440 = vmatprep.subr.bf16.mxu0 %v8325_v58 }
0x2bff   :  { %7441 = vmatpush3.bf16.msra.mxu0 %v8326_v17 }
0x2c00   :  { %7442 = vmatprep.subr.bf16.mxu0 %v8327_v1  ;;  %v7083_v1 = vld [vmem:[#allocation5 + $0x3] ss:$0 sm:$0xff] }
0x2cbd   :  { %v4638_v20 = vpop.f32.mrb[112].mxu0 }
0x2cbe   :  { %v4639_v21 = vadd.f32 %v7009_v18, %v4638_v20  ;;  %v7961_v56 = vpop.f32.mrb[113].mxu0  ;;  %v8329_v20 = vld [vmem:[%s10460_s12 + $0x178] sm:$0xff]  }
0x2cbf   :  { %v4641_v23 = vpop.f32.mrb[114].mxu0  ;;  %v4698_v56 = vld [vmem:[#allocation13 + $0x2] ss:$4 sm:$0x3] }
0x2cc0   :  { %v9943_v19 = vadd.f32 %v4639_v21, %v9676_v28  ;;  %v4642_v27 = vadd.f32 %v7009_v18, %v4641_v23  ;;  %v7962_v55 = vpop.f32.mrb[115].mxu0  ;;  %v8328_v18 = vld [vmem:[%s10460_s12 + $0x130] sm:$0xff]   ;;  %v8330_v21 = vld [vmem:[%s10460_s12 + $0x138] sm:$0xff]   ;;  %v4703_v23 = vrot.slane %v4698_v56, %v9298_v63 }
0x2cc1   :  { %7443 = vmatpush3.bf16.msra.mxu0 %v8328_v18 }
0x2cc2   :  { %v9946_v30 = vadd.f32 %v4642_v27, %v9679_v7  ;;  %v4649_v51 = vsel %vm154_vm0, %v9943_v19, 0.0  ;;  %7444 = vmatprep.subr.bf16.mxu0 %v8329_v20  ;;  %v4707_v27 = vrot.slane %v4698_v56, %v9301_v2 }
0x2cc3   :  { %4650 = vadd.xlane.f32.xlu1 %v4649_v51 }
0x2cc4   :  { %v4652_v31 = vsel %vm154_vm0, %v9946_v30, 0.0 }
0x2cc5   :  { %4653 = vadd.xlane.f32.xlu0 %v4652_v31  ;;  %7445 = vmatpush3.bf16.msra.mxu0 %v8330_v21 }
0x2cc6   :  { %7987 = vmatprep.subr.bf16.mxu0 %v8740_v16 }
0x2d50   :  { %v4651_v6 = vpop.xlane.xlu1 %4650 }
0x2d51   :  { %v4655_v32 = vmul.f32 0.015625, %v4651_v6 }
0x2d52   :  { %v4654_v61 = vpop.xlane.xlu0 %4653 }
0x2d53   :  { %v4657_v10 = vsub.f32 %v9943_v19, %v4655_v32  ;;  %v4656_v28 = vmul.f32 0.015625, %v4654_v61 }
0x2d55   :  { %v4658_v8 = vsub.f32 %v9946_v30, %v4656_v28  ;;  %v4659_v33 = vmul.f32 %v4657_v10, %v4657_v10 }
0x2d57   :  { %v4661_v7 = vsel %vm154_vm0, %v4659_v33, 0.0  ;;  %v4660_v24 = vmul.f32 %v4658_v8, %v4658_v8 }
0x2d58   :  { %4662 = vadd.xlane.f32.xlu0 %v4661_v7 }
0x2d59   :  { %v4664_v57 = vsel %vm154_vm0, %v4660_v24, 0.0 }
0x2d5c   :  { %4665 = vadd.xlane.f32.xlu0 %v4664_v57 }
0x2de5   :  { %v4663_v22 = vpop.xlane.xlu0 %4662 }
0x2de6   :  { %v4667_v45 = vmul.f32 0.015625, %v4663_v22 }
0x2de8   :  { %v4669_v25 = vadd.f32 1e-05, %v4667_v45 }
0x2de9   :  { %v4666_v53 = vpop.xlane.xlu0 %4665 }
0x2dea   :  { %8495 = vrsqrt.f32 %v4669_v25  ;;  %v4668_v26 = vmul.f32 0.015625, %v4666_v53  ;;  %v8331_v53 = vld [vmem:[%s10451_s3 + $0x60] sm:$0xff]  }
0x2dec   :  { %v4670_v62 = vadd.f32 1e-05, %v4668_v26  ;;  %v8332_v26 = vld [vmem:[%s10453_s5 + $0x60] sm:$0xff]  }
0x2dee   :  { %8497 = vrsqrt.f32 %v4670_v62  ;;  %v8333_v62 = vld [vmem:[%s10451_s3 + $0x68] sm:$0xff]  }
0x2df4   :  { %v8496_v0 = vpop.eup %8495 }
0x2df5   :  { %v4673_v3 = vmul.f32 %v8496_v0, %v4657_v10  ;;  %v8334_v0 = vld [vmem:[%s10453_s5 + $0x68] sm:$0xff]  }
0x2df7   :  { %v4679_v12 = vmul.f32 %v7015_v4, %v4673_v3  ;;  %v8335_v3 = vld [vmem:[%s10451_s3 + $0x70] sm:$0xff]  }
0x2df8   :  { %v8498_v9 = vpop.eup %8497 }
0x2df9   :  { %v4674_v36 = vmul.f32 %v8498_v9, %v4658_v8  ;;  %v4685_v44 = vadd.f32 %v7016_v47, %v4679_v12  ;;  %v8337_v9 = vld [vmem:[%s10451_s3 + $0x78] sm:$0xff]  }
0x2dfa   :  { %v8338_v12 = vld [vmem:[%s10453_s5 + $0x78] sm:$0xff]  }
0x2dfb   :  { %v4680_v13 = vmul.f32 %v7015_v4, %v4674_v36  ;;  %v8336_v4 = vld [vmem:[%s10453_s5 + $0x70] sm:$0xff]  }
0x2dfd   :  { %v4686_v14 = vadd.f32 %v7016_v47, %v4680_v13 }
0x2dff   :  { %v4687_v15 = vpack.c.bf16 %v4686_v14, %v4685_v44 }
0x2e01   :  { %7033 = vmatmul.mubr.msk.bf16.vlgmr.msra.gmra.mrb[140].mxu1 %vm154_vm0, %v4687_v15 }
0x2e02   :  { %7971 = vmatprep.mubr.msk.bf16.mxu1 %vm8741_vm1, %v8740_v16  ;;  %7964 = vmatpush3.bf16.msra.mxu1 %v8331_v53 }
0x2e03   :  { %7965 = vmatprep.subr.bf16.mxu1 %v8740_v16 }
0x2e06   :  { %7966 = vmatpush3.bf16.msra.mxu1 %v8333_v62 }
0x2e07   :  { %7967 = vmatprep.subr.bf16.mxu1 %v8740_v16 }
0x2e0a   :  { %7968 = vmatpush3.bf16.msra.mxu1 %v8335_v3 }
0x2e0b   :  { %7969 = vmatprep.subr.bf16.mxu1 %v8740_v16 }
0x2e0e   :  { %7970 = vmatpush3.bf16.msra.mxu1 %v8337_v9 }
0x2e0f   :  { %7975 = vmatprep.subr.bf16.mxu1 %v8740_v16 }
0x2ed4   :  { %v4787_v55 = vpop.f32.mrb[140].mxu1 }
0x2ed5   :  { %v4788_v51 = vadd.f32 %v4787_v55, %v4703_v23  ;;  %v4789_v31 = vpop.f32.mrb[141].mxu1 }
0x2ed6   :  { %v4790_v6 = vadd.f32 %v4789_v31, %v4707_v27  ;;  %v4791_v32 = vpop.f32.mrb[142].mxu1  ;;  %v8339_v31 = vld [vmem:[%s10452_s4 + $0x60] sm:$0xff]  }
0x2ed7   :  { %v4792_v61 = vadd.f32 %v4791_v32, %v4703_v23  ;;  %v4793_v10 = vpop.f32.mrb[143].mxu1  ;;  %v4796_v8 = vmax.f32 %v4788_v51, 0.0  ;;  %v7084_v23 = vld [vmem:[#allocation7 + $0x3] ss:$0 sm:$0xff]  ;;  %v8340_v32 = vld [vmem:[%s10452_s4 + $0x68] sm:$0xff]  }
0x2ed8   :  { %v4794_v28 = vadd.f32 %v4793_v10, %v4707_v27  ;;  %v4797_v7 = vmax.f32 %v4790_v6, 0.0  ;;  %v8342_v10 = vld [vmem:[%s10452_s4 + $0x78] sm:$0xff]  }
0x2ed9   :  { %v4798_v33 = vmax.f32 %v4792_v61, 0.0  ;;  %v8341_v61 = vld [vmem:[%s10452_s4 + $0x70] sm:$0xff]  }
0x2eda   :  { %v4799_v24 = vmax.f32 %v4794_v28, 0.0 }
0x2edb   :  { %v4800_v57 = vpack.c.bf16 %v4798_v33, %v4796_v8 }
0x2edc   :  { %v4801_v60 = vpack.c.bf16 %v4799_v24, %v4797_v7 }
0x2ede   :  { %4968 = vmatprep.mubr.bf16.mxu0 %v4801_v60 }
0x2edf   :  { %4969 = vmatmul.mubr.bf16.vlgmr.msra.gmra.mrb[116].mxu0 %v4800_v57 }
0x2ee0   :  { %7995 = vmatprep.mubr.msk.bf16.mxu0 %vm8741_vm1, %v8740_v16  ;;  %7988 = vmatpush3.bf16.msra.mxu0 %v8332_v26 }
0x2ee1   :  { %7989 = vmatprep.subr.bf16.mxu0 %v8740_v16 }
0x2ee4   :  { %7990 = vmatpush3.bf16.msra.mxu0 %v8334_v0 }
0x2ee5   :  { %7991 = vmatprep.subr.bf16.mxu0 %v8740_v16 }
0x2ee8   :  { %7992 = vmatpush3.bf16.msra.mxu0 %v8336_v4 }
0x2ee9   :  { %7993 = vmatprep.subr.bf16.mxu0 %v8740_v16 }
0x2eec   :  { %7994 = vmatpush3.bf16.msra.mxu0 %v8338_v12 }
0x2eed   :  { %8011 = vmatprep.subr.bf16.mxu0 %v8740_v16 }
0x2fb2   :  { %v7446_v11 = vpop.f32.mrb[116].mxu0 }
0x2fb3   :  { %v7447_v35 = vpop.f32.mrb[117].mxu0 }
0x2fb4   :  { %v7448_v37 = vadd.f32 %v7447_v35, %v7446_v11  ;;  %v7449_v38 = vpop.f32.mrb[118].mxu0 }
0x2fb5   :  { %v7450_v39 = vpop.f32.mrb[119].mxu0 }
0x2fb6   :  { %v4971_v46 = vadd.f32 %v7448_v37, %v7066_v34  ;;  %v7451_v54 = vadd.f32 %v7450_v39, %v7449_v38 }
0x2fb8   :  { %v10041_v40 = vadd.f32 %v4971_v46, %v9943_v19  ;;  %v4974_v42 = vadd.f32 %v7451_v54, %v7066_v34 }
0x2fba   :  { %v10044_v43 = vadd.f32 %v4974_v42, %v9946_v30  ;;  %v4981_v48 = vsel %vm154_vm0, %v10041_v40, 0.0 }
0x2fbb   :  { %4982 = vadd.xlane.f32.xlu1 %v4981_v48 }
0x2fbc   :  { %v4984_v49 = vsel %vm154_vm0, %v10044_v43, 0.0 }
0x2fbd   :  { %4985 = vadd.xlane.f32.xlu0 %v4984_v49 }
0x3048   :  { %v4983_v29 = vpop.xlane.xlu1 %4982 }
0x3049   :  { %v4987_v50 = vmul.f32 0.015625, %v4983_v29 }
0x304a   :  { %v4986_v52 = vpop.xlane.xlu0 %4985 }
0x304b   :  { %v4989_v41 = vsub.f32 %v10041_v40, %v4987_v50  ;;  %v4988_v58 = vmul.f32 0.015625, %v4986_v52 }
0x304d   :  { %v4990_v19 = vsub.f32 %v10044_v43, %v4988_v58  ;;  %v4991_v22 = vmul.f32 %v4989_v41, %v4989_v41 }
0x304f   :  { %v4993_v30 = vsel %vm154_vm0, %v4991_v22, 0.0  ;;  %v4992_v45 = vmul.f32 %v4990_v19, %v4990_v19 }
0x3050   :  { %4994 = vadd.xlane.f32.xlu1 %v4993_v30 }
0x3051   :  { %v4996_v25 = vsel %vm154_vm0, %v4992_v45, 0.0 }
0x3052   :  { %4997 = vadd.xlane.f32.xlu0 %v4996_v25 }
0x30dd   :  { %v4995_v36 = vpop.xlane.xlu1 %4994 }
0x30de   :  { %v4999_v47 = vmul.f32 0.015625, %v4995_v36 }
0x30df   :  { %v4998_v13 = vpop.xlane.xlu0 %4997 }
0x30e0   :  { %v5001_v44 = vadd.f32 1e-05, %v4999_v47  ;;  %v5000_v14 = vmul.f32 0.015625, %v4998_v13 }
0x30e2   :  { %8499 = vrsqrt.f32 %v5001_v44  ;;  %v5002_v15 = vadd.f32 1e-05, %v5000_v14 }
0x30e4   :  { %8501 = vrsqrt.f32 %v5002_v15 }
0x30ec   :  { %v8500_v17 = vpop.eup %8499 }
0x30ed   :  { %v5005_v18 = vmul.f32 %v8500_v17, %v4989_v41 }
0x30ee   :  { %v8502_v20 = vpop.eup %8501 }
0x30ef   :  { %v5011_v21 = vmul.f32 %v7083_v1, %v5005_v18  ;;  %v5006_v56 = vmul.f32 %v8502_v20, %v4990_v19 }
0x30f1   :  { %v5012_v27 = vmul.f32 %v7083_v1, %v5006_v56  ;;  %v5017_v55 = vadd.f32 %v7084_v23, %v5011_v21 }
0x30f3   :  { %v5018_v51 = vadd.f32 %v7084_v23, %v5012_v27 }
0x30f5   :  { %v5019_v6 = vpack.c.bf16 %v5018_v51, %v5017_v55 }
0x30f7   :  { %7972 = vmatmul.mubr.msk.bf16.vlgmr.msra.gmra.mrb[144].mxu1 %vm154_vm0, %v5019_v6  ;;  %7996 = vmatmul.mubr.msk.bf16.vlgmr.msra.gmra.mrb[120].mxu0 %vm154_vm0, %v5019_v6 }
0x30f8   :  { %7976 = vmatpush3.bf16.msra.mxu1 %v8339_v31  ;;  %7983 = vmatprep.mubr.msk.bf16.mxu1 %vm8741_vm1, %v8740_v16 }
0x30f9   :  { %7977 = vmatprep.subr.bf16.mxu1 %v8740_v16  ;;  %8013 = vmatprep.mubr.msk.bf16.mxu0 %vm8741_vm1, %v8740_v16 }
0x30fc   :  { %7978 = vmatpush3.bf16.msra.mxu1 %v8340_v32 }
0x30fd   :  { %7979 = vmatprep.subr.bf16.mxu1 %v8740_v16 }
0x3100   :  { %7980 = vmatpush3.bf16.msra.mxu1 %v8341_v61 }
0x3101   :  { %7981 = vmatprep.subr.bf16.mxu1 %v8740_v16 }
0x3104   :  { %7982 = vmatpush3.bf16.msra.mxu1 %v8342_v10 }
0x3105   :  { %7999 = vmatprep.subr.bf16.mxu1 %v8740_v16 }
0x3107   :  { %7984 = vmatmul.mubr.msk.bf16.vlgmr.msra.gmra.mrb[148].mxu1 %vm154_vm0, %v5019_v6 }
0x3108   :  { %8001 = vmatprep.mubr.msk.bf16.mxu1 %vm8741_vm1, %v8740_v16 }
0x31ca   :  { %v5090_v28 = vpop.f32.mrb[144].mxu1  ;;  %v5238_v8 = vpop.f32.mrb[120].mxu0 }
0x31cb   :  { %v10111_v33 = vpack.c.bf16 %v5238_v8, %v5238_v8  ;;  %v7973_v7 = vpop.f32.mrb[145].mxu1  ;;  %v7997_v24 = vpop.f32.mrb[121].mxu0  ;;  %v10123_v49 = vpack.c.bf16 %v5090_v28, %v5090_v28 }
0x31cc   :  { %v5093_v57 = vpop.f32.mrb[146].mxu1  ;;  %v5241_v60 = vpop.f32.mrb[122].mxu0 }
0x31cd   :  { %v7974_v11 = vpop.f32.mrb[147].mxu1  ;;  %v7998_v34 = vpop.f32.mrb[123].mxu0  ;;  %v5375_v35 = vsel %vm548_vm3, %v10111_v33, 0  ;;  %v10132_v50 = vpack.c.bf16 %v5241_v60, %v5241_v60  ;;  %v10134_v52 = vpack.c.bf16 %v5093_v57, %v5093_v57 }
0x31ce   :  { %8012 = vmatpush3.bf16.msra.mxu0 %v5375_v35 }
0x31cf   :  { %8023 = vmatprep.subr.bf16.mxu0 %v8740_v16  ;;  %v5421_v41 = vsel %vm548_vm3, %v10132_v50, 0 }
0x31da   :  { %v5164_v37 = vpop.f32.mrb[148].mxu1 }
0x31db   :  { %v10116_v38 = vpack.c.bf16 %v5164_v37, %v5164_v37  ;;  %v7985_v39 = vpop.f32.mrb[149].mxu1 }
0x31dc   :  { %v5167_v46 = vpop.f32.mrb[150].mxu1 }
0x31dd   :  { %v7986_v54 = vpop.f32.mrb[151].mxu1  ;;  %v5255_v42 = vsel %vm423_vm2, %v10116_v38, 0  ;;  %v10121_v48 = vpack.c.bf16 %v5167_v46, %v5167_v46 }
0x31de   :  { %8000 = vmatpush3.bf16.xpose.msra.mxu1 %v5255_v42 }
0x31df   :  { %8005 = vmatprep.subr.bf16.mxu1 %v8740_v16  ;;  %v5301_v29 = vsel %vm423_vm2, %v10121_v48, 0 }
0x31e5   :  { %8002 = vmatmul.mubr.msk.bf16.vlgmr.msra.gmra.mrb[152].mxu1 %vm423_vm2, %v10123_v49 }
0x31e6   :  { %8006 = vmatpush3.bf16.xpose.msra.mxu1 %v5301_v29  ;;  %8007 = vmatprep.mubr.msk.bf16.mxu1 %vm8741_vm1, %v8740_v16 }
0x31e7   :  { %8017 = vmatprep.subr.bf16.mxu1 %v8740_v16 }
0x31ed   :  { %8008 = vmatmul.mubr.msk.bf16.vlgmr.msra.gmra.mrb[156].mxu1 %vm423_vm2, %v10134_v52 }
0x31ee   :  { %8018 = vmatpush3.bf16.msra.mxu1 %v5421_v41  ;;  %8019 = vmatprep.mubr.msk.bf16.mxu1 %vm8741_vm1, %v8740_v16 }
0x31ef   :  { %8029 = vmatprep.subr.bf16.mxu1 %v8740_v16 }
0x32b8   :  { %v5291_v58 = vpop.f32.mrb[152].mxu1 }
0x32b9   :  { %v5343_v19 = vmul.f32 0.5, %v5291_v58  ;;  %v8003_v22 = vpop.f32.mrb[153].mxu1 }
0x32ba   :  { %v5294_v30 = vpop.f32.mrb[154].mxu1 }
0x32bb   :  { %v5345_v45 = vadd.f32 %v5343_v19, %v9037_v5  ;;  %v8004_v25 = vpop.f32.mrb[155].mxu1 }
0x32bd   :  { %v5347_v53 = vsel %vm520_vm5, %v5345_v45, -inf }
0x32be   :  { %5348 = vmax.xlane.f32.xlu1 %v5347_v53 }
0x32c0   :  { %v5337_v26 = vpop.f32.mrb[156].mxu1 }
0x32c1   :  { %v5344_v62 = vmul.f32 0.5, %v5337_v26  ;;  %v8009_v0 = vpop.f32.mrb[157].mxu1 }
0x32c2   :  { %v5340_v3 = vpop.f32.mrb[158].mxu1 }
0x32c3   :  { %v5346_v4 = vadd.f32 %v5344_v62, %v9037_v5  ;;  %v8010_v9 = vpop.f32.mrb[159].mxu1 }
0x32c5   :  { %v5350_v12 = vsel %vm520_vm5, %v5346_v4, -inf }
0x32c6   :  { %5351 = vmax.xlane.f32.xlu0 %v5350_v12 }
0x32cf   :  { %5467 = vrot.lane.b32.xlu1 %v10116_v38, %s8743_s19 }
0x334b   :  { %v5349_v36 = vpop.xlane.xlu1 %5348 }
0x334c   :  { %v5353_v47 = vsub.f32 %v5345_v45, %v5349_v36 }
0x334e   :  { %v5355_v13 = vmul.f32 1.442695, %v5353_v47 }
0x334f   :  { %v5468_v21 = vpop.permute.xlu1 %5467 }
0x3350   :  { %8503 = vpow2.f32 %v5355_v13  ;;  %v5473_v31 = vsel %vm423_vm2, %v5468_v21, 0 }
0x3353   :  { %v5352_v44 = vpop.xlane.xlu0 %5351 }
0x3354   :  { %v5354_v14 = vsub.f32 %v5346_v4, %v5352_v44 }
0x3356   :  { %v5357_v15 = vmul.f32 1.442695, %v5354_v14 }
0x3358   :  { %8505 = vpow2.f32 %v5357_v15 }
0x335a   :  { %v8504_v17 = vpop.eup %8503 }
0x335b   :  { %v5359_v1 = vsel %vm520_vm5, %v8504_v17, 0.0 }
0x335c   :  { %5360 = vadd.xlane.f32.xlu1 %v5359_v1 }
0x3362   :  { %v8506_v18 = vpop.eup %8505 }
0x3363   :  { %v5362_v20 = vsel %vm520_vm5, %v8506_v18, 0.0 }
0x3364   :  { %5363 = vadd.xlane.f32.xlu0 %v5362_v20 }
0x336d   :  { %5464 = vrot.lane.b32.xlu1 %v10123_v49, %s8743_s19 }
0x3371   :  { %5516 = vrot.lane.b32.xlu1 %v10134_v52, %s8743_s19 }
0x337a   :  { %5519 = vrot.lane.b32.xlu0 %v10121_v48, %s8743_s19 }
0x33e9   :  { %v5361_v56 = vpop.xlane.xlu1 %5360 }
0x33ea   :  { %8507 = vrcp.f32 %v5361_v56 }
0x33ed   :  { %v5465_v28 = vpop.permute.xlu1 %5464 }
0x33f1   :  { %v5364_v23 = vpop.xlane.xlu0 %5363  ;;  %v5517_v7 = vpop.permute.xlu1 %5516 }
0x33f2   :  { %8509 = vrcp.f32 %v5364_v23 }
0x33f4   :  { %v8508_v27 = vpop.eup %8507 }
0x33f5   :  { %v5367_v55 = vmul.f32 %v8508_v27, %v8504_v17  ;;  %v5520_v61 = vpop.permute.xlu0 %5519 }
0x33f6   :  { %v5525_v8 = vsel %vm423_vm2, %v5520_v61, 0 }
0x33f7   :  { %v5369_v51 = vpack.c.bf16 %v5367_v55, %v5367_v55 }
0x33f9   :  { %8014 = vmatmul.mubr.msk.bf16.vlgmr.msra.gmra.mrb[124].mxu0 %vm520_vm5, %v5369_v51 }
0x33fa   :  { %8024 = vmatpush3.bf16.xpose.msra.mxu0 %v5473_v31  ;;  %8025 = vmatprep.mubr.msk.bf16.mxu0 %vm8741_vm1, %v8740_v16 }
0x33fb   :  { %8035 = vmatprep.subr.bf16.mxu0 %v8740_v16 }
0x33fc   :  { %v8510_v6 = vpop.eup %8509 }
0x33fd   :  { %v5368_v32 = vmul.f32 %v8510_v6, %v8506_v18 }
0x33ff   :  { %v5370_v10 = vpack.c.bf16 %v5368_v32, %v5368_v32 }
0x3401   :  { %8020 = vmatmul.mubr.msk.bf16.vlgmr.msra.gmra.mrb[160].mxu1 %vm520_vm5, %v5370_v10  ;;  %8026 = vmatmul.mubr.msk.bf16.vlgmr.msra.gmra.mrb[128].mxu0 %vm423_vm2, %v5465_v28 }
0x3402   :  { %8030 = vmatpush3.bf16.xpose.msra.mxu1 %v5525_v8  ;;  %8031 = vmatprep.mubr.msk.bf16.mxu1 %vm8741_vm1, %v8740_v16 }
0x3403   :  { %8041 = vmatprep.subr.bf16.mxu1 %v8740_v16  ;;  %8037 = vmatprep.mubr.msk.bf16.mxu0 %vm8741_vm1, %v8740_v16 }
0x3409   :  { %8032 = vmatmul.mubr.msk.bf16.vlgmr.msra.gmra.mrb[164].mxu1 %vm423_vm2, %v5517_v7 }
0x340a   :  { %8043 = vmatprep.mubr.msk.bf16.mxu1 %vm8741_vm1, %v8740_v16 }
0x34cc   :  { %v10173_v24 = vpop.f32.mrb[124].mxu0 }
0x34cd   :  { %v8015_v57 = vpop.f32.mrb[125].mxu0 }
0x34ce   :  { %v5414_v60 = vpop.f32.mrb[126].mxu0 }
0x34cf   :  { %v8016_v11 = vpop.f32.mrb[127].mxu0 }
0x34d4   :  { %v10175_v34 = vpop.f32.mrb[160].mxu1  ;;  %v5509_v35 = vpop.f32.mrb[128].mxu0 }
0x34d5   :  { %v5567_v37 = vmul.f32 0.5, %v5509_v35  ;;  %v8021_v39 = vpop.f32.mrb[161].mxu1  ;;  %v8027_v46 = vpop.f32.mrb[129].mxu0 }
0x34d6   :  { %v5460_v54 = vpop.f32.mrb[162].mxu1  ;;  %v5512_v42 = vpop.f32.mrb[130].mxu0 }
0x34d7   :  { %v5569_v29 = vadd.f32 %v5567_v37, %v9037_v5  ;;  %v8022_v41 = vpop.f32.mrb[163].mxu1  ;;  %v8028_v58 = vpop.f32.mrb[131].mxu0 }
0x34d9   :  { %v5571_v19 = vsel %vm520_vm5, %v5569_v29, -inf }
0x34da   :  { %5572 = vmax.xlane.f32.xlu1 %v5571_v19 }
0x34dc   :  { %v5561_v22 = vpop.f32.mrb[164].mxu1 }
0x34dd   :  { %v5568_v30 = vmul.f32 0.5, %v5561_v22  ;;  %v8033_v45 = vpop.f32.mrb[165].mxu1 }
0x34de   :  { %v5564_v25 = vpop.f32.mrb[166].mxu1 }
0x34df   :  { %v5570_v53 = vadd.f32 %v5568_v30, %v9037_v5  ;;  %v8034_v26 = vpop.f32.mrb[167].mxu1 }
0x34e1   :  { %v5574_v62 = vsel %vm520_vm5, %v5570_v53, -inf }
0x34e2   :  { %5575 = vmax.xlane.f32.xlu0 %v5574_v62 }
0x34eb   :  { %5596 = vrot.lane.b32.xlu1 %v10111_v33, %s8743_s19 }
0x34ef   :  { %5695 = vrot.lane.b32.xlu1 %v10116_v38, %s8744_s21 }
0x34f3   :  { %5745 = vrot.lane.b32.xlu1 %v10121_v48, %s8744_s21 }
0x34f7   :  { %5693 = vrot.lane.b32.xlu1 %v10123_v49, %s8744_s21 }
0x3567   :  { %v5573_v0 = vpop.xlane.xlu1 %5572 }
0x3568   :  { %v5577_v3 = vsub.f32 %v5569_v29, %v5573_v0 }
0x356a   :  { %v5579_v4 = vmul.f32 1.442695, %v5577_v3 }
0x356b   :  { %v5597_v9 = vpop.permute.xlu1 %5596 }
0x356c   :  { %8511 = vpow2.f32 %v5579_v4  ;;  %v5602_v12 = vsel %vm548_vm3, %v5597_v9, 0 }
0x356d   :  { %8036 = vmatpush3.bf16.msra.mxu0 %v5602_v12 }
0x356e   :  { %8047 = vmatprep.subr.bf16.mxu0 %v8740_v16 }
0x356f   :  { %v5576_v36 = vpop.xlane.xlu0 %5575  ;;  %v5696_v21 = vpop.permute.xlu1 %5695 }
0x3570   :  { %v5578_v47 = vsub.f32 %v5570_v53, %v5576_v36  ;;  %v5701_v51 = vsel %vm423_vm2, %v5696_v21, 0 }
0x3572   :  { %v5581_v13 = vmul.f32 1.442695, %v5578_v47 }
0x3573   :  { %v5746_v31 = vpop.permute.xlu1 %5745 }
0x3574   :  { %8513 = vpow2.f32 %v5581_v13  ;;  %v5751_v28 = vsel %vm423_vm2, %v5746_v31, 0 }
0x3576   :  { %v8512_v44 = vpop.eup %8511 }
0x3577   :  { %v5583_v14 = vsel %vm520_vm5, %v8512_v44, 0.0  ;;  %v5694_v10 = vpop.permute.xlu1 %5693 }
0x3578   :  { %5584 = vadd.xlane.f32.xlu0 %v5583_v14 }
0x357e   :  { %v8514_v15 = vpop.eup %8513 }
0x357f   :  { %v5586_v17 = vsel %vm520_vm5, %v8514_v15, 0.0 }
0x3580   :  { %5587 = vadd.xlane.f32.xlu0 %v5586_v17 }
0x3596   :  { %5645 = vrot.lane.b32.xlu0 %v10132_v50, %s8743_s19 }
0x359a   :  { %5743 = vrot.lane.b32.xlu0 %v10134_v52, %s8744_s21 }
0x3605   :  { %v5585_v1 = vpop.xlane.xlu0 %5584 }
0x3606   :  { %8515 = vrcp.f32 %v5585_v1 }
0x360d   :  { %v5588_v18 = vpop.xlane.xlu0 %5587 }
0x360e   :  { %8517 = vrcp.f32 %v5588_v18 }
0x3610   :  { %v8516_v20 = vpop.eup %8515 }
0x3611   :  { %v5591_v56 = vmul.f32 %v8516_v20, %v8512_v44  ;;  %v5646_v23 = vpop.permute.xlu0 %5645 }
0x3612   :  { %v5651_v27 = vsel %vm548_vm3, %v5646_v23, 0 }
0x3613   :  { %8042 = vmatpush3.bf16.msra.mxu1 %v5651_v27  ;;  %v5593_v55 = vpack.c.bf16 %v5591_v56, %v5591_v56 }
0x3614   :  { %8053 = vmatprep.subr.bf16.mxu1 %v8740_v16 }
0x3615   :  { %8038 = vmatmul.mubr.msk.bf16.vlgmr.msra.gmra.mrb[132].mxu0 %vm520_vm5, %v5593_v55  ;;  %v5744_v8 = vpop.permute.xlu0 %5743 }
0x3616   :  { %8048 = vmatpush3.bf16.xpose.msra.mxu0 %v5701_v51  ;;  %8049 = vmatprep.mubr.msk.bf16.mxu0 %vm8741_vm1, %v8740_v16 }
0x3617   :  { %8059 = vmatprep.subr.bf16.mxu0 %v8740_v16 }
0x3618   :  { %v8518_v6 = vpop.eup %8517 }
0x3619   :  { %v5592_v32 = vmul.f32 %v8518_v6, %v8514_v15 }
0x361b   :  { %v5594_v61 = vpack.c.bf16 %v5592_v32, %v5592_v32 }
0x361d   :  { %8044 = vmatmul.mubr.msk.bf16.vlgmr.msra.gmra.mrb[168].mxu1 %vm520_vm5, %v5594_v61  ;;  %8050 = vmatmul.mubr.msk.bf16.vlgmr.msra.gmra.mrb[136].mxu0 %vm423_vm2, %v5694_v10 }
0x361e   :  { %8054 = vmatpush3.bf16.xpose.msra.mxu1 %v5751_v28  ;;  %8055 = vmatprep.mubr.msk.bf16.mxu1 %vm8741_vm1, %v8740_v16 }
0x361f   :  { %8065 = vmatprep.subr.bf16.mxu1 %v8740_v16  ;;  %8061 = vmatprep.mubr.msk.bf16.mxu0 %vm8741_vm1, %v8740_v16 }
0x3625   :  { %8056 = vmatmul.mubr.msk.bf16.vlgmr.msra.gmra.mrb[172].mxu1 %vm423_vm2, %v5744_v8 }
0x3626   :  { %8067 = vmatprep.mubr.msk.bf16.mxu1 %vm8741_vm1, %v8740_v16 }
0x36e8   :  { %v10215_v7 = vpop.f32.mrb[132].mxu0 }
0x36e9   :  { %v8039_v57 = vpop.f32.mrb[133].mxu0 }
0x36ea   :  { %v5641_v60 = vpop.f32.mrb[134].mxu0 }
0x36eb   :  { %v8040_v11 = vpop.f32.mrb[135].mxu0 }
0x36f0   :  { %v10217_v35 = vpop.f32.mrb[168].mxu1  ;;  %v5737_v37 = vpop.f32.mrb[136].mxu0 }
0x36f1   :  { %v8184_v39 = vpack.i.bf16 %v10217_v35, %v10215_v7  ;;  %v5793_v46 = vmul.f32 0.5, %v5737_v37  ;;  %v8045_v54 = vpop.f32.mrb[169].mxu1  ;;  %v8051_v42 = vpop.f32.mrb[137].mxu0 }
0x36f2   :  { %v5690_v29 = vpop.f32.mrb[170].mxu1  ;;  %v5740_v41 = vpop.f32.mrb[138].mxu0 }
0x36f3   :  { %v5795_v58 = vadd.f32 %v5793_v46, %v9037_v5  ;;  %v8046_v19 = vpop.f32.mrb[171].mxu1  ;;  %v8052_v22 = vpop.f32.mrb[139].mxu0 }
0x36f5   :  { %v5797_v30 = vsel %vm520_vm5, %v5795_v58, -inf }
0x36f6   :  { %5798 = vmax.xlane.f32.xlu1 %v5797_v30 }
0x36f8   :  { %v5787_v45 = vpop.f32.mrb[172].mxu1 }
0x36f9   :  { %v5794_v25 = vmul.f32 0.5, %v5787_v45  ;;  %v8057_v53 = vpop.f32.mrb[173].mxu1 }
0x36fa   :  { %v5790_v26 = vpop.f32.mrb[174].mxu1 }
0x36fb   :  { %v5796_v62 = vadd.f32 %v5794_v25, %v9037_v5  ;;  %v8058_v0 = vpop.f32.mrb[175].mxu1 }
0x36fd   :  { %v5800_v3 = vsel %vm520_vm5, %v5796_v62, -inf }
0x36fe   :  { %5801 = vmax.xlane.f32.xlu0 %v5800_v3 }
0x3707   :  { %5821 = vrot.lane.b32.xlu1 %v10111_v33, %s8744_s21 }
0x370b   :  { %5919 = vrot.lane.b32.xlu1 %v10116_v38, %s8745_s26 }
0x370f   :  { %5969 = vrot.lane.b32.xlu1 %v10121_v48, %s8745_s26 }
0x3713   :  { %5917 = vrot.lane.b32.xlu1 %v10123_v49, %s8745_s26 }
0x3783   :  { %v5799_v4 = vpop.xlane.xlu1 %5798 }
0x3784   :  { %v5803_v9 = vsub.f32 %v5795_v58, %v5799_v4 }
0x3786   :  { %v5805_v12 = vmul.f32 1.442695, %v5803_v9 }
0x3787   :  { %v5822_v36 = vpop.permute.xlu1 %5821 }
0x3788   :  { %8519 = vpow2.f32 %v5805_v12  ;;  %v5827_v47 = vsel %vm548_vm3, %v5822_v36, 0 }
0x3789   :  { %8060 = vmatpush3.bf16.msra.mxu0 %v5827_v47 }
0x378a   :  { %8071 = vmatprep.subr.bf16.mxu0 %v8740_v16 }
0x378b   :  { %v5802_v13 = vpop.xlane.xlu0 %5801  ;;  %v5920_v20 = vpop.permute.xlu1 %5919 }
0x378c   :  { %v5804_v44 = vsub.f32 %v5796_v62, %v5802_v13  ;;  %v5925_v55 = vsel %vm423_vm2, %v5920_v20, 0 }
0x378e   :  { %v5807_v14 = vmul.f32 1.442695, %v5804_v44 }
0x378f   :  { %v5970_v51 = vpop.permute.xlu1 %5969 }
0x3790   :  { %8521 = vpow2.f32 %v5807_v14  ;;  %v5975_v61 = vsel %vm423_vm2, %v5970_v51, 0 }
0x3792   :  { %v8520_v38 = vpop.eup %8519 }
0x3793   :  { %v5809_v48 = vsel %vm520_vm5, %v8520_v38, 0.0  ;;  %v5918_v32 = vpop.permute.xlu1 %5917 }
0x3794   :  { %5810 = vadd.xlane.f32.xlu0 %v5809_v48 }
0x379a   :  { %v8522_v15 = vpop.eup %8521 }
0x379b   :  { %v5812_v49 = vsel %vm520_vm5, %v8522_v15, 0.0 }
0x379c   :  { %5813 = vadd.xlane.f32.xlu0 %v5812_v49 }
0x37b2   :  { %5869 = vrot.lane.b32.xlu0 %v10132_v50, %s8744_s21 }
0x37b6   :  { %5967 = vrot.lane.b32.xlu0 %v10134_v52, %s8745_s26 }
0x3821   :  { %v5811_v17 = vpop.xlane.xlu0 %5810 }
0x3822   :  { %8523 = vrcp.f32 %v5811_v17 }
0x3829   :  { %v5814_v1 = vpop.xlane.xlu0 %5813 }
0x382a   :  { %8525 = vrcp.f32 %v5814_v1 }
0x382c   :  { %v8524_v18 = vpop.eup %8523 }
0x382d   :  { %v5817_v21 = vmul.f32 %v8524_v18, %v8520_v38  ;;  %v5870_v56 = vpop.permute.xlu0 %5869 }
0x382e   :  { %v5875_v23 = vsel %vm548_vm3, %v5870_v56, 0 }
0x382f   :  { %8066 = vmatpush3.bf16.msra.mxu1 %v5875_v23  ;;  %v5819_v27 = vpack.c.bf16 %v5817_v21, %v5817_v21  ;;  %v8344_v23 = vld [vmem:[%s10454_s6 + $0x68] sm:$0xff]  }
0x3830   :  { %8077 = vmatprep.subr.bf16.mxu1 %v8740_v16 }
0x3831   :  { %8062 = vmatmul.mubr.msk.bf16.vlgmr.msra.gmra.mrb[140].mxu0 %vm520_vm5, %v5819_v27  ;;  %v5968_v10 = vpop.permute.xlu0 %5967  ;;  %v8345_v27 = vld [vmem:[%s10454_s6 + $0x70] sm:$0xff]  }
0x3832   :  { %8072 = vmatpush3.bf16.xpose.msra.mxu0 %v5925_v55  ;;  %8073 = vmatprep.mubr.msk.bf16.mxu0 %vm8741_vm1, %v8740_v16 }
0x3833   :  { %8083 = vmatprep.subr.bf16.mxu0 %v8740_v16 }
0x3834   :  { %v8526_v52 = vpop.eup %8525 }
0x3835   :  { %v5818_v31 = vmul.f32 %v8526_v52, %v8522_v15 }
0x3837   :  { %v5820_v6 = vpack.c.bf16 %v5818_v31, %v5818_v31 }
0x3839   :  { %8068 = vmatmul.mubr.msk.bf16.vlgmr.msra.gmra.mrb[176].mxu1 %vm520_vm5, %v5820_v6  ;;  %8074 = vmatmul.mubr.msk.bf16.vlgmr.msra.gmra.mrb[144].mxu0 %vm423_vm2, %v5918_v32 }
0x383a   :  { %8078 = vmatpush3.bf16.xpose.msra.mxu1 %v5975_v61  ;;  %8079 = vmatprep.mubr.msk.bf16.mxu1 %vm8741_vm1, %v8740_v16 }
0x383b   :  { %8089 = vmatprep.subr.bf16.mxu1 %v8740_v16  ;;  %8085 = vmatprep.mubr.msk.bf16.mxu0 %vm8741_vm1, %v8740_v16 }
0x3841   :  { %8080 = vmatmul.mubr.msk.bf16.vlgmr.msra.gmra.mrb[180].mxu1 %vm423_vm2, %v5968_v10 }
0x3842   :  { %8091 = vmatprep.mubr.msk.bf16.mxu1 %vm8741_vm1, %v8740_v16 }
0x3904   :  { %v5863_v28 = vpop.f32.mrb[140].mxu0 }
0x3905   :  { %v8063_v8 = vpop.f32.mrb[141].mxu0 }
0x3906   :  { %v5866_v57 = vpop.f32.mrb[142].mxu0 }
0x3907   :  { %v8064_v60 = vpop.f32.mrb[143].mxu0 }
0x390c   :  { %v5911_v11 = vpop.f32.mrb[176].mxu1  ;;  %v5961_v37 = vpop.f32.mrb[144].mxu0 }
0x390d   :  { %v8189_v46 = vpack.i.bf16 %v5911_v11, %v5863_v28  ;;  %v6017_v54 = vmul.f32 0.5, %v5961_v37  ;;  %v8069_v42 = vpop.f32.mrb[177].mxu1  ;;  %v8075_v29 = vpop.f32.mrb[145].mxu0 }
0x390e   :  { %v5914_v41 = vpop.f32.mrb[178].mxu1  ;;  %v5964_v58 = vpop.f32.mrb[146].mxu0 }
0x390f   :  { %v6019_v19 = vadd.f32 %v6017_v54, %v9037_v5  ;;  %v8070_v22 = vpop.f32.mrb[179].mxu1  ;;  %v8076_v30 = vpop.f32.mrb[147].mxu0 }
0x3911   :  { %v6021_v45 = vsel %vm520_vm5, %v6019_v19, -inf }
0x3912   :  { %6022 = vmax.xlane.f32.xlu1 %v6021_v45 }
0x3914   :  { %v6011_v25 = vpop.f32.mrb[180].mxu1 }
0x3915   :  { %v6018_v53 = vmul.f32 0.5, %v6011_v25  ;;  %v8081_v26 = vpop.f32.mrb[181].mxu1 }
0x3916   :  { %v6014_v62 = vpop.f32.mrb[182].mxu1 }
0x3917   :  { %v6020_v0 = vadd.f32 %v6018_v53, %v9037_v5  ;;  %v8082_v3 = vpop.f32.mrb[183].mxu1  ;;  %v7148_v53 = vld [vmem:[#allocation8 + $0x3] ss:$0 sm:$0xff] }
0x3919   :  { %v6024_v4 = vsel %vm520_vm5, %v6020_v0, -inf }
0x391a   :  { %6025 = vmax.xlane.f32.xlu0 %v6024_v4 }
0x3923   :  { %6045 = vrot.lane.b32.xlu1 %v10111_v33, %s8745_s26 }
0x3927   :  { %8185 = vrot.lane.b32.xlu1 %v8184_v39, %s8746_s23 }
0x392b   :  { %8190 = vrot.lane.b32.xlu1 %v8189_v46, %s8747_s20 }
0x399f   :  { %v6023_v9 = vpop.xlane.xlu1 %6022 }
0x39a0   :  { %v6027_v12 = vsub.f32 %v6019_v19, %v6023_v9 }
0x39a2   :  { %v6029_v36 = vmul.f32 1.442695, %v6027_v12 }
0x39a3   :  { %v6046_v47 = vpop.permute.xlu1 %6045 }
0x39a4   :  { %8527 = vpow2.f32 %v6029_v36  ;;  %v6051_v5 = vsel %vm548_vm3, %v6046_v47, 0 }
0x39a5   :  { %8084 = vmatpush3.bf16.msra.mxu0 %v6051_v5 }
0x39a6   :  { %8095 = vmatprep.subr.bf16.mxu0 %v8740_v16 }
0x39a7   :  { %v6026_v13 = vpop.xlane.xlu0 %6025  ;;  %v8186_v8 = vpop.permute.xlu1 %8185 }
0x39a8   :  { %v6028_v44 = vsub.f32 %v6020_v0, %v6026_v13  ;;  %v8188_v60 = vunpack.i.h.bf16 %v8186_v8  ;;  %v8187_v11 = vunpack.i.l.bf16 %v8186_v8 }
0x39aa   :  { %v6031_v33 = vmul.f32 1.442695, %v6028_v44  ;;  %v6166_v42 = vsel %vm423_vm2, %v10175_v34, %v8188_v60  ;;  %v6165_v29 = vsel %vm423_vm2, %v10173_v24, %v8187_v11  ;;  %v7154_v11 = vld [vmem:[#allocation10 + $0x3] ss:$0 sm:$0xff] }
0x39ab   :  { %v8191_v57 = vpop.permute.xlu1 %8190 }
0x39ac   :  { %8529 = vpow2.f32 %v6031_v33  ;;  %v8193_v37 = vunpack.i.h.bf16 %v8191_v57  ;;  %v8192_v46 = vunpack.i.l.bf16 %v8191_v57 }
0x39ae   :  { %v8528_v14 = vpop.eup %8527  ;;  %v6168_v19 = vsel %vm1342_vm6, %v6166_v42, %v8193_v37  ;;  %v6167_v22 = vsel %vm1342_vm6, %v6165_v29, %v8192_v46  ;;  %v7155_v42 = vld [vmem:[#allocation11 + $0x3] ss:$0 sm:$0xff] }
0x39af   :  { %v6033_v7 = vsel %vm520_vm5, %v8528_v14, 0.0 }
0x39b0   :  { %6034 = vadd.xlane.f32.xlu0 %v6033_v7 }
0x39b6   :  { %v8530_v35 = vpop.eup %8529 }
0x39b7   :  { %v6036_v39 = vsel %vm520_vm5, %v8530_v35, 0.0 }
0x39b8   :  { %6037 = vadd.xlane.f32.xlu0 %v6036_v39  ;;  %v8349_v39 = vld [vmem:[%s10458_s10 + $0xc4] ss:$8 sps:$4 sm:$0xff]  }
0x39ce   :  { %6093 = vrot.lane.b32.xlu0 %v10132_v50, %s8745_s26  ;;  %v8343_v50 = vld [vmem:[%s10454_s6 + $0x60] sm:$0xff]  }
0x3a3d   :  { %v6035_v38 = vpop.xlane.xlu0 %6034 }
0x3a3e   :  { %8531 = vrcp.f32 %v6035_v38  ;;  %v8347_v38 = vld [vmem:[%s10458_s10 + $0xc0] ss:$8 sps:$4 sm:$0xff]  }
0x3a45   :  { %v6038_v48 = vpop.xlane.xlu0 %6037 }
0x3a46   :  { %8533 = vrcp.f32 %v6038_v48  ;;  %v8352_v48 = vld [vmem:[%s10458_s10 + $0xd4] ss:$8 sps:$4 sm:$0xff]  }
0x3a48   :  { %v8532_v15 = vpop.eup %8531 }
0x3a49   :  { %v6041_v49 = vmul.f32 %v8532_v15, %v8528_v14  ;;  %v6094_v17 = vpop.permute.xlu0 %6093  ;;  %v8350_v15 = vld [vmem:[%s10458_s10 + $0xd0] ss:$8 sps:$4 sm:$0xff]  }
0x3a4a   :  { %v6099_v1 = vsel %vm548_vm3, %v6094_v17, 0  ;;  %v8353_v17 = vld [vmem:[%s10458_s10 + $0xe0] ss:$8 sps:$4 sm:$0xff]  }
0x3a4b   :  { %8090 = vmatpush3.bf16.msra.mxu1 %v6099_v1  ;;  %v6043_v18 = vpack.c.bf16 %v6041_v49, %v6041_v49  ;;  %v8355_v49 = vld [vmem:[%s10458_s10 + $0xe4] ss:$8 sps:$4 sm:$0xff]   ;;  %v8356_v1 = vld [vmem:[%s10458_s10 + $0xf0] ss:$8 sps:$4 sm:$0xff]  }
0x3a4c   :  { %6362 = vmatprep.subr.bf16.mxu1 %v8349_v39 }
0x3a4d   :  { %8086 = vmatmul.mubr.msk.bf16.vlgmr.msra.gmra.mrb[148].mxu0 %vm520_vm5, %v6043_v18  ;;  %v8358_v18 = vld [vmem:[%s10458_s10 + $0xf4] ss:$8 sps:$4 sm:$0xff]  }
0x3a4e   :  { %8103 = vmatprep.mubr.msk.bf16.mxu0 %vm8741_vm1, %v8740_v16  ;;  %8096 = vmatpush3.bf16.msra.mxu0 %v8343_v50  ;;  %v8362_v50 = vld [vmem:[%s10460_s12 + $0x188] sm:$0xff]  }
0x3a4f   :  { %8097 = vmatprep.subr.bf16.mxu0 %v8740_v16 }
0x3a50   :  { %v8534_v20 = vpop.eup %8533 }
0x3a51   :  { %v6042_v21 = vmul.f32 %v8534_v20, %v8530_v35  ;;  %v8359_v20 = vld [vmem:[%s10460_s12 + $0x1c0] sm:$0xff]  }
0x3a52   :  { %8098 = vmatpush3.bf16.msra.mxu0 %v8344_v23  ;;  %v8363_v23 = vld [vmem:[%s10460_s12 + $0x1d0] sm:$0xff]  }
0x3a53   :  { %v6044_v56 = vpack.c.bf16 %v6042_v21, %v6042_v21  ;;  %8099 = vmatprep.subr.bf16.mxu0 %v8740_v16  ;;  %v8360_v21 = vld [vmem:[%s10460_s12 + $0x180] sm:$0xff]  }
0x3a55   :  { %8092 = vmatmul.mubr.msk.bf16.vlgmr.msra.gmra.mrb[184].mxu1 %vm520_vm5, %v6044_v56  ;;  %v8361_v56 = vld [vmem:[%s10460_s12 + $0x1c8] sm:$0xff]  }
0x3a56   :  { %6394 = vmatprep.mubr.bf16.mxu1 %v8749_v59  ;;  %8100 = vmatpush3.bf16.msra.mxu0 %v8345_v27  ;;  %v8346_v59 = vld [vmem:[%s10454_s6 + $0x78] sm:$0xff]   ;;  %v8364_v27 = vld [vmem:[%s10460_s12 + $0x190] sm:$0xff]  }
0x3a57   :  { %8101 = vmatprep.subr.bf16.mxu0 %v8740_v16  ;;  %6363 = vmatpush1.bf16.msra.mxu1 %v8347_v38 }
0x3a58   :  { %6364 = vmatprep.subr.bf16.mxu1 %v8352_v48 }
0x3a5a   :  { %8102 = vmatpush3.bf16.msra.mxu0 %v8346_v59  ;;  %v8365_v59 = vld [vmem:[%s10460_s12 + $0x1d8] sm:$0xff]  }
0x3a5b   :  { %6365 = vmatpush1.bf16.msra.mxu1 %v8350_v15  ;;  %7504 = vmatprep.subr.bf16.mxu0 %v8359_v20 }
0x3a5c   :  { %6366 = vmatprep.subr.bf16.mxu1 %v8355_v49 }
0x3a5f   :  { %6367 = vmatpush1.bf16.msra.mxu1 %v8353_v17 }
0x3a60   :  { %6368 = vmatprep.subr.bf16.mxu1 %v8358_v18 }
0x3a63   :  { %6369 = vmatpush1.bf16.msra.mxu1 %v8356_v1 }
0x3a64   :  { %8107 = vmatprep.subr.bf16.mxu1 %v8740_v16 }
0x3b20   :  { %v6087_v55 = vpop.f32.mrb[148].mxu0 }
0x3b21   :  { %v8087_v51 = vpop.f32.mrb[149].mxu0 }
0x3b22   :  { %v6090_v52 = vpop.f32.mrb[150].mxu0  ;;  %v8367_v51 = vld [vmem:[%s10460_s12 + $0x1e0] sm:$0xff]  }
0x3b23   :  { %v8088_v31 = vpop.f32.mrb[151].mxu0  ;;  %v8368_v52 = vld [vmem:[%s10460_s12 + $0x1a0] sm:$0xff]  }
0x3b24   :  { %v8369_v31 = vld [vmem:[%s10460_s12 + $0x1e8] sm:$0xff]  }
0x3b28   :  { %v6135_v6 = vpop.f32.mrb[184].mxu1 }
0x3b29   :  { %v8194_v32 = vpack.i.bf16 %v6135_v6, %v6087_v55  ;;  %v8093_v61 = vpop.f32.mrb[185].mxu1  ;;  %v8366_v55 = vld [vmem:[%s10460_s12 + $0x198] sm:$0xff]  }
0x3b2a   :  { %v6138_v10 = vpop.f32.mrb[186].mxu1 }
0x3b2b   :  { %8195 = vrot.lane.b32.xlu1 %v8194_v32, %s8748_s25  ;;  %v8094_v28 = vpop.f32.mrb[187].mxu1 }
0x3b9d   :  { %v8196_v54 = vpop.permute.xlu1 %8195 }
0x3b9e   :  { %v8198_v41 = vunpack.i.h.bf16 %v8196_v54  ;;  %v8197_v58 = vunpack.i.l.bf16 %v8196_v54 }
0x3ba0   :  { %v6170_v30 = vsel %vm1345_vm7, %v6168_v19, %v8198_v41  ;;  %v6169_v45 = vsel %vm1345_vm7, %v6167_v22, %v8197_v58  ;;  %v8370_v22 = vld [vmem:[%s10460_s12 + $0x1a8] sm:$0xff]  }
0x3ba1   :  { %v6171_v25 = vpack.c.bf16 %v6170_v30, %v6169_v45  ;;  %v8371_v30 = vld [vmem:[%s10460_s12 + $0x1f0] sm:$0xff]  }
0x3ba2   :  { %v8372_v45 = vld [vmem:[%s10460_s12 + $0x1b0] sm:$0xff]  }
0x3ba3   :  { %8104 = vmatmul.mubr.msk.bf16.vlgmr.msra.gmra.mrb[152].mxu0 %vm154_vm0, %v6171_v25  ;;  %v8373_v25 = vld [vmem:[%s10460_s12 + $0x1f8] sm:$0xff]  }
0x3ba4   :  { %7505 = vmatpush3.bf16.msra.mxu0 %v8360_v21 }
0x3ba5   :  { %7506 = vmatprep.subr.bf16.mxu0 %v8361_v56 }
0x3ba8   :  { %7507 = vmatpush3.bf16.msra.mxu0 %v8362_v50 }
0x3ba9   :  { %7508 = vmatprep.subr.bf16.mxu0 %v8363_v23 }
0x3bac   :  { %7509 = vmatpush3.bf16.msra.mxu0 %v8364_v27 }
0x3bad   :  { %7510 = vmatprep.subr.bf16.mxu0 %v8365_v59 }
0x3bb0   :  { %7511 = vmatpush3.bf16.msra.mxu0 %v8366_v55 }
0x3bb1   :  { %7512 = vmatprep.subr.bf16.mxu0 %v8367_v51 }
0x3bb4   :  { %7513 = vmatpush3.bf16.msra.mxu0 %v8368_v52 }
0x3bb5   :  { %7514 = vmatprep.subr.bf16.mxu0 %v8369_v31 }
0x3bb8   :  { %7515 = vmatpush3.bf16.msra.mxu0 %v8370_v22 }
0x3bb9   :  { %7516 = vmatprep.subr.bf16.mxu0 %v8371_v30 }
0x3bbc   :  { %7517 = vmatpush3.bf16.msra.mxu0 %v8372_v45  ;;  %v7224_v45 = vld [vmem:[%s10465_s17] ss:$0 sm:$0xff] }
0x3bbd   :  { %7518 = vmatprep.subr.bf16.mxu0 %v8373_v25 }
0x3c76   :  { %v6247_v26 = vpop.f32.mrb[152].mxu0 }
0x3c77   :  { %v6248_v62 = vadd.f32 %v7148_v53, %v6247_v26  ;;  %v8105_v34 = vpop.f32.mrb[153].mxu0  ;;  %v6307_v26 = vld [vmem:[#allocation13 + $0x3] ss:$4 sm:$0x3] }
0x3c78   :  { %v6250_v0 = vpop.f32.mrb[154].mxu0  ;;  %v6316_v34 = vrot.slane %v6307_v26, %v9301_v2 }
0x3c79   :  { %v10308_v24 = vadd.f32 %v6248_v62, %v10041_v40  ;;  %v6251_v3 = vadd.f32 %v7148_v53, %v6250_v0  ;;  %v8106_v4 = vpop.f32.mrb[155].mxu0  ;;  %v8374_v53 = vld [vmem:[%s10460_s12 + $0x1b8] sm:$0xff]   ;;  %v6312_v62 = vrot.slane %v6307_v26, %v9298_v63  ;;  %v7205_v63 = vld [vmem:[%s10461_s13 + $0x3] ss:$0 sm:$0xff] }
0x3c7a   :  { %7519 = vmatpush3.bf16.msra.mxu0 %v8374_v53 }
0x3c7b   :  { %v10311_v9 = vadd.f32 %v6251_v3, %v10044_v43  ;;  %v6258_v12 = vsel %vm154_vm0, %v10308_v24, 0.0 }
0x3c7c   :  { %6259 = vadd.xlane.f32.xlu0 %v6258_v12 }
0x3c7d   :  { %v6261_v36 = vsel %vm154_vm0, %v10311_v9, 0.0 }
0x3c7e   :  { %6262 = vadd.xlane.f32.xlu1 %v6261_v36 }
0x3d09   :  { %v6260_v47 = vpop.xlane.xlu0 %6259 }
0x3d0a   :  { %v6264_v5 = vmul.f32 0.015625, %v6260_v47 }
0x3d0b   :  { %v6263_v13 = vpop.xlane.xlu1 %6262 }
0x3d0c   :  { %v6266_v44 = vsub.f32 %v10308_v24, %v6264_v5  ;;  %v6265_v40 = vmul.f32 0.015625, %v6263_v13 }
0x3d0e   :  { %v6267_v33 = vsub.f32 %v10311_v9, %v6265_v40  ;;  %v6268_v14 = vmul.f32 %v6266_v44, %v6266_v44 }
0x3d10   :  { %v6270_v43 = vsel %vm154_vm0, %v6268_v14, 0.0  ;;  %v6269_v7 = vmul.f32 %v6267_v33, %v6267_v33 }
0x3d11   :  { %6271 = vadd.xlane.f32.xlu0 %v6270_v43 }
0x3d12   :  { %v6273_v35 = vsel %vm154_vm0, %v6269_v7, 0.0 }
0x3d15   :  { %6274 = vadd.xlane.f32.xlu0 %v6273_v35 }
0x3d9e   :  { %v6272_v6 = vpop.xlane.xlu0 %6271 }
0x3d9f   :  { %v6276_v32 = vmul.f32 0.015625, %v6272_v6  ;;  %v8376_v6 = vld [vmem:[%s10464_s16 + $0x8] sm:$0xff]  }
0x3da1   :  { %v6278_v61 = vadd.f32 1e-05, %v6276_v32  ;;  %v8377_v32 = vld [vmem:[%s10464_s16 + $0x10] sm:$0xff]  }
0x3da2   :  { %v6275_v10 = vpop.xlane.xlu0 %6274 }
0x3da3   :  { %8535 = vrsqrt.f32 %v6278_v61  ;;  %v6277_v28 = vmul.f32 0.015625, %v6275_v10  ;;  %v8378_v61 = vld [vmem:[%s10464_s16 + $0x18] sm:$0xff]  }
0x3da5   :  { %v6279_v8 = vadd.f32 1e-05, %v6277_v28 }
0x3da7   :  { %8537 = vrsqrt.f32 %v6279_v8 }
0x3dad   :  { %v8536_v57 = vpop.eup %8535 }
0x3dae   :  { %v6282_v60 = vmul.f32 %v8536_v57, %v6266_v44 }
0x3db0   :  { %v6288_v46 = vmul.f32 %v7154_v11, %v6282_v60 }
0x3db1   :  { %v8538_v37 = vpop.eup %8537 }
0x3db2   :  { %v6283_v54 = vmul.f32 %v8538_v37, %v6267_v33  ;;  %v6294_v41 = vadd.f32 %v7155_v42, %v6288_v46  ;;  %v7222_v46 = vld [vmem:[%s10462_s14] ss:$0 sm:$0xff]  ;;  %s8750_s14 = smov [#allocation14]  }
0x3db3   :  { %s6723_s19 = sshll.u32 %s8750_s14, 4  ;;  %s6724_s19 = int_to_ptr.vmem [resolvable:$true] %s6723_s19 }
0x3db4   :  { %v6289_v29 = vmul.f32 %v7154_v11, %v6283_v54  ;;  %p8704_p1 = scmp.lt.s32.totalorder %s6724_s19, %s6724_s19 }
0x3db6   :  { %v6295_v58 = vadd.f32 %v7155_v42, %v6289_v29 }
0x3db8   :  { %v6296_v19 = vpack.c.bf16 %v6295_v58, %v6294_v41 }
0x3dba   :  { %7172 = vmatmul.mubr.msk.bf16.vlgmr.msra.gmra.mrb[188].mxu1 %vm154_vm0, %v6296_v19 }
0x3dbb   :  { %8115 = vmatprep.mubr.msk.bf16.mxu1 %vm8741_vm1, %v8740_v16 }
0x3e8d   :  { %v6396_v0 = vpop.f32.mrb[188].mxu1 }
0x3e8e   :  { %v6397_v3 = vadd.f32 %v6396_v0, %v6312_v62  ;;  %v6398_v4 = vpop.f32.mrb[189].mxu1 }
0x3e8f   :  { %v6399_v12 = vadd.f32 %v6398_v4, %v6316_v34  ;;  %v6400_v36 = vpop.f32.mrb[190].mxu1 }
0x3e90   :  { %v6401_v47 = vadd.f32 %v6400_v36, %v6312_v62  ;;  %v6402_v5 = vpop.f32.mrb[191].mxu1  ;;  %v6405_v44 = vmax.f32 %v6397_v3, 0.0 }
0x3e91   :  { %v6403_v13 = vadd.f32 %v6402_v5, %v6316_v34  ;;  %v6406_v33 = vmax.f32 %v6399_v12, 0.0 }
0x3e92   :  { %v6407_v40 = vmax.f32 %v6401_v47, 0.0 }
0x3e93   :  { %v6408_v14 = vmax.f32 %v6403_v13, 0.0 }
0x3e94   :  { %v6409_v43 = vpack.c.bf16 %v6407_v40, %v6405_v44 }
0x3e95   :  { %v6410_v7 = vpack.c.bf16 %v6408_v14, %v6406_v33 }
0x3e97   :  { %6577 = vmatprep.mubr.bf16.mxu0 %v6410_v7 }
0x3e98   :  { %6578 = vmatmul.mubr.bf16.vlgmr.msra.gmra.mrb[156].mxu0 %v6409_v43 }
0x3f6b   :  { %v7520_v35 = vpop.f32.mrb[156].mxu0 }
0x3f6c   :  { %v7521_v2 = vpop.f32.mrb[157].mxu0 }
0x3f6d   :  { %v7522_v39 = vadd.f32 %v7521_v2, %v7520_v35  ;;  %v7523_v38 = vpop.f32.mrb[158].mxu0 }
0x3f6e   :  { %v7524_v48 = vpop.f32.mrb[159].mxu0 }
0x3f6f   :  { %v6580_v15 = vadd.f32 %v7522_v39, %v7205_v63  ;;  %v7525_v49 = vadd.f32 %v7524_v48, %v7523_v38 }
0x3f71   :  { %v6583_v17 = vadd.f32 %v7525_v49, %v7205_v63  ;;  %v6586_v1 = vadd.f32 %v6580_v15, %v10308_v24 }
0x3f73   :  { %v6590_v18 = vsel %vm154_vm0, %v6586_v1, 0.0  ;;  %v6587_v20 = vadd.f32 %v6583_v17, %v10311_v9  ;;  %v8375_v9 = vld [vmem:[%s10464_s16] sm:$0xff]  }
0x3f74   :  { %6591 = vadd.xlane.f32.xlu0 %v6590_v18  ;;  %8108 = vmatpush3.bf16.msra.mxu1 %v8375_v9 }
0x3f75   :  { %v6593_v21 = vsel %vm154_vm0, %v6587_v20, 0.0  ;;  %8109 = vmatprep.subr.bf16.mxu1 %v8740_v16 }
0x3f76   :  { %6594 = vadd.xlane.f32.xlu1 %v6593_v21 }
0x3f78   :  { %8110 = vmatpush3.bf16.msra.mxu1 %v8376_v6 }
0x3f79   :  { %8111 = vmatprep.subr.bf16.mxu1 %v8740_v16 }
0x3f7c   :  { %8112 = vmatpush3.bf16.msra.mxu1 %v8377_v32 }
0x3f7d   :  { %8113 = vmatprep.subr.bf16.mxu1 %v8740_v16  ;;  %v7223_v16 = vld [vmem:[%s10463_s15] ss:$0 sm:$0xff]  ;;  %s8699_s15 = scalar_lea.vmem %s6724_s19, 256 }
0x3f7e   :  { %p8700_p0 = scmp.ne.s32.totalorder %s6724_s19, %s8699_s15  ;;  %p8705_p2 = scmp.lt.s32.totalorder %s8699_s15, %s8699_s15 }
0x3f80   :  { %8114 = vmatpush3.bf16.msra.mxu1 %v8378_v61  ;;  %p8706_p3 = por %p8705_p2, %p8704_p1 }
0x3f82   :  { %p8707_p4 = pnand %p8706_p3, %p8700_p0 }
0x4001   :  { %v6592_v56 = vpop.xlane.xlu0 %6591 }
0x4002   :  { %v6596_v50 = vmul.f32 0.015625, %v6592_v56 }
0x4003   :  { %v6595_v23 = vpop.xlane.xlu1 %6594 }
0x4004   :  { %v6598_v27 = vsub.f32 %v6586_v1, %v6596_v50  ;;  %v6597_v59 = vmul.f32 0.015625, %v6595_v23 }
0x4006   :  { %v6599_v55 = vsub.f32 %v6587_v20, %v6597_v59  ;;  %v6600_v51 = vmul.f32 %v6598_v27, %v6598_v27 }
0x4008   :  { %v6602_v52 = vsel %vm154_vm0, %v6600_v51, 0.0  ;;  %v6601_v31 = vmul.f32 %v6599_v55, %v6599_v55 }
0x4009   :  { %6603 = vadd.xlane.f32.xlu0 %v6602_v52 }
0x400a   :  { %v6605_v24 = vsel %vm154_vm0, %v6601_v31, 0.0 }
0x400b   :  { %6606 = vadd.xlane.f32.xlu1 %v6605_v24 }
0x4096   :  { %v6604_v10 = vpop.xlane.xlu0 %6603 }
0x4097   :  { %v6608_v28 = vmul.f32 0.015625, %v6604_v10 }
0x4098   :  { %v6607_v8 = vpop.xlane.xlu1 %6606 }
0x4099   :  { %v6610_v57 = vadd.f32 1e-05, %v6608_v28  ;;  %v6609_v60 = vmul.f32 0.015625, %v6607_v8 }
0x409b   :  { %8539 = vrsqrt.f32 %v6610_v57  ;;  %v6611_v11 = vadd.f32 1e-05, %v6609_v60 }
0x409d   :  { %8541 = vrsqrt.f32 %v6611_v11 }
0x40a5   :  { %v8540_v37 = vpop.eup %8539 }
0x40a6   :  { %v6614_v54 = vmul.f32 %v8540_v37, %v6598_v27 }
0x40a7   :  { %v8542_v42 = vpop.eup %8541 }
0x40a8   :  { %v6622_v29 = vmul.f32 %v7222_v46, %v6614_v54  ;;  %v6615_v41 = vmul.f32 %v8542_v42, %v6599_v55 }
0x40aa   :  { %v6623_v58 = vmul.f32 %v7222_v46, %v6615_v41  ;;  %v6630_v19 = vadd.f32 %v7223_v16, %v6622_v29 }
0x40ac   :  { %v6631_v22 = vadd.f32 %v7223_v16, %v6623_v58 }
0x40ae   :  { %v6632_v30 = vpack.c.bf16 %v6631_v22, %v6630_v19 }
0x40b0   :  { %8116 = vmatmul.mubr.msk.bf16.vlgmr.msra.gmra.mrb[192].mxu1 %vm154_vm0, %v6632_v30 }
0x4183   :  { %v6709_v25 = vpop.f32.mrb[192].mxu1 }
0x4184   :  { %v6710_v53 = vadd.f32 %v7224_v45, %v6709_v25  ;;  %v8117_v26 = vpop.f32.mrb[193].mxu1 }
0x4185   :  { %v6712_v62 = vpop.f32.mrb[194].mxu1 }
0x4186   :  { %6716 = vst [vmem:[#allocation14] sm:$0xff] %v6710_v53  ;;  %v6713_v34 = vadd.f32 %v7224_v45, %v6712_v62  ;;  %v8118_v0 = vpop.f32.mrb[195].mxu1 }
0x4188   :  { %6717 = vst [vmem:[#allocation14 + $0x8] sm:$0xff] %v6713_v34 }
0x4189   :  { %8710 = shalt.err (!%p8707_p4)
}
0x418a   :  { %s10478_s26 = sld [smem:[#allocation23_spill]] }
0x4190   :  { %s8711_s23 = scalar_lea.hbm %s10478_s26, 256 }
0x4191   :  { %p8712_p5 = scmp.ne.s32.totalorder %s10478_s26, %s8711_s23  ;;  %p8715_p6 = scmp.lt.u32.totalorder %s8711_s23, %s10478_s26 }
0x4193   :  { %p8717_p7 = pnand %p8715_p6, %p8712_p5 }
0x4195   :  { %8720 = shalt.err (!%p8717_p7)
}
0x4196   :  { %6729 = dma.vmem_to_hbm [thread:$0]  %s6724_s19, 256, %s10478_s26, [#allocation4], %s8735_s9, %s8735_s9, %s8736_s24  }
0x4197   :  { %8729 = dma.done.wait [#allocation4], 256  }
0x4198   :  { %8730 = vsyncadd [#allocation4], 4294967040 }
0x4199   :  { %6733 = vsyncpa [#allocation3], 1 }
0x419a   :  { %6734 = vsyncpa [#allocation6], 1 }
0x419b   :  { %6735 = vsyncpa [#allocation9], 1 }
0x419c   :  { %6736 = vsyncpa [#allocation12], 1 }
0x419d   :  { %6737 = vsyncpa [#allocation4], 1 }

</bundles_post_ra>
